<compile_context>
chip_gen: v5e
topology: v5e:2x2
jax: 0.10.0
libtpu: 0.0.40
codegen_flags: <defaults>
</compile_context>

<pallas_src>
import functools

import jax
import jax.numpy as jnp
from jax import lax
from jax.experimental import pallas as pl
from jax.experimental.pallas import tpu as pltpu

EPS = 1e-5                                  # PyTorch nn.LayerNorm default
_DEFAULT_SCOPED_VMEM = 16 * 1024 * 1024     # smallest default scoped limit (v5e)


def _round_up(n, m):
    return ((n + m - 1) // m) * m


def _vmem_budget_bytes():
    """~85% of this generation's physical VMEM (v7x: 64 MiB, v5e/v6e: 128 MiB)."""
    try:
        cap = pltpu.get_tpu_info().vmem_capacity_bytes
    except Exception:
        cap = 64 * 1024 * 1024              # conservative fallback (v7x-sized)
    return int(cap * 0.85)


def _layernorm(h, gamma, beta, inv_n):
    """One-pass LayerNorm over the last dim (f32, biased variance).

    No lane mask is needed: padded weight columns, biases, gamma and beta are
    all zero, so padded lanes of h are exactly zero and contribute nothing to
    either sum; only the 1/f_valid normalizer uses the true feature count.
    The two reductions are independent (better XLU pipelining) and the
    (h - mu) temporary of the two-pass form disappears.
    """
    s = jnp.sum(h, axis=-1, keepdims=True)
    sq = jnp.sum(h * h, axis=-1, keepdims=True)
    mu = s * inv_n
    var = sq * inv_n - mu * mu
    return (h - mu) * lax.rsqrt(var + EPS) * gamma + beta


def resblock_kernel(x_ref, w1_ref, b1_ref, g1_ref, be1_ref,
                    w2_ref, b2_ref, g2_ref, be2_ref, o_ref, *, inv_n):
    # Linear 1 (MXU, bf16 operands, f32 accumulation).
    xb = x_ref[...].astype(jnp.bfloat16)
    h = jnp.dot(xb, w1_ref[...], preferred_element_type=jnp.float32) + b1_ref[...]

    # LayerNorm 1 + ReLU (f32).  Note: K=N=128 only half-fills the 256-wide
    # MXU on v6e/v7x, but at small F the kernel is HBM/step-overhead bound,
    # so tile size and io dtype matter, not MXU shape.
    h = _layernorm(h, g1_ref[...], be1_ref[...], inv_n)
    h = jnp.maximum(h, 0.0)

    # Linear 2.
    h = jnp.dot(h.astype(jnp.bfloat16), w2_ref[...],
                preferred_element_type=jnp.float32) + b2_ref[...]

    # LayerNorm 2.
    h = _layernorm(h, g2_ref[...], be2_ref[...], inv_n)

    # Residual add: re-read x from the VMEM tile (keeps the f32 copy's live
    # range short instead of holding it across both matmuls).
    o_ref[...] = (x_ref[...].astype(jnp.float32) + h).astype(o_ref.dtype)


def _pad2(a, rows, cols):
    pr, pc = rows - a.shape[0], cols - a.shape[1]
    if pr or pc:
        a = jnp.pad(a, ((0, pr), (0, pc)))
    return a


def prepare_params(params, features):
    """Pad/cast parameters to the lane-dense feature dim ONCE, outside the hot
    path (each call would otherwise re-materialize both (Fp,Fp) weights in HBM).
    Weights are (in, out) == W_torch.T, kept in bf16."""
    Fp = _round_up(features, 128)
    return dict(
        f_valid=features,
        f_padded=Fp,
        w1=_pad2(params["w1"], Fp, Fp),
        w2=_pad2(params["w2"], Fp, Fp),
        b1=_pad2(params["b1"], 1, Fp),
        b2=_pad2(params["b2"], 1, Fp),
        g1=_pad2(params["g1"], 1, Fp),
        g2=_pad2(params["g2"], 1, Fp),
        beta1=_pad2(params["beta1"], 1, Fp),
        beta2=_pad2(params["beta2"], 1, Fp),
    )


def _pick_tm(batch, f_padded):
    """Batch-tile selection.

    Small F is HBM / per-step-overhead bound, so use big tiles (512-row tiles
    reach ~85% of HBM roofline vs ~63% at 256).  Always aim for >= 2 grid
    steps so the v7x megacore can shard the batch axis across its two
    TensorCores, and size the tile from ceil(B / n_tiles) so the last tile is
    not mostly zero-padding (e.g. B=300 -> two 152-row tiles, not 512).
    """
    target = 512 if f_padded <= 512 else 256
    n_tiles = max(2, pl.cdiv(batch, target)) if batch >= 16 else 1
    return _round_up(pl.cdiv(batch, n_tiles), 8)


def residual_block(x, prep, *, tm=None, out_dtype=None):
    """x: (B, F) float32.  prep: output of prepare_params().  Returns (B, F).

    out_dtype=jnp.bfloat16 halves the store traffic (worth ~1.3-1.5x in the
    HBM-bound small-F regime) at a precision cost; default keeps f32 to match
    the PyTorch forward exactly.
    """
    B, F = x.shape
    assert F == prep["f_valid"], "x feature dim does not match prepared params"
    Fp = prep["f_padded"]
    out_dtype = x.dtype if out_dtype is None else out_dtype

    if tm is None:
        tm = _pick_tm(B, Fp)
    Bp = _round_up(B, tm)
    x_p = _pad2(x, Bp, Fp)

    # Whole-array VMEM operands: DMA'd once before the grid, single-buffered
    # (no 2x pipeline buffers for constant-index blocks).
    resident = pl.BlockSpec(memory_space=pltpu.MemorySpace.VMEM)

    # VMEM budget: single-buffered weights/vectors + double-buffered io tiles
    # + f32 intermediates; cap at ~85% of this generation's physical VMEM.
    w_bytes = 2 * Fp * Fp * 2               # two bf16 (Fp, Fp) weights, 1 buffer
    vec_bytes = 6 * Fp * 4                  # bias/gamma/beta, 1 buffer each
    io_bytes = 2 * 2 * tm * Fp * 4          # x + out tiles, double-buffered f32
    tmp_bytes = 2 * tm * Fp * 4             # f32 intermediates (h, LN temps)
    needed = int((w_bytes + vec_bytes + io_bytes + tmp_bytes) * 1.2)
    vmem_limit = None
    if needed > _DEFAULT_SCOPED_VMEM:
        budget = _vmem_budget_bytes()
        if needed > budget:
            # TODO(synk): for F large enough that resident weights blow this
            # generation's VMEM (~2.5K on v7x, ~3.5-4K on v5e/v6e), switch to
            # an N/K-tiled matmul with a VMEM f32 accumulator and a pl.when
            # LayerNorm/ReLU epilogue instead of full-resident weights.
            needed = budget
        vmem_limit = needed

    cost = pl.CostEstimate(
        flops=4 * Bp * Fp * Fp,             # two (Bp,Fp)@(Fp,Fp) matmuls
        transcendentals=2 * Bp,             # one rsqrt per row per LayerNorm
        bytes_accessed=int(2 * Bp * Fp * 4 + w_bytes + vec_bytes),
    )

    out = pl.pallas_call(
        functools.partial(resblock_kernel, inv_n=float(1.0 / F)),
        out_shape=jax.ShapeDtypeStruct((Bp, Fp), out_dtype),
        grid=(Bp // tm,),
        in_specs=[
            pl.BlockSpec((tm, Fp), lambda i: (i, 0)),   # x tile (pipelined)
            resident, resident, resident, resident,     # w1, b1, gamma1, beta1
            resident, resident, resident, resident,     # w2, b2, gamma2, beta2
        ],
        out_specs=pl.BlockSpec((tm, Fp), lambda i: (i, 0)),
        compiler_params=pltpu.CompilerParams(
            dimension_semantics=("parallel",),
            vmem_limit_bytes=vmem_limit),
        cost_estimate=cost,
    )(x_p, prep["w1"], prep["b1"], prep["g1"], prep["beta1"],
      prep["w2"], prep["b2"], prep["g2"], prep["beta2"])

    return out[:B, :F]


def make_params(key, features):
    """Deterministic synthetic parameters (in_features == out_features == F)."""
    k1, k2, k3, k4 = jax.random.split(key, 4)
    bound = 1.0 / jnp.sqrt(features)
    # stored as (in, out) == W_torch.T; weights kept in bf16 for MXU/DMA
    w1 = jax.random.uniform(k1, (features, features), jnp.float32,
                            -bound, bound).astype(jnp.bfloat16)
    w2 = jax.random.uniform(k3, (features, features), jnp.float32,
                            -bound, bound).astype(jnp.bfloat16)
    b1 = jax.random.uniform(k2, (1, features), jnp.float32, -bound, bound)
    b2 = jax.random.uniform(k4, (1, features), jnp.float32, -bound, bound)
    # LayerNorm affine params (torch default init: weight=1, bias=0)
    g1 = jnp.ones((1, features), jnp.float32)
    beta1 = jnp.zeros((1, features), jnp.float32)
    g2 = jnp.ones((1, features), jnp.float32)
    beta2 = jnp.zeros((1, features), jnp.float32)
    return dict(w1=w1, b1=b1, g1=g1, beta1=beta1,
                w2=w2, b2=b2, g2=g2, beta2=beta2)


def residual_block_ref(x, p):
    """Pure-JAX reference mirroring the PyTorch forward (bf16 matmul operands,
    f32 accumulation and f32 LayerNorm, exactly like the kernel)."""
    h = jnp.dot(x.astype(jnp.bfloat16), p["w1"],
                preferred_element_type=jnp.float32) + p["b1"]
    mu = h.mean(-1, keepdims=True)
    var = ((h - mu) ** 2).mean(-1, keepdims=True)
    h = (h - mu) / jnp.sqrt(var + EPS) * p["g1"] + p["beta1"]
    h = jnp.maximum(h, 0.0)
    h = jnp.dot(h.astype(jnp.bfloat16), p["w2"],
                preferred_element_type=jnp.float32) + p["b2"]
    mu = h.mean(-1, keepdims=True)
    var = ((h - mu) ** 2).mean(-1, keepdims=True)
    h = (h - mu) / jnp.sqrt(var + EPS) * p["g2"] + p["beta2"]
    return x + h


if __name__ == "__main__":
    key = jax.random.PRNGKey(0)
    k1, k2, k3, k4 = jax.random.split(key, 4)

    # Case 1: lane/MXU-aligned shapes.  F=128 -> lane-dense (unmasked) stores;
    # B=512 -> two 256-row grid steps so the v7x megacore can shard the batch.
    B, F = 512, 128
    x = jax.random.normal(k1, (B, F), jnp.float32)
    params = make_params(k2, F)
    prep = prepare_params(params, F)           # pad/cast once, reuse across calls
    out = jax.block_until_ready(residual_block(x, prep))
    ref = residual_block_ref(x, params)
    assert out.shape == (B, F)
    assert jnp.allclose(out, ref, atol=2e-3, rtol=2e-3), "mismatch (aligned case)"

    # Case 2: unaligned B and F -> exercises feature padding and the adaptive
    # batch tile (300 rows -> two 152-row tiles, not a 512-row mostly-zero pad).
    B2, F2 = 300, 96
    x2 = jax.random.normal(k3, (B2, F2), jnp.float32)
    params2 = make_params(k4, F2)
    prep2 = prepare_params(params2, F2)
    out2 = jax.block_until_ready(residual_block(x2, prep2))
    ref2 = residual_block_ref(x2, params2)
    assert out2.shape == (B2, F2)
    assert jnp.allclose(out2, ref2, atol=2e-3, rtol=2e-3), "mismatch (padded case)"

    print("KERNEL_OK")
</pallas_src>

<mosaic_0001>
module attributes {stable_mosaic.version = 11 : i64} {
  func.func @resblock_kernel(%arg0: i32, %arg1: memref<256x128xf32, #tpu.memory_space<vmem>>, %arg2: memref<128x128xbf16, #tpu.memory_space<vmem>>, %arg3: memref<1x128xf32, #tpu.memory_space<vmem>>, %arg4: memref<1x128xf32, #tpu.memory_space<vmem>>, %arg5: memref<1x128xf32, #tpu.memory_space<vmem>>, %arg6: memref<128x128xbf16, #tpu.memory_space<vmem>>, %arg7: memref<1x128xf32, #tpu.memory_space<vmem>>, %arg8: memref<1x128xf32, #tpu.memory_space<vmem>>, %arg9: memref<1x128xf32, #tpu.memory_space<vmem>>, %arg10: memref<256x128xf32, #tpu.memory_space<vmem>>) attributes {dimension_semantics = [#tpu.dimension_semantics<parallel>], iteration_bounds = array<i64: 2>, scalar_prefetch = 0 : i64, scratch_operands = 0 : i64, tpu.core_type = #tpu.core_type<tc>, window_params = [{transform_indices = @transform_0, window_bounds = array<i64: 256, 128>}, {pipeline_mode = #tpu.pipeline_mode<synchronous>, transform_indices = @transform_1, window_bounds = array<i64: 128, 128>}, {pipeline_mode = #tpu.pipeline_mode<synchronous>, transform_indices = @transform_2, window_bounds = array<i64: 1, 128>}, {pipeline_mode = #tpu.pipeline_mode<synchronous>, transform_indices = @transform_3, window_bounds = array<i64: 1, 128>}, {pipeline_mode = #tpu.pipeline_mode<synchronous>, transform_indices = @transform_4, window_bounds = array<i64: 1, 128>}, {pipeline_mode = #tpu.pipeline_mode<synchronous>, transform_indices = @transform_5, window_bounds = array<i64: 128, 128>}, {pipeline_mode = #tpu.pipeline_mode<synchronous>, transform_indices = @transform_6, window_bounds = array<i64: 1, 128>}, {pipeline_mode = #tpu.pipeline_mode<synchronous>, transform_indices = @transform_7, window_bounds = array<i64: 1, 128>}, {pipeline_mode = #tpu.pipeline_mode<synchronous>, transform_indices = @transform_8, window_bounds = array<i64: 1, 128>}, {transform_indices = @transform_9, window_bounds = array<i64: 256, 128>}]} {
    %c0 = arith.constant 0 : index
    %c0_0 = arith.constant 0 : index
    %0 = vector.load %arg1[%c0, %c0_0] : memref<256x128xf32, #tpu.memory_space<vmem>>, vector<256x128xf32>
    %1 = arith.truncf %0 : vector<256x128xf32> to vector<256x128xbf16>
    %c0_1 = arith.constant 0 : index
    %c0_2 = arith.constant 0 : index
    %2 = vector.load %arg2[%c0_1, %c0_2] : memref<128x128xbf16, #tpu.memory_space<vmem>>, vector<128x128xbf16>
    %cst = arith.constant dense<0.000000e+00> : vector<256x128xf32>
    %3 = tpu.matmul %1, %2, %cst {dimension_numbers = #tpu.dot_dimension_numbers<[1], [0], [0], [1], [0, 0, 1, 1], [], []>} : vector<256x128xbf16>, vector<128x128xbf16>, vector<256x128xf32> -> vector<256x128xf32>
    %c0_3 = arith.constant 0 : index
    %c0_4 = arith.constant 0 : index
    %4 = vector.load %arg3[%c0_3, %c0_4] : memref<1x128xf32, #tpu.memory_space<vmem>>, vector<1x128xf32>
    %5 = vector.broadcast %4 : vector<1x128xf32> to vector<256x128xf32>
    %6 = arith.addf %3, %5 : vector<256x128xf32>
    %c0_5 = arith.constant 0 : index
    %c0_6 = arith.constant 0 : index
    %7 = vector.load %arg4[%c0_5, %c0_6] : memref<1x128xf32, #tpu.memory_space<vmem>>, vector<1x128xf32>
    %c0_7 = arith.constant 0 : index
    %c0_8 = arith.constant 0 : index
    %8 = vector.load %arg5[%c0_7, %c0_8] : memref<1x128xf32, #tpu.memory_space<vmem>>, vector<1x128xf32>
    %cst_9 = arith.constant dense<0.000000e+00> : vector<256xf32>
    %9 = vector.multi_reduction <add>, %6, %cst_9 [1] : vector<256x128xf32> to vector<256xf32>
    %10 = vector.shape_cast %9 : vector<256xf32> to vector<256x1xf32>
    %11 = arith.mulf %6, %6 : vector<256x128xf32>
    %cst_10 = arith.constant dense<0.000000e+00> : vector<256xf32>
    %12 = vector.multi_reduction <add>, %11, %cst_10 [1] : vector<256x128xf32> to vector<256xf32>
    %13 = vector.shape_cast %12 : vector<256xf32> to vector<256x1xf32>
    %cst_11 = arith.constant 7.812500e-03 : f32
    %14 = vector.broadcast %cst_11 : f32 to vector<256x1xf32>
    %15 = arith.mulf %10, %14 : vector<256x1xf32>
    %cst_12 = arith.constant 7.812500e-03 : f32
    %16 = vector.broadcast %cst_12 : f32 to vector<256x1xf32>
    %17 = arith.mulf %13, %16 : vector<256x1xf32>
    %18 = arith.mulf %15, %15 : vector<256x1xf32>
    %19 = arith.subf %17, %18 : vector<256x1xf32>
    %20 = vector.broadcast %15 : vector<256x1xf32> to vector<256x128xf32>
    %21 = arith.subf %6, %20 : vector<256x128xf32>
    %cst_13 = arith.constant 9.99999974E-6 : f32
    %22 = vector.broadcast %cst_13 : f32 to vector<256x1xf32>
    %23 = arith.addf %19, %22 : vector<256x1xf32>
    %24 = math.rsqrt %23 : vector<256x1xf32>
    %25 = vector.broadcast %24 : vector<256x1xf32> to vector<256x128xf32>
    %26 = arith.mulf %21, %25 : vector<256x128xf32>
    %27 = vector.broadcast %7 : vector<1x128xf32> to vector<256x128xf32>
    %28 = arith.mulf %26, %27 : vector<256x128xf32>
    %29 = vector.broadcast %8 : vector<1x128xf32> to vector<256x128xf32>
    %30 = arith.addf %28, %29 : vector<256x128xf32>
    %cst_14 = arith.constant 0.000000e+00 : f32
    %31 = vector.broadcast %cst_14 : f32 to vector<256x128xf32>
    %32 = arith.maximumf %30, %31 : vector<256x128xf32>
    %33 = arith.truncf %32 : vector<256x128xf32> to vector<256x128xbf16>
    %c0_15 = arith.constant 0 : index
    %c0_16 = arith.constant 0 : index
    %34 = vector.load %arg6[%c0_15, %c0_16] : memref<128x128xbf16, #tpu.memory_space<vmem>>, vector<128x128xbf16>
    %cst_17 = arith.constant dense<0.000000e+00> : vector<256x128xf32>
    %35 = tpu.matmul %33, %34, %cst_17 {dimension_numbers = #tpu.dot_dimension_numbers<[1], [0], [0], [1], [0, 0, 1, 1], [], []>} : vector<256x128xbf16>, vector<128x128xbf16>, vector<256x128xf32> -> vector<256x128xf32>
    %c0_18 = arith.constant 0 : index
    %c0_19 = arith.constant 0 : index
    %36 = vector.load %arg7[%c0_18, %c0_19] : memref<1x128xf32, #tpu.memory_space<vmem>>, vector<1x128xf32>
    %37 = vector.broadcast %36 : vector<1x128xf32> to vector<256x128xf32>
    %38 = arith.addf %35, %37 : vector<256x128xf32>
    %c0_20 = arith.constant 0 : index
    %c0_21 = arith.constant 0 : index
    %39 = vector.load %arg8[%c0_20, %c0_21] : memref<1x128xf32, #tpu.memory_space<vmem>>, vector<1x128xf32>
    %c0_22 = arith.constant 0 : index
    %c0_23 = arith.constant 0 : index
    %40 = vector.load %arg9[%c0_22, %c0_23] : memref<1x128xf32, #tpu.memory_space<vmem>>, vector<1x128xf32>
    %cst_24 = arith.constant dense<0.000000e+00> : vector<256xf32>
    %41 = vector.multi_reduction <add>, %38, %cst_24 [1] : vector<256x128xf32> to vector<256xf32>
    %42 = vector.shape_cast %41 : vector<256xf32> to vector<256x1xf32>
    %43 = arith.mulf %38, %38 : vector<256x128xf32>
    %cst_25 = arith.constant dense<0.000000e+00> : vector<256xf32>
    %44 = vector.multi_reduction <add>, %43, %cst_25 [1] : vector<256x128xf32> to vector<256xf32>
    %45 = vector.shape_cast %44 : vector<256xf32> to vector<256x1xf32>
    %cst_26 = arith.constant 7.812500e-03 : f32
    %46 = vector.broadcast %cst_26 : f32 to vector<256x1xf32>
    %47 = arith.mulf %42, %46 : vector<256x1xf32>
    %cst_27 = arith.constant 7.812500e-03 : f32
    %48 = vector.broadcast %cst_27 : f32 to vector<256x1xf32>
    %49 = arith.mulf %45, %48 : vector<256x1xf32>
    %50 = arith.mulf %47, %47 : vector<256x1xf32>
    %51 = arith.subf %49, %50 : vector<256x1xf32>
    %52 = vector.broadcast %47 : vector<256x1xf32> to vector<256x128xf32>
    %53 = arith.subf %38, %52 : vector<256x128xf32>
    %cst_28 = arith.constant 9.99999974E-6 : f32
    %54 = vector.broadcast %cst_28 : f32 to vector<256x1xf32>
    %55 = arith.addf %51, %54 : vector<256x1xf32>
    %56 = math.rsqrt %55 : vector<256x1xf32>
    %57 = vector.broadcast %56 : vector<256x1xf32> to vector<256x128xf32>
    %58 = arith.mulf %53, %57 : vector<256x128xf32>
    %59 = vector.broadcast %39 : vector<1x128xf32> to vector<256x128xf32>
    %60 = arith.mulf %58, %59 : vector<256x128xf32>
    %61 = vector.broadcast %40 : vector<1x128xf32> to vector<256x128xf32>
    %62 = arith.addf %60, %61 : vector<256x128xf32>
    %c0_29 = arith.constant 0 : index
    %c0_30 = arith.constant 0 : index
    %63 = vector.load %arg1[%c0_29, %c0_30] : memref<256x128xf32, #tpu.memory_space<vmem>>, vector<256x128xf32>
    %64 = arith.addf %63, %62 : vector<256x128xf32>
    %c0_31 = arith.constant 0 : index
    %c0_32 = arith.constant 0 : index
    %65 = vector.load %arg10[%c0_31, %c0_32] : memref<256x128xf32, #tpu.memory_space<vmem>>, vector<256x128xf32>
    tpu.vector_store %arg10[%c0_31, %c0_32], %64 {strides = array<i32>} : memref<256x128xf32, #tpu.memory_space<vmem>>, vector<256x128xf32>,
    return
  }
  func.func @transform_0(%arg0: i32) -> (i32, i32) {
    %c0_i32 = arith.constant 0 : i32
    %c0_i32_0 = arith.constant 0 : i32
    return %arg0, %c0_i32 : i32, i32
  }
  func.func @transform_1(%arg0: i32) -> (i32, i32) {
    %c0_i32 = arith.constant 0 : i32
    %c0_i32_0 = arith.constant 0 : i32
    %c0_i32_1 = arith.constant 0 : i32
    return %c0_i32, %c0_i32_0 : i32, i32
  }
  func.func @transform_2(%arg0: i32) -> (i32, i32) {
    %c0_i32 = arith.constant 0 : i32
    %c0_i32_0 = arith.constant 0 : i32
    %c0_i32_1 = arith.constant 0 : i32
    return %c0_i32, %c0_i32_0 : i32, i32
  }
  func.func @transform_3(%arg0: i32) -> (i32, i32) {
    %c0_i32 = arith.constant 0 : i32
    %c0_i32_0 = arith.constant 0 : i32
    %c0_i32_1 = arith.constant 0 : i32
    return %c0_i32, %c0_i32_0 : i32, i32
  }
  func.func @transform_4(%arg0: i32) -> (i32, i32) {
    %c0_i32 = arith.constant 0 : i32
    %c0_i32_0 = arith.constant 0 : i32
    %c0_i32_1 = arith.constant 0 : i32
    return %c0_i32, %c0_i32_0 : i32, i32
  }
  func.func @transform_5(%arg0: i32) -> (i32, i32) {
    %c0_i32 = arith.constant 0 : i32
    %c0_i32_0 = arith.constant 0 : i32
    %c0_i32_1 = arith.constant 0 : i32
    return %c0_i32, %c0_i32_0 : i32, i32
  }
  func.func @transform_6(%arg0: i32) -> (i32, i32) {
    %c0_i32 = arith.constant 0 : i32
    %c0_i32_0 = arith.constant 0 : i32
    %c0_i32_1 = arith.constant 0 : i32
    return %c0_i32, %c0_i32_0 : i32, i32
  }
  func.func @transform_7(%arg0: i32) -> (i32, i32) {
    %c0_i32 = arith.constant 0 : i32
    %c0_i32_0 = arith.constant 0 : i32
    %c0_i32_1 = arith.constant 0 : i32
    return %c0_i32, %c0_i32_0 : i32, i32
  }
  func.func @transform_8(%arg0: i32) -> (i32, i32) {
    %c0_i32 = arith.constant 0 : i32
    %c0_i32_0 = arith.constant 0 : i32
    %c0_i32_1 = arith.constant 0 : i32
    return %c0_i32, %c0_i32_0 : i32, i32
  }
  func.func @transform_9(%arg0: i32) -> (i32, i32) {
    %c0_i32 = arith.constant 0 : i32
    %c0_i32_0 = arith.constant 0 : i32
    return %arg0, %c0_i32 : i32, i32
  }
}

</mosaic_0001>

<bundles_post_ra>
// kernel: tpu_custom_call.1
= control target key start
LH: loop header
LB: loop body
LE: loop exit
PB: predicated region body
PF: predicated region fallthrough
CT: control target
= control target key end

     0   :  { %s4896_s0 = inlined_call_operand.hbm [shape: f32[512,128], index: 0, kind: input, shape index: {}]   ;;  %s4897_s1 = inlined_call_operand.hbm [shape: bf16[128,128], index: 1, kind: input, shape index: {}]   ;;  %s4898_s2 = inlined_call_operand.vmem [shape: f32[1,128], index: 2, kind: input, shape index: {}]   ;;  %s4899_s3 = inlined_call_operand.vmem [shape: f32[1,128], index: 3, kind: input, shape index: {}]   ;;  %s4900_s4 = inlined_call_operand.vmem [shape: f32[1,128], index: 4, kind: input, shape index: {}]   ;;  %s4901_s5 = inlined_call_operand.hbm [shape: bf16[128,128], index: 5, kind: input, shape index: {}]   ;;  %s4902_s6 = inlined_call_operand.vmem [shape: f32[1,128], index: 6, kind: input, shape index: {}]   ;;  %s4903_s7 = inlined_call_operand.vmem [shape: f32[1,128], index: 7, kind: input, shape index: {}]   ;;  %s4904_s8 = inlined_call_operand.vmem [shape: f32[1,128], index: 8, kind: input, shape index: {}]   ;;  %s4905_s9 = inlined_call_operand.hbm [shape: f32[512,128], index: 9, kind: output, shape index: {}]  }
   0x1   :  { %4907 = sst [smem:[#allocation14_spill]] %s4897_s1 }
   0x2   :  { %4908 = sst [smem:[#allocation15_spill]] %s4901_s5 }
   0x3   :  { %14 = vsyncpa [#allocation3], 0 }
   0x4   :  { %16 = vsyncpa [#allocation3 + $0x1], 0 }
   0x5   :  { %17 = vsyncpa [#allocation6], 0 }
   0x6   :  { %18 = vsyncpa [#allocation4], 0 }
   0x7   :  { %20 = vsyncpa [#allocation4 + $0x1], 0  ;;  %s3101_s30 = smov 0   ;;  %s3103_s10 = smov 0  }
   0x8   :  { %s3105_s11 = smov 0   ;;  %s3107_s12 = smov 0  }
   0x9 LB: > { %s3122_s13 = sadd.s32 4294967295, %s3041_s12   ;;  %s2522_s14 = sadd.s32 4294967294, %s3041_s12   ;;  %s3041_s12 = sphi %s3107_s12, %s4956_s12   ;;  %s3037_s11 = sphi %s3105_s11, %s4955_s11   ;;  %s3033_s10 = sphi %s3103_s10, %s4954_s10   ;;  %s3029_s30 = sphi %s3101_s30, %s4953_s30  }
   0xa   : > { %p46_p0 = scmp.ne.s32.totalorder %s3033_s10, %s3029_s30  ;;  %p47_p1 = scmp.eq.s32.totalorder %s3122_s13, 0 }
   0xb   : > { %p238_p2 = scmp.eq.s32.totalorder %s3122_s13, 1  ;;  %p244_p3 = scmp.eq.s32.totalorder %s2522_s14, 1 }
   0xc   : > { %p3131_p4 = por %p47_p1, %p46_p0  ;;  %p2523_p5 = scmp.ge.s32.totalorder %s3041_s12, 1 }
   0xd   : > { %p3136_p6 = por %p244_p3, %p46_p0  ;;  %p251_p7 = scmp.lt.s32.totalorder %s3041_s12, 3 }
   0xe   : > { %s4911_s1 = sld [smem:[#allocation14_spill]]  ;;  %s3043_s21 = smov [#allocation5]  }
   0xf   : > { %p3144_p8 = pnand %p2523_p5, %p251_p7  ;;  %s264_s22 = sshll.u32 %s3043_s21, 4  ;;  %s265_s22 = int_to_ptr.vmem [resolvable:$true] %s264_s22 }
  0x10   : > { %s4913_s5 = sld [smem:[#allocation15_spill]]  ;;  %s3044_s26 = smov 64  }
  0x11   : > { %p2650_p9 = pneg %p3144_p8  ;;  %s3045_s27 = smov 4  }
  0x12   : > { %s3046_s28 = smov [#allocation7]   ;;  %s3157_s14 = sadd.s32 1, %s3041_s12  }
  0x13   : > { %p2651_p10 = pnand %p2650_p9, %p47_p1  ;;  %s287_s29 = sshll.u32 %s3046_s28, 4  ;;  %s288_s29 = int_to_ptr.vmem [resolvable:$true] %s287_s29 }
  0x14   : > { %s262_s19 = sshll.u32 %s4911_s1, 4  ;;  %s33_s17 = sadd.s32 1, %s3037_s11  ;;  %s263_s19 = int_to_ptr.hbm [resolvable:$true] %s262_s19 }
  0x15   : > { %2653 = dma.hbm_to_vmem [thread:$0]  (!%p2651_p10), %s263_s19, 1024, %s265_s22, [#allocation6], %s3044_s26, %s3044_s26, %s3045_s27  }
  0x16   : > { %s285_s25 = sshll.u32 %s4913_s5, 4  ;;  %s30_s18 = ssub.s32 %s3041_s12, %s3157_s14  ;;  %s286_s25 = int_to_ptr.hbm [resolvable:$true] %s285_s25 }
  0x17   : > { %2656 = dma.hbm_to_vmem [thread:$0]  (!%p2651_p10), %s286_s25, 1024, %s288_s29, [#allocation6], %s3044_s26, %s3044_s26, %s3045_s27  }
  0x18   : > { %p40_p12 = scmp.ne.s32.totalorder %s3037_s11, %s3033_s10  ;;  %p31_p13 = scmp.eq.s32.totalorder %s30_s18, 0 }
  0x19   : > { %p41_p0 = scmp.eq.s32.totalorder %s3041_s12, 0  ;;  %p2667_p5 = scmp.lt.s32.totalorder %s3041_s12, 2 }
  0x1a   : > { %p3167_p3 = por %p238_p2, %p40_p12  ;;  %s310_s22 = sand.u32 1, %s3037_s11  }
  0x1b   : > { %s3173_s19 = scalar_select %p31_p13, %s3037_s11, %s33_s17  }
  0x1c   : > { %p42_p7 = por %p41_p0, %p40_p12  ;;  %s2527_s23 = sshll.u32 %s310_s22, 8 }
  0x1d   : > { %4915 = sst [smem:[#allocation12_spill]] %s3173_s19  ;;  %s2604_s24 = sshll.u32 %s3041_s12, 8 }
  0x1e   : > { %s319_s27 = scalar_lea.hbm %s4896_s0, %s2604_s24  ;;  %s314_s28 = scalar_lea.vmem [#allocation2], %s2527_s23 }
  0x1f   : > { %s322_s29 = sshll.u32 %s314_s28, 4  ;;  %s320_s18 = sshll.u32 %s319_s27, 4  ;;  %s323_s29 = int_to_ptr.vmem [resolvable:$true] %s322_s29  ;;  %s321_s18 = int_to_ptr.hbm [resolvable:$true] %s320_s18 }
  0x20   : > { %p3180_p2 = pnand %p2667_p5, %p42_p7  ;;  %s311_s17 = scalar_lea.sflag [#allocation3], %s310_s22 }
  0x21   : > { %s2941_s5 = sshra.s32 %s321_s18, 4  ;;  %s2948_s25 = scalar_lea.hbm %s4896_s0, 512  ;;  %s2942_s5 = int_to_ptr.hbm [resolvable:$true] %s2941_s5 }
  0x22   : > { %s2943_s19 = scalar_lea.hbm %s2942_s5, 256  ;;  %p2945_p10 = pneg %p3180_p2 }
  0x23   : > { %p2944_p9 = scmp.ne.s32.totalorder %s2942_s5, %s2943_s19  ;;  %p2949_p0 = scmp.lt.s32.totalorder %s2942_s5, %s4896_s0 }
  0x24   : > { %p2950_p5 = scmp.lt.s32.totalorder %s2948_s25, %s2943_s19 }
  0x25   : > { %p2946_p12 = pnand %p2945_p10, %p2944_p9 }
  0x26   : > { %p2951_p7 = por %p2950_p5, %p2949_p0 }
  0x27   : > { %p2947_p13 = pneg %p2946_p12 }
  0x29   : > { %p2952_p11 = pnand %p2951_p7, %p2947_p13 }
  0x2b   : > { %2955 = shalt.err (!%p2952_p11)
}
  0x2c   : > { %s3047_s22 = smov 128   ;;  %s3048_s28 = smov 8  }
  0x2d   : > { %2660 = dma.hbm_to_vmem [thread:$0]  (!%p3180_p2), %s321_s18, 4096, %s323_s29, %s311_s17, %s3047_s22, %s3047_s22, %s3048_s28  }
  0x2e   : > { %334 = sbr.rel (%p3144_p8) target bundleno = 847 (0x34f), region = 56 }
  0x33   : > { %s3197_s24 = sand.u32 1, %s3033_s10  }
  0x34   : > { %s2531_s5 = sshll.u32 %s3197_s24, 8  ;;  %s337_s19 = scalar_lea.sflag [#allocation3], %s3197_s24 }
  0x35   : > { %s3203_s23 = scalar_lea.vmem [#allocation2], %s2531_s5 }
  0x36   : > { %3016 = dma.done.wait (%p3131_p4), %s337_s19, 4096  }
  0x37   : > { %3018 = vsyncadd (%p3131_p4), %s337_s19, 4294963200 }
  0x38   : > { %3020 = dma.done.wait (%p47_p1), [#allocation6], 2048  }
  0x39   : > { %3022 = vsyncadd (%p47_p1), [#allocation6], 4294965248  ;;  %v2612_v0 = vld [vmem:[#allocation5 + $0x38] sm:$0xff]  ;;  %v2611_v1 = vld [vmem:[#allocation5 + $0x30] sm:$0xff]  ;;  %s4348_s18 = scalar_lea.vmem [#allocation8], %s2531_s5  ;;  %s2621_s27 = sshll.u32 %s3122_s13, 8 }
  0x3a   : > { %504 = vmatpush.bf16.msra.mxu0 %v2612_v0  ;;  %2622 = vmatpush.bf16.msra.mxu2 %v2612_v0  ;;  %v2610_v2 = vld [vmem:[#allocation5 + $0x28] sm:$0xff]  ;;  %v2609_v3 = vld [vmem:[#allocation5 + $0x20] sm:$0xff]  ;;  %v2608_v4 = vld [vmem:[#allocation5 + $0x18] sm:$0xff]  ;;  %s2426_s13 = scalar_lea.hbm %s4905_s9, %s2621_s27  ;;  %s2427_s19 = sshll.u32 %s4348_s18, 4  ;;  %s2428_s19 = int_to_ptr.vmem [resolvable:$true] %s2427_s19 }
  0x3b   : > { %v2607_v5 = vld [vmem:[#allocation5 + $0x10] sm:$0xff]  ;;  %v2606_v6 = vld [vmem:[#allocation5 + $0x8] sm:$0xff]  ;;  %v2605_v7 = vld [vmem:[#allocation5] sm:$0xff]  ;;  %s2429_s1 = sshll.u32 %s2426_s13, 4  ;;  %s2415_s15 = scalar_lea.sflag [#allocation4], %s3197_s24  ;;  %s2430_s1 = int_to_ptr.hbm [resolvable:$true] %s2429_s1 }
  0x3c   : > { %v388_v8 = vld [vmem:[%s3203_s23] sm:$0xff]  ;;  %v389_v9 = vld [vmem:[%s3203_s23 + $0x8] sm:$0xff]  ;;  %v390_v14 = vld [vmem:[%s3203_s23 + $0x10] sm:$0xff]  ;;  %s2985_s20 = sshra.s32 %s2430_s1, 4  ;;  %s2991_s25 = scalar_lea.hbm %s4905_s9, 512  ;;  %s2986_s20 = int_to_ptr.hbm [resolvable:$true] %s2985_s20 }
  0x3d   : > { %v404_v10 = vld [vmem:[%s3203_s23 + $0x80] sm:$0xff]  ;;  %v405_v11 = vld [vmem:[%s3203_s23 + $0x88] sm:$0xff]  ;;  %v420_v12 = vpack.c.bf16 %v389_v9, %v388_v8  ;;  %v391_v15 = vld [vmem:[%s3203_s23 + $0x18] sm:$0xff]  ;;  %s2987_s29 = scalar_lea.hbm %s2986_s20, 256  ;;  %p2992_p11 = scmp.lt.s32.totalorder %s2986_s20, %s4905_s9 }
  0x3e   : > { %505 = vmatpush.bf16.msra.mxu0 %v2611_v1  ;;  %2623 = vmatpush.bf16.msra.mxu2 %v2611_v1  ;;  %v428_v13 = vpack.c.bf16 %v405_v11, %v404_v10  ;;  %v406_v16 = vld [vmem:[%s3203_s23 + $0x90] sm:$0xff]  ;;  %v407_v17 = vld [vmem:[%s3203_s23 + $0x98] sm:$0xff]  ;;  %v421_v18 = vpack.c.bf16 %v391_v15, %v390_v14  ;;  %v392_v20 = vld [vmem:[%s3203_s23 + $0x20] sm:$0xff]  ;;  %p2988_p1 = scmp.ne.s32.totalorder %s2986_s20, %s2987_s29  ;;  %p2993_p2 = scmp.lt.s32.totalorder %s2991_s25, %s2987_s29 }
  0x3f   : > { %v429_v19 = vpack.c.bf16 %v407_v17, %v406_v16  ;;  %v393_v21 = vld [vmem:[%s3203_s23 + $0x28] sm:$0xff]  ;;  %v408_v22 = vld [vmem:[%s3203_s23 + $0xa0] sm:$0xff]  ;;  %v410_v26 = vld [vmem:[%s3203_s23 + $0xb0] sm:$0xff] }
  0x40   : > { %v409_v23 = vld [vmem:[%s3203_s23 + $0xa8] sm:$0xff]  ;;  %v422_v24 = vpack.c.bf16 %v393_v21, %v392_v20  ;;  %v411_v27 = vld [vmem:[%s3203_s23 + $0xb8] sm:$0xff]  ;;  %v394_v28 = vld [vmem:[%s3203_s23 + $0x30] sm:$0xff]  ;;  %p2989_p4 = pnand %p2988_p1, %p3167_p3  ;;  %p2994_p9 = por %p2993_p2, %p2992_p11 }
  0x41   : > { %v430_v25 = vpack.c.bf16 %v409_v23, %v408_v22  ;;  %v395_v29 = vld [vmem:[%s3203_s23 + $0x38] sm:$0xff]  ;;  %v431_v30 = vpack.c.bf16 %v411_v27, %v410_v26  ;;  %v396_v32 = vld [vmem:[%s3203_s23 + $0x40] sm:$0xff]  ;;  %v397_v33 = vld [vmem:[%s3203_s23 + $0x48] sm:$0xff] }
  0x42   : > { %506 = vmatpush.bf16.msra.mxu0 %v2610_v2  ;;  %2624 = vmatpush.bf16.msra.mxu2 %v2610_v2  ;;  %v423_v31 = vpack.c.bf16 %v395_v29, %v394_v28  ;;  %v412_v34 = vld [vmem:[%s3203_s23 + $0xc0] sm:$0xff]  ;;  %v413_v35 = vld [vmem:[%s3203_s23 + $0xc8] sm:$0xff]  ;;  %v424_v36 = vpack.c.bf16 %v397_v33, %v396_v32  ;;  %v398_v38 = vld [vmem:[%s3203_s23 + $0x50] sm:$0xff]  ;;  %p2990_p8 = pneg %p2989_p4 }
  0x43   : > { %v432_v37 = vpack.c.bf16 %v413_v35, %v412_v34  ;;  %v399_v39 = vld [vmem:[%s3203_s23 + $0x58] sm:$0xff]  ;;  %v414_v40 = vld [vmem:[%s3203_s23 + $0xd0] sm:$0xff]  ;;  %v416_v44 = vld [vmem:[%s3203_s23 + $0xe0] sm:$0xff] }
  0x44   : > { %v415_v41 = vld [vmem:[%s3203_s23 + $0xd8] sm:$0xff]  ;;  %v425_v42 = vpack.c.bf16 %v399_v39, %v398_v38  ;;  %v417_v45 = vld [vmem:[%s3203_s23 + $0xe8] sm:$0xff]  ;;  %v400_v46 = vld [vmem:[%s3203_s23 + $0x60] sm:$0xff]  ;;  %p2995_p10 = pnand %p2994_p9, %p2990_p8 }
  0x45   : > { %v433_v43 = vpack.c.bf16 %v415_v41, %v414_v40  ;;  %v401_v47 = vld [vmem:[%s3203_s23 + $0x68] sm:$0xff]  ;;  %v434_v48 = vpack.c.bf16 %v417_v45, %v416_v44  ;;  %v418_v50 = vld [vmem:[%s3203_s23 + $0xf0] sm:$0xff]  ;;  %v419_v51 = vld [vmem:[%s3203_s23 + $0xf8] sm:$0xff] }
  0x46   : > { %507 = vmatpush.bf16.msra.mxu0 %v2609_v3  ;;  %2625 = vmatpush.bf16.msra.mxu2 %v2609_v3  ;;  %v426_v49 = vpack.c.bf16 %v401_v47, %v400_v46  ;;  %v435_v52 = vpack.c.bf16 %v419_v51, %v418_v50  ;;  %v402_v53 = vld [vmem:[%s3203_s23 + $0x70] sm:$0xff]  ;;  %v403_v54 = vld [vmem:[%s3203_s23 + $0x78] sm:$0xff]  ;;  %v3248_v56 = vld [vmem:[%s4898_s2] ss:$0 sm:$0xff] }
  0x47   : > { %v427_v55 = vpack.c.bf16 %v403_v54, %v402_v53 }
  0x4a   : > { %508 = vmatpush.bf16.msra.mxu0 %v2608_v4  ;;  %2626 = vmatpush.bf16.msra.mxu2 %v2608_v4 }
  0x4e   : > { %509 = vmatpush.bf16.msra.mxu0 %v2607_v5  ;;  %2627 = vmatpush.bf16.msra.mxu2 %v2607_v5 }
  0x52   : > { %510 = vmatpush.bf16.msra.mxu0 %v2606_v6  ;;  %2628 = vmatpush.bf16.msra.mxu2 %v2606_v6 }
  0x56   : > { %511 = vmatpush.bf16.msra.mxu0 %v2605_v7  ;;  %2629 = vmatpush.bf16.msra.mxu2 %v2605_v7 }
  0x59   : > { %512 = vmatmul.bf16.vlgmr.msra.gmra.mxu0 %v420_v12  ;;  %552 = vmatmul.bf16.vlgmr.msra.gmra.mxu2 %v428_v13 }
  0x69   : > { %517 = vmatmul.bf16.gmra.mxu0 %v421_v18  ;;  %557 = vmatmul.bf16.gmra.mxu2 %v429_v19 }
  0x79   : > { %522 = vmatmul.bf16.gmra.mxu0 %v422_v24  ;;  %562 = vmatmul.bf16.gmra.mxu2 %v430_v25 }
  0x89   : > { %567 = vmatmul.bf16.gmra.mxu2 %v431_v30  ;;  %527 = vmatmul.bf16.gmra.mxu0 %v423_v31 }
  0x99   : > { %532 = vmatmul.bf16.gmra.mxu0 %v424_v36  ;;  %572 = vmatmul.bf16.gmra.mxu2 %v432_v37 }
  0xa9   : > { %537 = vmatmul.bf16.gmra.mxu0 %v425_v42  ;;  %577 = vmatmul.bf16.gmra.mxu2 %v433_v43 }
  0xb9   : > { %582 = vmatmul.bf16.gmra.mxu2 %v434_v48  ;;  %542 = vmatmul.bf16.gmra.mxu0 %v426_v49 }
  0xc9   : > { %587 = vmatmul.bf16.gmra.mxu2 %v435_v52  ;;  %547 = vmatmul.bf16.gmra.mxu0 %v427_v55 }
  0xd6   : > { %v513_v57 = vpop.f32.mrf.mxu0 }
  0xd7   : > { %v3251_v58 = vadd.f32 %v3248_v56, %v513_v57  ;;  %v2620_v57 = vld [vmem:[#allocation7 + $0x38] sm:$0xff] }
  0xd8   : > { %1485 = vmatpush.bf16.msra.mxu1 %v2620_v57  ;;  %2630 = vmatpush.bf16.msra.mxu3 %v2620_v57 }
  0xd9   : > { %595 = vadd.xlane.f32.xlu2 %v3251_v58  ;;  %v659_v59 = vmul.f32 %v3251_v58, %v3251_v58 }
  0xdb   : > { %691 = vadd.xlane.f32.xlu0 %v659_v59 }
  0xdc   : > { %v553_v60 = vpop.f32.mrf.mxu2 }
  0xdd   : > { %v3257_v61 = vadd.f32 %v3248_v56, %v553_v60 }
  0xde   : > { %v515_v62 = vpop.f32.mrf.mxu0 }
  0xdf   : > { %v3260_v63 = vadd.f32 %v3248_v56, %v515_v62  ;;  %v675_v0 = vmul.f32 %v3257_v61, %v3257_v61 }
  0xe1   : > { %723 = vadd.xlane.f32.xlu1 %v675_v0  ;;  %597 = vadd.xlane.f32.xlu2 %v3260_v63  ;;  %v660_v4 = vmul.f32 %v3260_v63, %v3260_v63  ;;  %v2619_v0 = vld [vmem:[#allocation7 + $0x30] sm:$0xff] }
  0xe2   : > { %1486 = vmatpush.bf16.msra.mxu1 %v2619_v0  ;;  %2631 = vmatpush.bf16.msra.mxu3 %v2619_v0 }
  0xe3   : > { %627 = vadd.xlane.f32.xlu0 %v3257_v61 }
  0xe4   : > { %v555_v1 = vpop.f32.mrf.mxu2 }
  0xe5   : > { %v3272_v5 = vadd.f32 %v3248_v56, %v555_v1 }
  0xe6   : > { %v518_v2 = vpop.f32.mrf.mxu0 }
  0xe7   : > { %v3267_v3 = vadd.f32 %v3248_v56, %v518_v2  ;;  %v676_v9 = vmul.f32 %v3272_v5, %v3272_v5 }
  0xe9   : > { %693 = vadd.xlane.f32.xlu1 %v660_v4  ;;  %v661_v6 = vmul.f32 %v3267_v3, %v3267_v3 }
  0xeb   : > { %695 = vadd.xlane.f32.xlu2 %v661_v6  ;;  %629 = vadd.xlane.f32.xlu0 %v3272_v5  ;;  %v2618_v6 = vld [vmem:[#allocation7 + $0x28] sm:$0xff] }
  0xec   : > { %v558_v7 = vpop.f32.mrf.mxu2  ;;  %1487 = vmatpush.bf16.msra.mxu1 %v2618_v6  ;;  %2632 = vmatpush.bf16.msra.mxu3 %v2618_v6 }
  0xed   : > { %v3278_v8 = vadd.f32 %v3248_v56, %v558_v7 }
  0xee   : > { %v520_v10 = vpop.f32.mrf.mxu0 }
  0xef   : > { %v3285_v12 = vadd.f32 %v3248_v56, %v520_v10  ;;  %v677_v14 = vmul.f32 %v3278_v8, %v3278_v8  ;;  %v2617_v10 = vld [vmem:[#allocation7 + $0x20] sm:$0xff] }
  0xf0   : > { %1488 = vmatpush.bf16.msra.mxu1 %v2617_v10  ;;  %2633 = vmatpush.bf16.msra.mxu3 %v2617_v10 }
  0xf1   : > { %725 = vadd.xlane.f32.xlu1 %v676_v9  ;;  %v662_v17 = vmul.f32 %v3285_v12, %v3285_v12 }
  0xf3   : > { %631 = vadd.xlane.f32.xlu2 %v3278_v8  ;;  %599 = vadd.xlane.f32.xlu0 %v3267_v3 }
  0xf4   : > { %v560_v11 = vpop.f32.mrf.mxu2 }
  0xf5   : > { %v3288_v13 = vadd.f32 %v3248_v56, %v560_v11 }
  0xf6   : > { %v523_v15 = vpop.f32.mrf.mxu0 }
  0xf7   : > { %v678_v16 = vmul.f32 %v3288_v13, %v3288_v13  ;;  %v3297_v19 = vadd.f32 %v3248_v56, %v523_v15 }
  0xf9   : > { %727 = vadd.xlane.f32.xlu1 %v677_v14  ;;  %v663_v23 = vmul.f32 %v3297_v19, %v3297_v19 }
  0xfb   : > { %729 = vadd.xlane.f32.xlu2 %v678_v16  ;;  %697 = vadd.xlane.f32.xlu0 %v662_v17 }
  0xfc   : > { %v563_v18 = vpop.f32.mrf.mxu2 }
  0xfd   : > { %v3303_v21 = vadd.f32 %v3248_v56, %v563_v18  ;;  %v2616_v18 = vld [vmem:[#allocation7 + $0x18] sm:$0xff] }
  0xfe   : > { %v525_v20 = vpop.f32.mrf.mxu0  ;;  %1489 = vmatpush.bf16.msra.mxu1 %v2616_v18  ;;  %2634 = vmatpush.bf16.msra.mxu3 %v2616_v18 }
  0xff   : > { %v3306_v22 = vadd.f32 %v3248_v56, %v525_v20  ;;  %v679_v24 = vmul.f32 %v3303_v21, %v3303_v21 }
 0x101   : > { %601 = vadd.xlane.f32.xlu1 %v3285_v12  ;;  %v664_v26 = vmul.f32 %v3306_v22, %v3306_v22 }
 0x103   : > { %603 = vadd.xlane.f32.xlu2 %v3297_v19  ;;  %633 = vadd.xlane.f32.xlu0 %v3288_v13 }
 0x104   : > { %v565_v25 = vpop.f32.mrf.mxu2 }
 0x105   : > { %v3315_v29 = vadd.f32 %v3248_v56, %v565_v25 }
 0x106   : > { %v528_v27 = vpop.f32.mrf.mxu0 }
 0x107   : > { %v3321_v30 = vadd.f32 %v3248_v56, %v528_v27  ;;  %v680_v32 = vmul.f32 %v3315_v29, %v3315_v29 }
 0x109   : > { %699 = vadd.xlane.f32.xlu1 %v663_v23  ;;  %v665_v34 = vmul.f32 %v3321_v30, %v3321_v30 }
 0x10b   : > { %701 = vadd.xlane.f32.xlu2 %v664_v26  ;;  %731 = vadd.xlane.f32.xlu0 %v679_v24 }
 0x10c   : > { %v568_v28 = vpop.f32.mrf.mxu2 }
 0x10d   : > { %v3324_v31 = vadd.f32 %v3248_v56, %v568_v28 }
 0x10e   : > { %v530_v35 = vpop.f32.mrf.mxu0 }
 0x10f   : > { %v681_v33 = vmul.f32 %v3324_v31, %v3324_v31  ;;  %v3333_v38 = vadd.f32 %v3248_v56, %v530_v35 }
 0x111   : > { %635 = vadd.xlane.f32.xlu1 %v3303_v21  ;;  %v666_v42 = vmul.f32 %v3333_v38, %v3333_v38 }
 0x113   : > { %637 = vadd.xlane.f32.xlu2 %v3315_v29  ;;  %605 = vadd.xlane.f32.xlu0 %v3306_v22 }
 0x114   : > { %v570_v36 = vpop.f32.mrf.mxu2 }
 0x115   : > { %v3342_v40 = vadd.f32 %v3248_v56, %v570_v36 }
 0x116   : > { %v533_v37 = vpop.f32.mrf.mxu0 }
 0x117   : > { %v3339_v39 = vadd.f32 %v3248_v56, %v533_v37  ;;  %v682_v44 = vmul.f32 %v3342_v40, %v3342_v40 }
 0x119   : > { %733 = vadd.xlane.f32.xlu1 %v680_v32  ;;  %v667_v43 = vmul.f32 %v3339_v39, %v3339_v39  ;;  %v2615_v32 = vld [vmem:[#allocation7 + $0x10] sm:$0xff] }
 0x11a   : > { %1490 = vmatpush.bf16.msra.mxu1 %v2615_v32  ;;  %2635 = vmatpush.bf16.msra.mxu3 %v2615_v32 }
 0x11b   : > { %735 = vadd.xlane.f32.xlu2 %v681_v33  ;;  %703 = vadd.xlane.f32.xlu0 %v665_v34 }
 0x11c   : > { %v573_v41 = vpop.f32.mrf.mxu2 }
 0x11d   : > { %v3351_v45 = vadd.f32 %v3248_v56, %v573_v41 }
 0x11e   : > { %v535_v47 = vpop.f32.mrf.mxu0 }
 0x11f   : > { %v3357_v48 = vadd.f32 %v3248_v56, %v535_v47  ;;  %v683_v50 = vmul.f32 %v3351_v45, %v3351_v45 }
 0x121   : > { %607 = vadd.xlane.f32.xlu1 %v3321_v30  ;;  %v668_v54 = vmul.f32 %v3357_v48, %v3357_v48 }
 0x123   : > { %609 = vadd.xlane.f32.xlu2 %v3333_v38  ;;  %639 = vadd.xlane.f32.xlu0 %v3324_v31 }
 0x124   : > { %v575_v46 = vpop.f32.mrf.mxu2 }
 0x125   : > { %v3360_v49 = vadd.f32 %v3248_v56, %v575_v46 }
 0x126   : > { %v538_v52 = vpop.f32.mrf.mxu0 }
 0x127   : > { %v684_v53 = vmul.f32 %v3360_v49, %v3360_v49  ;;  %v3369_v55 = vadd.f32 %v3248_v56, %v538_v52 }
 0x129   : > { %705 = vadd.xlane.f32.xlu1 %v666_v42  ;;  %v669_v2 = vmul.f32 %v3369_v55, %v3369_v55 }
 0x12b   : > { %707 = vadd.xlane.f32.xlu2 %v667_v43  ;;  %737 = vadd.xlane.f32.xlu0 %v682_v44  ;;  %v2614_v43 = vld [vmem:[#allocation7 + $0x8] sm:$0xff] }
 0x12c   : > { %v578_v51 = vpop.f32.mrf.mxu2  ;;  %1491 = vmatpush.bf16.msra.mxu1 %v2614_v43  ;;  %2636 = vmatpush.bf16.msra.mxu3 %v2614_v43 }
 0x12d   : > { %v3375_v62 = vadd.f32 %v3248_v56, %v578_v51 }
 0x12e   : > { %v540_v60 = vpop.f32.mrf.mxu0 }
 0x12f   : > { %v3378_v1 = vadd.f32 %v3248_v56, %v540_v60  ;;  %v685_v4 = vmul.f32 %v3375_v62, %v3375_v62 }
 0x131   : > { %641 = vadd.xlane.f32.xlu1 %v3342_v40  ;;  %v670_v7 = vmul.f32 %v3378_v1, %v3378_v1 }
 0x133   : > { %643 = vadd.xlane.f32.xlu2 %v3351_v45  ;;  %611 = vadd.xlane.f32.xlu0 %v3339_v39 }
 0x134   : > { %v580_v59 = vpop.f32.mrf.mxu2 }
 0x135   : > { %v3391_v20 = vadd.f32 %v3248_v56, %v580_v59 }
 0x136   : > { %v543_v24 = vpop.f32.mrf.mxu0 }
 0x137   : > { %v3399_v26 = vadd.f32 %v3248_v56, %v543_v24  ;;  %v686_v37 = vmul.f32 %v3391_v20, %v3391_v20 }
 0x139   : > { %739 = vadd.xlane.f32.xlu1 %v683_v50  ;;  %v671_v42 = vmul.f32 %v3399_v26, %v3399_v26 }
 0x13b   : > { %741 = vadd.xlane.f32.xlu2 %v684_v53  ;;  %709 = vadd.xlane.f32.xlu0 %v668_v54  ;;  %v2613_v54 = vld [vmem:[#allocation7] sm:$0xff] }
 0x13c   : > { %v583_v9 = vpop.f32.mrf.mxu2  ;;  %1492 = vmatpush.bf16.msra.mxu1 %v2613_v54  ;;  %2637 = vmatpush.bf16.msra.mxu3 %v2613_v54 }
 0x13d   : > { %v3402_v27 = vadd.f32 %v3248_v56, %v583_v9 }
 0x13e   : > { %v545_v60 = vpop.f32.mrf.mxu0 }
 0x13f   : > { %v687_v41 = vmul.f32 %v3402_v27, %v3402_v27 }
 0x141   : > { %613 = vadd.xlane.f32.xlu1 %v3357_v48 }
 0x143   : > { %615 = vadd.xlane.f32.xlu2 %v3369_v55  ;;  %645 = vadd.xlane.f32.xlu0 %v3360_v49 }
 0x144   : > { %v585_v28 = vpop.f32.mrf.mxu2 }
 0x145   : > { %v3441_v24 = vadd.f32 %v3248_v56, %v585_v28 }
 0x149   : > { %711 = vadd.xlane.f32.xlu1 %v669_v2 }
 0x14b   : > { %713 = vadd.xlane.f32.xlu2 %v670_v7  ;;  %743 = vadd.xlane.f32.xlu0 %v685_v4 }
 0x14c   : > { %v596_v11 = vpop.xlane.xlu2 %595  ;;  %v588_v2 = vpop.f32.mrf.mxu2 }
 0x14d   : > { %v3386_v14 = vmul.f32 0.0078125, %v596_v11  ;;  %v3428_v11 = vadd.f32 %v3248_v56, %v545_v60  ;;  %v3451_v28 = vadd.f32 %v3248_v56, %v588_v2 }
 0x14e   : > { %v692_v15 = vpop.xlane.xlu0 %691 }
 0x14f   : > { %v819_v16 = vmul.f32 %v3386_v14, %v3386_v14  ;;  %v787_v17 = vmul.f32 0.0078125, %v692_v15 }
 0x151   : > { %v851_v23 = vsub.f32 %v787_v17, %v819_v16  ;;  %647 = vadd.xlane.f32.xlu1 %v3375_v62 }
 0x153   : > { %v3394_v25 = vadd.f32 1e-05, %v851_v23  ;;  %649 = vadd.xlane.f32.xlu2 %v3391_v20  ;;  %617 = vadd.xlane.f32.xlu0 %v3378_v1 }
 0x154   : > { %v724_v33 = vpop.xlane.xlu1 %723  ;;  %v598_v34 = vpop.xlane.xlu2 %597 }
 0x155   : > { %2717 = vrsqrt.f32 %v3394_v25  ;;  %v803_v44 = vmul.f32 0.0078125, %v724_v33  ;;  %v3413_v46 = vmul.f32 0.0078125, %v598_v34  ;;  %v548_v34 = vpop.f32.mrf.mxu0  ;;  %vm953_vm0 = vweird.f32 %v3394_v25 }
 0x156   : > { %v628_v35 = vpop.xlane.xlu0 %627 }
 0x157   : > { %v3405_v36 = vmul.f32 0.0078125, %v628_v35  ;;  %v820_v57 = vmul.f32 %v3413_v46, %v3413_v46 }
 0x159   : > { %v835_v47 = vmul.f32 %v3405_v36, %v3405_v36  ;;  %745 = vadd.xlane.f32.xlu1 %v686_v37 }
 0x15b   : > { %v3417_v50 = vpop.eup %2717  ;;  %v867_v51 = vsub.f32 %v803_v44, %v835_v47  ;;  %747 = vadd.xlane.f32.xlu2 %v687_v41  ;;  %715 = vadd.xlane.f32.xlu0 %v671_v42 }
 0x15c   : > { %v948_v52 = vmul.f32 %v3417_v50, %v3394_v25  ;;  %v694_v53 = vpop.xlane.xlu1 %693  ;;  %vm954_vm1 = vweird.f32 %v3417_v50 }
 0x15d   : > { %v3423_v59 = vadd.f32 1e-05, %v867_v51  ;;  %v788_v0 = vmul.f32 0.0078125, %v694_v53  ;;  %v590_v51 = vpop.f32.mrf.mxu2  ;;  %vm3456_vm2 = vmor %vm953_vm0, %vm954_vm1  ;;  %v550_v25 = vpop.f32.mrf.mxu0 }
 0x15e   : > { %v949_v4 = vmul.f32 %v3417_v50, %v948_v52  ;;  %v696_v6 = vpop.xlane.xlu2 %695  ;;  %v630_v7 = vpop.xlane.xlu0 %629 }
 0x15f   : > { %2719 = vrsqrt.f32 %v3423_v59  ;;  %v852_v9 = vsub.f32 %v788_v0, %v820_v57  ;;  %v3432_v16 = vmul.f32 0.0078125, %v630_v7  ;;  %v789_v43 = vmul.f32 0.0078125, %v696_v6 }
 0x160   : > { %v950_v10 = vmul.f32 0.5, %v949_v4  ;;  %v688_v0 = vmul.f32 %v3441_v24, %v3441_v24  ;;  %v3471_v4 = vadd.f32 %v3248_v56, %v590_v51  ;;  %v3492_v51 = vld [vmem:[%s4899_s3] ss:$0 sm:$0xff]  ;;  %vm1113_vm7 = vweird.f32 %v3423_v59 }
 0x161   : > { %v3430_v15 = vadd.f32 1e-05, %v852_v9  ;;  %619 = vadd.xlane.f32.xlu1 %v3399_v26  ;;  %v836_v32 = vmul.f32 %v3432_v16, %v3432_v16 }
 0x162   : > { %v951_v17 = vsub.f32 1.5, %v950_v10 }
 0x163   : > { %2721 = vrsqrt.f32 %v3430_v15  ;;  %621 = vadd.xlane.f32.xlu2 %v3428_v11  ;;  %651 = vadd.xlane.f32.xlu0 %v3402_v27  ;;  %vm963_vm4 = vweird.f32 %v3430_v15 }
 0x164   : > { %v726_v18 = vpop.xlane.xlu1 %725  ;;  %v952_v35 = vmul.f32 %v3417_v50, %v951_v17  ;;  %v883_v17 = vsub.f32 %v3251_v58, %v3386_v14 }
 0x165   : > { %v3438_v23 = vpop.eup %2719  ;;  %v804_v33 = vmul.f32 0.0078125, %v726_v18 }
 0x166   : > { %v1108_v37 = vmul.f32 %v3438_v23, %v3423_v59  ;;  %v632_v41 = vpop.xlane.xlu2 %631  ;;  %v600_v42 = vpop.xlane.xlu0 %599  ;;  %v956_v6 = vsel %vm3456_vm2, %v3417_v50, %v952_v35  ;;  %v3485_v50 = vadd.f32 %v3248_v56, %v548_v34  ;;  %vm1114_vm5 = vweird.f32 %v3438_v23 }
 0x167   : > { %v868_v44 = vsub.f32 %v804_v33, %v836_v32  ;;  %v3453_v47 = vmul.f32 0.0078125, %v600_v42  ;;  %v3462_v57 = vmul.f32 0.0078125, %v632_v41  ;;  %vm3533_vm8 = vmor %vm1113_vm7, %vm1114_vm5 }
 0x168   : > { %v1109_v52 = vmul.f32 %v3438_v23, %v1108_v37  ;;  %4919 = vst [vmem:[#allocation13_spill] sm:$0xff] %v3485_v50 }
 0x169   : > { %v2722_v53 = vpop.eup %2721  ;;  %v3460_v54 = vadd.f32 1e-05, %v868_v44  ;;  %v821_v60 = vmul.f32 %v3453_v47, %v3453_v47  ;;  %653 = vadd.xlane.f32.xlu1 %v3441_v24  ;;  %v837_v9 = vmul.f32 %v3462_v57, %v3462_v57  ;;  %v1267_v44 = vmul.f32 %v956_v6, %v883_v17 }
 0x16a   : > { %v958_v2 = vmul.f32 %v2722_v53, %v3430_v15  ;;  %v1110_v7 = vmul.f32 0.5, %v1109_v52  ;;  %v690_v52 = vmul.f32 %v3471_v4, %v3471_v4  ;;  %vm964_vm3 = vweird.f32 %v2722_v53 }
 0x16b   : > { %2723 = vrsqrt.f32 %v3460_v54  ;;  %v853_v10 = vsub.f32 %v789_v43, %v821_v60  ;;  %655 = vadd.xlane.f32.xlu2 %v3451_v28  ;;  %749 = vadd.xlane.f32.xlu0 %v688_v0  ;;  %v672_v43 = vmul.f32 %v3428_v11, %v3428_v11  ;;  %v884_v0 = vsub.f32 %v3260_v63, %v3413_v46  ;;  %vm965_vm6 = vmor %vm963_vm4, %vm964_vm3 }
 0x16c   : > { %v959_v18 = vmul.f32 %v2722_v53, %v958_v2  ;;  %v728_v32 = vpop.xlane.xlu1 %727  ;;  %v1111_v58 = vsub.f32 1.5, %v1110_v7  ;;  %v3517_v63 = vadd.f32 %v3248_v56, %v550_v25  ;;  %v899_v46 = vsub.f32 %v3257_v61, %v3405_v36 }
 0x16d   : > { %v3482_v33 = vadd.f32 1e-05, %v853_v10  ;;  %v805_v37 = vmul.f32 0.0078125, %v728_v32  ;;  %v3510_v10 = vld [vmem:[%s4900_s4] ss:$0 sm:$0xff]  ;;  %v689_v32 = vmul.f32 %v3451_v28, %v3451_v28  ;;  %v673_v56 = vmul.f32 %v3485_v50, %v3485_v50 }
 0x16e   : > { %v960_v41 = vmul.f32 0.5, %v959_v18  ;;  %v730_v35 = vpop.xlane.xlu2 %729  ;;  %v698_v42 = vpop.xlane.xlu0 %697  ;;  %v1112_v17 = vmul.f32 %v3438_v23, %v1111_v58  ;;  %vm1123_vm9 = vweird.f32 %v3460_v54 }
 0x16f   : > { %2725 = vrsqrt.f32 %v3482_v33  ;;  %v869_v14 = vsub.f32 %v805_v37, %v837_v9  ;;  %v1302_v9 = vmul.f32 %v3492_v51, %v1267_v44  ;;  %vm973_vm13 = vweird.f32 %v3482_v33 }
 0x170   : > { %v961_v34 = vsub.f32 1.5, %v960_v41 }
 0x171   : > { %v3497_v60 = vpop.eup %2723  ;;  %v3501_v2 = vadd.f32 1e-05, %v869_v14  ;;  %717 = vadd.xlane.f32.xlu1 %v672_v43  ;;  %v1337_v14 = vadd.f32 %v3510_v10, %v1302_v9  ;;  %v806_v9 = vmul.f32 0.0078125, %v730_v35 }
 0x172   : > { %v962_v6 = vmul.f32 %v2722_v53, %v961_v34  ;;  %v1118_v7 = vmul.f32 %v3497_v60, %v3460_v54  ;;  %v790_v34 = vmul.f32 0.0078125, %v698_v42  ;;  %vm1124_vm10 = vweird.f32 %v3497_v60 }
 0x173   : > { %2727 = vrsqrt.f32 %v3501_v2  ;;  %753 = vadd.xlane.f32.xlu2 %v690_v52  ;;  %623 = vadd.xlane.f32.xlu0 %v3485_v50  ;;  %v1116_v52 = vsel %vm3533_vm8, %v3438_v23, %v1112_v17  ;;  %vm3562_vm11 = vmor %vm1123_vm9, %vm1124_vm10  ;;  %vm1133_vm0 = vweird.f32 %v3501_v2 }
 0x174   : > { %v1119_v15 = vmul.f32 %v3497_v60, %v1118_v7  ;;  %v602_v18 = vpop.xlane.xlu1 %601  ;;  %v966_v37 = vsel %vm965_vm6, %v2722_v53, %v962_v6  ;;  %v1283_v42 = vmul.f32 %v1116_v52, %v899_v46 }
 0x175   : > { %v3524_v41 = vpop.eup %2725  ;;  %v3527_v43 = vmul.f32 0.0078125, %v602_v18  ;;  %v1268_v44 = vmul.f32 %v966_v37, %v884_v0 }
 0x176   : > { %v1120_v36 = vmul.f32 0.5, %v1119_v15  ;;  %v968_v53 = vmul.f32 %v3524_v41, %v3482_v33  ;;  %v604_v58 = vpop.xlane.xlu2 %603  ;;  %v634_v59 = vpop.xlane.xlu0 %633  ;;  %vm974_vm12 = vweird.f32 %v3524_v41 }
 0x177   : > { %v822_v25 = vmul.f32 %v3527_v43, %v3527_v43  ;;  %v3546_v0 = vmul.f32 0.0078125, %v634_v59  ;;  %v1303_v15 = vmul.f32 %v3492_v51, %v1268_v44  ;;  %v3553_v50 = vmul.f32 0.0078125, %v604_v58  ;;  %vm3599_vm14 = vmor %vm973_vm13, %vm974_vm12 }
 0x178   : > { %v1121_v6 = vsub.f32 1.5, %v1120_v36  ;;  %v969_v7 = vmul.f32 %v3524_v41, %v968_v53 }
 0x179   : > { %v3551_v18 = vpop.eup %2727  ;;  %v854_v37 = vsub.f32 %v790_v34, %v822_v25  ;;  %v838_v23 = vmul.f32 %v3546_v0, %v3546_v0  ;;  %751 = vadd.xlane.f32.xlu1 %v689_v32  ;;  %v823_v53 = vmul.f32 %v3553_v50, %v3553_v50  ;;  %v1338_v46 = vadd.f32 %v3510_v10, %v1303_v15 }
 0x17a   : > { %v1122_v17 = vmul.f32 %v3497_v60, %v1121_v6  ;;  %v970_v61 = vmul.f32 0.5, %v969_v7  ;;  %v1128_v36 = vmul.f32 %v3551_v18, %v3501_v2  ;;  %v900_v32 = vsub.f32 %v3272_v5, %v3432_v16 }
 0x17b   : > { %v3566_v35 = vadd.f32 1e-05, %v854_v37  ;;  %v870_v58 = vsub.f32 %v806_v9, %v838_v23  ;;  %719 = vadd.xlane.f32.xlu2 %v673_v56  ;;  %657 = vadd.xlane.f32.xlu0 %v3471_v4  ;;  %v1369_v6 = vmax.f32 %v1337_v14, 0.0  ;;  %v1370_v37 = vmax.f32 %v1338_v46, 0.0 }
 0x17c   : > { %v971_v59 = vsub.f32 1.5, %v970_v61  ;;  %v1129_v54 = vmul.f32 %v3551_v18, %v1128_v36  ;;  %v700_v52 = vpop.xlane.xlu1 %699  ;;  %v1126_v34 = vsel %vm3562_vm11, %v3497_v60, %v1122_v17  ;;  %v1318_v5 = vmul.f32 %v3492_v51, %v1283_v42 }
 0x17d   : > { %2729 = vrsqrt.f32 %v3566_v35  ;;  %v3579_v25 = vadd.f32 1e-05, %v870_v58  ;;  %v791_v56 = vmul.f32 0.0078125, %v700_v52  ;;  %v1284_v23 = vmul.f32 %v1126_v34, %v900_v32 }
 0x17e   : > { %v1130_v7 = vmul.f32 0.5, %v1129_v54  ;;  %v702_v9 = vpop.xlane.xlu2 %701  ;;  %v732_v15 = vpop.xlane.xlu0 %731  ;;  %v972_v61 = vmul.f32 %v3524_v41, %v971_v59  ;;  %v1401_v17 = vpack.c.bf16 %v1370_v37, %v1369_v6  ;;  %v674_v14 = vmul.f32 %v3517_v63, %v3517_v63 }
 0x17f   : > { %2731 = vrsqrt.f32 %v3579_v25  ;;  %v855_v16 = vsub.f32 %v791_v56, %v823_v53  ;;  %v1319_v44 = vmul.f32 %v3492_v51, %v1284_v23  ;;  %v1353_v42 = vadd.f32 %v3510_v10, %v1318_v5 }
 0x180   : > { %v1131_v60 = vsub.f32 1.5, %v1130_v7  ;;  %1493 = vmatmul.bf16.vlgmr.msra.gmra.mxu1 %v1401_v17  ;;  %v901_v58 = vsub.f32 %v3278_v8, %v3462_v57  ;;  %v885_v46 = vsub.f32 %v3267_v3, %v3453_v47  ;;  %v976_v59 = vsel %vm3599_vm14, %v3524_v41, %v972_v61 }
 0x181   : > { %v3585_v36 = vadd.f32 1e-05, %v855_v16  ;;  %625 = vadd.xlane.f32.xlu1 %v3517_v63  ;;  %v1354_v33 = vadd.f32 %v3510_v10, %v1319_v44  ;;  %vm1134_vm15 = vweird.f32 %v3551_v18  ;;  %v886_v57 = vsub.f32 %v3285_v12, %v3527_v43 }
 0x182   : > { %v1132_v54 = vmul.f32 %v3551_v18, %v1131_v60  ;;  %vm983_vm1 = vweird.f32 %v3566_v35  ;;  %v1385_v37 = vmax.f32 %v1353_v42, 0.0  ;;  %v1269_v23 = vmul.f32 %v976_v59, %v885_v46  ;;  %vm3622_vm2 = vmor %vm1133_vm0, %vm1134_vm15 }
 0x183   : > { %v3593_v53 = vpop.eup %2729  ;;  %2733 = vrsqrt.f32 %v3585_v36  ;;  %721 = vadd.xlane.f32.xlu0 %v674_v14  ;;  %v1386_v34 = vmax.f32 %v1354_v33, 0.0  ;;  %v807_v12 = vmul.f32 0.0078125, %v732_v15  ;;  %v792_v44 = vmul.f32 0.0078125, %v702_v9 }
 0x184   : > { %v978_v3 = vmul.f32 %v3593_v53, %v3566_v35  ;;  %v636_v8 = vpop.xlane.xlu1 %635  ;;  %v1136_v17 = vsel %vm3622_vm2, %v3551_v18, %v1132_v54  ;;  %vm984_vm3 = vweird.f32 %v3593_v53  ;;  %v1304_v54 = vmul.f32 %v3492_v51, %v1269_v23 }
 0x185   : > { %v2732_v47 = vpop.eup %2731  ;;  %v3615_v52 = vmul.f32 0.0078125, %v636_v8  ;;  %v1409_v60 = vpack.c.bf16 %v1386_v34, %v1385_v37  ;;  %v1285_v9 = vmul.f32 %v1136_v17, %v901_v58  ;;  %vm985_vm5 = vmor %vm983_vm1, %vm984_vm3  ;;  %vm1143_vm6 = vweird.f32 %v3579_v25 }
 0x186   : > { %v979_v56 = vmul.f32 %v3593_v53, %v978_v3  ;;  %v1138_v41 = vmul.f32 %v2732_v47, %v3579_v25  ;;  %v638_v6 = vpop.xlane.xlu2 %637  ;;  %v606_v7 = vpop.xlane.xlu0 %605  ;;  %vm1144_vm4 = vweird.f32 %v2732_v47  ;;  %v902_v35 = vsub.f32 %v3288_v13, %v3546_v0 }
 0x187   : > { %v839_v43 = vmul.f32 %v3615_v52, %v3615_v52  ;;  %v3628_v5 = vmul.f32 0.0078125, %v606_v7  ;;  %v3635_v46 = vmul.f32 0.0078125, %v638_v6  ;;  %1533 = vmatmul.bf16.vlgmr.msra.gmra.mxu3 %v1409_v60  ;;  %vm1145_vm7 = vmor %vm1143_vm6, %vm1144_vm4  ;;  %vm993_vm9 = vweird.f32 %v3585_v36 }
 0x188   : > { %v980_v16 = vmul.f32 0.5, %v979_v56  ;;  %v1139_v61 = vmul.f32 %v2732_v47, %v1138_v41 }
 0x189   : > { %v3633_v14 = vpop.eup %2733  ;;  %v871_v42 = vsub.f32 %v807_v12, %v839_v43  ;;  %v824_v15 = vmul.f32 %v3628_v5, %v3628_v5  ;;  %v840_v6 = vmul.f32 %v3635_v46, %v3635_v46 }
 0x18a   : > { %v981_v32 = vsub.f32 1.5, %v980_v16  ;;  %v1140_v33 = vmul.f32 0.5, %v1139_v61  ;;  %v988_v59 = vmul.f32 %v3633_v14, %v3585_v36  ;;  %vm994_vm8 = vweird.f32 %v3633_v14 }
 0x18b   : > { %v3642_v3 = vadd.f32 1e-05, %v871_v42  ;;  %v856_v18 = vsub.f32 %v792_v44, %v824_v15  ;;  %v1339_v44 = vadd.f32 %v3510_v10, %v1304_v54  ;;  %v1320_v15 = vmul.f32 %v3492_v51, %v1285_v9  ;;  %vm3685_vm10 = vmor %vm993_vm9, %vm994_vm8 }
 0x18c   : > { %v982_v8 = vmul.f32 %v3593_v53, %v981_v32  ;;  %v1141_v34 = vsub.f32 1.5, %v1140_v33  ;;  %v989_v56 = vmul.f32 %v3633_v14, %v988_v59  ;;  %v734_v41 = vpop.xlane.xlu1 %733  ;;  %v903_v33 = vsub.f32 %v3303_v21, %v3615_v52 }
 0x18d   : > { %2735 = vrsqrt.f32 %v3642_v3  ;;  %v3652_v7 = vadd.f32 1e-05, %v856_v18  ;;  %v808_v37 = vmul.f32 0.0078125, %v734_v41  ;;  %v1371_v59 = vmax.f32 %v1339_v44, 0.0 }
 0x18e   : > { %v986_v58 = vsel %vm985_vm5, %v3593_v53, %v982_v8  ;;  %v1142_v23 = vmul.f32 %v2732_v47, %v1141_v34  ;;  %v990_v2 = vmul.f32 0.5, %v989_v56  ;;  %v736_v12 = vpop.xlane.xlu2 %735  ;;  %v704_v43 = vpop.xlane.xlu0 %703  ;;  %v1355_v8 = vadd.f32 %v3510_v10, %v1320_v15 }
 0x18f   : > { %v1270_v16 = vmul.f32 %v986_v58, %v886_v57  ;;  %2737 = vrsqrt.f32 %v3652_v7  ;;  %v872_v61 = vsub.f32 %v808_v37, %v840_v6  ;;  %v887_v57 = vsub.f32 %v3297_v19, %v3553_v50 }
 0x190   : > { %v1146_v60 = vsel %vm1145_vm7, %v2732_v47, %v1142_v23  ;;  %v991_v17 = vsub.f32 1.5, %v990_v2  ;;  %vm1153_vm11 = vweird.f32 %v3642_v3  ;;  %v809_v6 = vmul.f32 0.0078125, %v736_v12 }
 0x191   : > { %v1286_v53 = vmul.f32 %v1146_v60, %v902_v35  ;;  %v3661_v42 = vadd.f32 1e-05, %v872_v61  ;;  %v1305_v25 = vmul.f32 %v3492_v51, %v1270_v16  ;;  %v793_v23 = vmul.f32 0.0078125, %v704_v43 }
 0x192   : > { %v992_v0 = vmul.f32 %v3633_v14, %v991_v17  ;;  %v1387_v43 = vmax.f32 %v1355_v8, 0.0  ;;  %vm1003_vm15 = vweird.f32 %v3652_v7 }
 0x193   : > { %v3668_v13 = vpop.eup %2735  ;;  %2739 = vrsqrt.f32 %v3661_v42  ;;  %v1340_v47 = vadd.f32 %v3510_v10, %v1305_v25  ;;  %v1321_v32 = vmul.f32 %v3492_v51, %v1286_v53  ;;  %vm1163_vm2 = vweird.f32 %v3661_v42 }
 0x194   : > { %v1148_v19 = vmul.f32 %v3668_v13, %v3642_v3  ;;  %v608_v50 = vpop.xlane.xlu1 %607  ;;  %v996_v35 = vsel %vm3685_vm10, %v3633_v14, %v992_v0  ;;  %vm1154_vm12 = vweird.f32 %v3668_v13 }
 0x195   : > { %v2738_v18 = vpop.eup %2737  ;;  %v3679_v54 = vmul.f32 0.0078125, %v608_v50  ;;  %v1372_v9 = vmax.f32 %v1340_v47, 0.0  ;;  %v1356_v34 = vadd.f32 %v3510_v10, %v1321_v32  ;;  %vm3710_vm14 = vmor %vm1153_vm11, %vm1154_vm12 }
 0x196   : > { %v1149_v56 = vmul.f32 %v3668_v13, %v1148_v19  ;;  %v998_v41 = vmul.f32 %v2738_v18, %v3652_v7  ;;  %v610_v37 = vpop.xlane.xlu2 %609  ;;  %v640_v58 = vpop.xlane.xlu0 %639  ;;  %vm1004_vm13 = vweird.f32 %v2738_v18 }
 0x197   : > { %v825_v2 = vmul.f32 %v3679_v54, %v3679_v54  ;;  %v3694_v16 = vmul.f32 0.0078125, %v640_v58  ;;  %v1402_v17 = vpack.c.bf16 %v1372_v9, %v1371_v59  ;;  %v1388_v44 = vmax.f32 %v1356_v34, 0.0  ;;  %vm1005_vm0 = vmor %vm1003_vm15, %vm1004_vm13 }
 0x198   : > { %v1150_v61 = vmul.f32 0.5, %v1149_v56  ;;  %v999_v60 = vmul.f32 %v2738_v18, %v998_v41  ;;  %v3699_v15 = vmul.f32 0.0078125, %v610_v37  ;;  %v1271_v59 = vmul.f32 %v996_v35, %v887_v57 }
 0x199   : > { %v2740_v53 = vpop.eup %2739  ;;  %v857_v25 = vsub.f32 %v793_v23, %v825_v2  ;;  %v841_v12 = vmul.f32 %v3694_v16, %v3694_v16  ;;  %1498 = vmatmul.bf16.gmra.mxu1 %v1402_v17  ;;  %v1410_v50 = vpack.c.bf16 %v1388_v44, %v1387_v43  ;;  %v888_v35 = vsub.f32 %v3306_v22, %v3628_v5 }
 0x19a   : > { %v1151_v47 = vsub.f32 1.5, %v1150_v61  ;;  %v1000_v32 = vmul.f32 0.5, %v999_v60  ;;  %v1158_v19 = vmul.f32 %v2740_v53, %v3661_v42  ;;  %v826_v41 = vmul.f32 %v3699_v15, %v3699_v15 }
 0x19b   : > { %v3705_v14 = vadd.f32 1e-05, %v857_v25  ;;  %v873_v0 = vsub.f32 %v809_v6, %v841_v12  ;;  %1538 = vmatmul.bf16.gmra.mxu3 %v1410_v50  ;;  %v1306_v60 = vmul.f32 %v3492_v51, %v1271_v59  ;;  %vm1164_vm1 = vweird.f32 %v2740_v53 }
 0x19c   : > { %v1152_v9 = vmul.f32 %v3668_v13, %v1151_v47  ;;  %v1001_v34 = vsub.f32 1.5, %v1000_v32  ;;  %v1159_v36 = vmul.f32 %v2740_v53, %v1158_v19  ;;  %v706_v56 = vpop.xlane.xlu1 %705  ;;  %v904_v5 = vsub.f32 %v3315_v29, %v3635_v46  ;;  %vm1165_vm3 = vmor %vm1163_vm2, %vm1164_vm1 }
 0x19d   : > { %2741 = vrsqrt.f32 %v3705_v14  ;;  %v3717_v6 = vadd.f32 1e-05, %v873_v0  ;;  %v794_v57 = vmul.f32 0.0078125, %v706_v56  ;;  %v1341_v43 = vadd.f32 %v3510_v10, %v1306_v60 }
 0x19e   : > { %v1156_v37 = vsel %vm3710_vm14, %v3668_v13, %v1152_v9  ;;  %v1002_v58 = vmul.f32 %v2738_v18, %v1001_v34  ;;  %v1160_v3 = vmul.f32 0.5, %v1159_v36  ;;  %v708_v23 = vpop.xlane.xlu2 %707  ;;  %v738_v2 = vpop.xlane.xlu0 %737  ;;  %vm1013_vm5 = vweird.f32 %v3705_v14 }
 0x19f   : > { %2743 = vrsqrt.f32 %v3717_v6  ;;  %v858_v61 = vsub.f32 %v794_v57, %v826_v41  ;;  %v1287_v7 = vmul.f32 %v1156_v37, %v903_v33  ;;  %v795_v50 = vmul.f32 0.0078125, %v708_v23 }
 0x1a0   : > { %v1006_v17 = vsel %vm1005_vm0, %v2738_v18, %v1002_v58  ;;  %v1161_v44 = vsub.f32 1.5, %v1160_v3  ;;  %v810_v34 = vmul.f32 0.0078125, %v738_v2  ;;  %v1373_v56 = vmax.f32 %v1341_v43, 0.0 }
 0x1a1   : > { %v1272_v13 = vmul.f32 %v1006_v17, %v888_v35  ;;  %v3731_v25 = vadd.f32 1e-05, %v858_v61  ;;  %v1322_v29 = vmul.f32 %v3492_v51, %v1287_v7  ;;  %vm1173_vm10 = vweird.f32 %v3717_v6 }
 0x1a2   : > { %v1162_v12 = vmul.f32 %v2740_v53, %v1161_v44 }
 0x1a3   : > { %v3734_v22 = vpop.eup %2741  ;;  %2745 = vrsqrt.f32 %v3731_v25  ;;  %v1307_v18 = vmul.f32 %v3492_v51, %v1272_v13  ;;  %v1357_v2 = vadd.f32 %v3510_v10, %v1322_v29  ;;  %vm1023_vm9 = vweird.f32 %v3731_v25 }
 0x1a4   : > { %v1008_v21 = vmul.f32 %v3734_v22, %v3705_v14  ;;  %v642_v52 = vpop.xlane.xlu1 %641  ;;  %v1166_v33 = vsel %vm1165_vm3, %v2740_v53, %v1162_v12  ;;  %vm1014_vm4 = vweird.f32 %v3734_v22 }
 0x1a5   : > { %v3743_v47 = vpop.eup %2743  ;;  %v3745_v42 = vmul.f32 0.0078125, %v642_v52  ;;  %v1342_v32 = vadd.f32 %v3510_v10, %v1307_v18  ;;  %v1288_v19 = vmul.f32 %v1166_v33, %v904_v5  ;;  %vm3772_vm6 = vmor %vm1013_vm5, %vm1014_vm4 }
 0x1a6   : > { %v1009_v46 = vmul.f32 %v3734_v22, %v1008_v21  ;;  %v1168_v0 = vmul.f32 %v3743_v47, %v3717_v6  ;;  %v644_v59 = vpop.xlane.xlu2 %643  ;;  %v612_v9 = vpop.xlane.xlu0 %611  ;;  %vm1174_vm7 = vweird.f32 %v3743_v47 }
 0x1a7   : > { %v842_v53 = vmul.f32 %v3745_v42, %v3745_v42  ;;  %v3754_v36 = vmul.f32 0.0078125, %v612_v9  ;;  %v1374_v57 = vmax.f32 %v1342_v32, 0.0  ;;  %v1323_v37 = vmul.f32 %v3492_v51, %v1288_v19  ;;  %vm3796_vm12 = vmor %vm1173_vm10, %vm1174_vm7 }
 0x1a8   : > { %v1010_v8 = vmul.f32 0.5, %v1009_v46  ;;  %v1169_v41 = vmul.f32 %v3743_v47, %v1168_v0  ;;  %v3758_v35 = vmul.f32 0.0078125, %v644_v59  ;;  %v889_v59 = vsub.f32 %v3321_v30, %v3679_v54 }
 0x1a9   : > { %v2746_v58 = vpop.eup %2745  ;;  %v874_v3 = vsub.f32 %v810_v34, %v842_v53  ;;  %v827_v23 = vmul.f32 %v3754_v36, %v3754_v36  ;;  %v1403_v12 = vpack.c.bf16 %v1374_v57, %v1373_v56  ;;  %v1358_v21 = vadd.f32 %v3510_v10, %v1323_v37 }
 0x1aa   : > { %v1011_v61 = vsub.f32 1.5, %v1010_v8  ;;  %v1170_v60 = vmul.f32 0.5, %v1169_v41  ;;  %v1018_v17 = vmul.f32 %v2746_v58, %v3731_v25  ;;  %v843_v7 = vmul.f32 %v3758_v35, %v3758_v35 }
 0x1ab   : > { %v3765_v44 = vadd.f32 1e-05, %v874_v3  ;;  %v859_v13 = vsub.f32 %v795_v50, %v827_v23  ;;  %1503 = vmatmul.bf16.gmra.mxu1 %v1403_v12  ;;  %v1390_v50 = vmax.f32 %v1358_v21, 0.0  ;;  %v1389_v34 = vmax.f32 %v1357_v2, 0.0 }
 0x1ac   : > { %v1012_v5 = vmul.f32 %v3734_v22, %v1011_v61  ;;  %v1019_v18 = vmul.f32 %v2746_v58, %v1018_v17  ;;  %v740_v43 = vpop.xlane.xlu1 %739  ;;  %v1171_v33 = vsub.f32 1.5, %v1170_v60  ;;  %vm1024_vm8 = vweird.f32 %v2746_v58 }
 0x1ad   : > { %2747 = vrsqrt.f32 %v3765_v44  ;;  %v3777_v32 = vadd.f32 1e-05, %v859_v13  ;;  %v811_v19 = vmul.f32 0.0078125, %v740_v43  ;;  %v890_v30 = vsub.f32 %v3333_v38, %v3699_v15  ;;  %vm1025_vm11 = vmor %vm1023_vm9, %vm1024_vm8 }
 0x1ae   : > { %v1016_v29 = vsel %vm3772_vm6, %v3734_v22, %v1012_v5  ;;  %v1020_v14 = vmul.f32 0.5, %v1019_v18  ;;  %v742_v46 = vpop.xlane.xlu2 %741  ;;  %v710_v0 = vpop.xlane.xlu0 %709  ;;  %v1172_v8 = vmul.f32 %v3743_v47, %v1171_v33  ;;  %v1411_v22 = vpack.c.bf16 %v1390_v50, %v1389_v34 }
 0x1af   : > { %2749 = vrsqrt.f32 %v3777_v32  ;;  %v875_v9 = vsub.f32 %v811_v19, %v843_v7  ;;  %v1273_v56 = vmul.f32 %v1016_v29, %v889_v59  ;;  %v905_v60 = vsub.f32 %v3324_v31, %v3694_v16 }
 0x1b0   : > { %v1021_v53 = vsub.f32 1.5, %v1020_v14  ;;  %1543 = vmatmul.bf16.gmra.mxu3 %v1411_v22  ;;  %v1176_v38 = vsel %vm3796_vm12, %v3743_v47, %v1172_v8  ;;  %v812_v12 = vmul.f32 0.0078125, %v742_v46  ;;  %v796_v5 = vmul.f32 0.0078125, %v710_v0 }
 0x1b1   : > { %v3787_v41 = vadd.f32 1e-05, %v875_v9  ;;  %v1308_v61 = vmul.f32 %v3492_v51, %v1273_v56  ;;  %v1289_v43 = vmul.f32 %v1176_v38, %v905_v60  ;;  %v906_v56 = vsub.f32 %v3342_v40, %v3745_v42 }
 0x1b2   : > { %v1022_v57 = vmul.f32 %v2746_v58, %v1021_v53  ;;  %vm1183_vm14 = vweird.f32 %v3765_v44  ;;  %vm1033_vm1 = vweird.f32 %v3777_v32 }
 0x1b3   : > { %v2748_v37 = vpop.eup %2747  ;;  %2751 = vrsqrt.f32 %v3787_v41  ;;  %v1343_v14 = vadd.f32 %v3510_v10, %v1308_v61  ;;  %vm1193_vm2 = vweird.f32 %v3787_v41 }
 0x1b4   : > { %v1178_v3 = vmul.f32 %v2748_v37, %v3765_v44  ;;  %v614_v23 = vpop.xlane.xlu1 %613  ;;  %v1026_v25 = vsel %vm1025_vm11, %v2746_v58, %v1022_v57  ;;  %vm1184_vm13 = vweird.f32 %v2748_v37 }
 0x1b5   : > { %v3801_v2 = vpop.eup %2749  ;;  %v3806_v15 = vmul.f32 0.0078125, %v614_v23  ;;  %v1274_v6 = vmul.f32 %v1026_v25, %v890_v30  ;;  %vm1185_vm15 = vmor %vm1183_vm14, %vm1184_vm13  ;;  %v1375_v60 = vmax.f32 %v1343_v14, 0.0 }
 0x1b6   : > { %v1179_v17 = vmul.f32 %v2748_v37, %v1178_v3  ;;  %v1028_v7 = vmul.f32 %v3801_v2, %v3777_v32  ;;  %v616_v13 = vpop.xlane.xlu2 %615  ;;  %v646_v58 = vpop.xlane.xlu0 %645  ;;  %v1324_v3 = vmul.f32 %v3492_v51, %v1289_v43  ;;  %vm1034_vm0 = vweird.f32 %v3801_v2 }
 0x1b7   : > { %v828_v18 = vmul.f32 %v3806_v15, %v3806_v15  ;;  %v3815_v47 = vmul.f32 0.0078125, %v646_v58  ;;  %v1309_v33 = vmul.f32 %v3492_v51, %v1274_v6  ;;  %v3821_v19 = vmul.f32 0.0078125, %v616_v13  ;;  %vm3862_vm4 = vmor %vm1033_vm1, %vm1034_vm0 }
 0x1b8   : > { %v1180_v21 = vmul.f32 0.5, %v1179_v17  ;;  %v1029_v52 = vmul.f32 %v3801_v2, %v1028_v7  ;;  %v891_v43 = vsub.f32 %v3339_v39, %v3754_v36  ;;  %v892_v36 = vsub.f32 %v3357_v48, %v3806_v15 }
 0x1b9   : > { %v3819_v31 = vpop.eup %2751  ;;  %v860_v16 = vsub.f32 %v796_v5, %v828_v18  ;;  %v844_v29 = vmul.f32 %v3815_v47, %v3815_v47  ;;  %v829_v9 = vmul.f32 %v3821_v19, %v3821_v19  ;;  %v1344_v53 = vadd.f32 %v3510_v10, %v1309_v33 }
 0x1ba   : > { %v1181_v46 = vsub.f32 1.5, %v1180_v21  ;;  %v1030_v0 = vmul.f32 0.5, %v1029_v52  ;;  %v1188_v50 = vmul.f32 %v3819_v31, %v3787_v41  ;;  %vm1194_vm3 = vweird.f32 %v3819_v31 }
 0x1bb   : > { %v3828_v59 = vadd.f32 1e-05, %v860_v16  ;;  %v876_v34 = vsub.f32 %v812_v12, %v844_v29  ;;  %v1376_v40 = vmax.f32 %v1344_v53, 0.0  ;;  %v1359_v12 = vadd.f32 %v3510_v10, %v1324_v3  ;;  %vm3880_vm6 = vmor %vm1193_vm2, %vm1194_vm3 }
 0x1bc   : > { %v1182_v8 = vmul.f32 %v2748_v37, %v1181_v46  ;;  %v1189_v22 = vmul.f32 %v3819_v31, %v1188_v50  ;;  %v712_v57 = vpop.xlane.xlu1 %711  ;;  %v1031_v25 = vsub.f32 1.5, %v1030_v0 }
 0x1bd   : > { %2753 = vrsqrt.f32 %v3828_v59  ;;  %v3838_v30 = vadd.f32 1e-05, %v876_v34  ;;  %v797_v54 = vmul.f32 0.0078125, %v712_v57  ;;  %v1404_v13 = vpack.c.bf16 %v1376_v40, %v1375_v60 }
 0x1be   : > { %v1186_v23 = vsel %vm1185_vm15, %v2748_v37, %v1182_v8  ;;  %v1190_v38 = vmul.f32 0.5, %v1189_v22  ;;  %v714_v6 = vpop.xlane.xlu2 %713  ;;  %v744_v61 = vpop.xlane.xlu0 %743  ;;  %v907_v37 = vsub.f32 %v3351_v45, %v3758_v35  ;;  %v1032_v5 = vmul.f32 %v3801_v2, %v1031_v25 }
 0x1bf   : > { %v1290_v42 = vmul.f32 %v1186_v23, %v906_v56  ;;  %2755 = vrsqrt.f32 %v3838_v30  ;;  %v861_v44 = vsub.f32 %v797_v54, %v829_v9  ;;  %1508 = vmatmul.bf16.gmra.mxu1 %v1404_v13  ;;  %v1391_v16 = vmax.f32 %v1359_v12, 0.0 }
 0x1c0   : > { %v1191_v17 = vsub.f32 1.5, %v1190_v38  ;;  %v1036_v14 = vsel %vm3862_vm4, %v3801_v2, %v1032_v5  ;;  %vm1043_vm5 = vweird.f32 %v3828_v59  ;;  %v798_v15 = vmul.f32 0.0078125, %v714_v6 }
 0x1c1   : > { %v3842_v7 = vadd.f32 1e-05, %v861_v44  ;;  %v1325_v58 = vmul.f32 %v3492_v51, %v1290_v42  ;;  %v813_v34 = vmul.f32 0.0078125, %v744_v61  ;;  %v1275_v41 = vmul.f32 %v1036_v14, %v891_v43 }
 0x1c2   : > { %v1192_v52 = vmul.f32 %v3819_v31, %v1191_v17  ;;  %vm1203_vm8 = vweird.f32 %v3838_v30 }
 0x1c3   : > { %v3850_v18 = vpop.eup %2753  ;;  %2757 = vrsqrt.f32 %v3842_v7  ;;  %v1360_v21 = vadd.f32 %v3510_v10, %v1325_v58  ;;  %vm1053_vm13 = vweird.f32 %v3842_v7 }
 0x1c4   : > { %v1038_v45 = vmul.f32 %v3850_v18, %v3828_v59  ;;  %v648_v35 = vpop.xlane.xlu1 %647  ;;  %v1196_v57 = vsel %vm3880_vm6, %v3819_v31, %v1192_v52  ;;  %vm1044_vm7 = vweird.f32 %v3850_v18  ;;  %v908_v59 = vsub.f32 %v3360_v49, %v3815_v47 }
 0x1c5   : > { %v2756_v33 = vpop.eup %2755  ;;  %v3868_v32 = vmul.f32 0.0078125, %v648_v35  ;;  %v1392_v29 = vmax.f32 %v1360_v21, 0.0  ;;  %v1291_v42 = vmul.f32 %v1196_v57, %v907_v37  ;;  %vm1045_vm10 = vmor %vm1043_vm5, %vm1044_vm7  ;;  %v1310_v35 = vmul.f32 %v3492_v51, %v1275_v41 }
 0x1c6   : > { %v1039_v46 = vmul.f32 %v3850_v18, %v1038_v45  ;;  %v1198_v0 = vmul.f32 %v2756_v33, %v3838_v30  ;;  %v650_v50 = vpop.xlane.xlu2 %649  ;;  %v618_v9 = vpop.xlane.xlu0 %617  ;;  %vm1204_vm9 = vweird.f32 %v2756_v33 }
 0x1c7   : > { %v845_v2 = vmul.f32 %v3868_v32, %v3868_v32  ;;  %v3886_v53 = vmul.f32 0.0078125, %v618_v9  ;;  %v1412_v22 = vpack.c.bf16 %v1392_v29, %v1391_v16  ;;  %v3893_v23 = vmul.f32 0.0078125, %v650_v50  ;;  %vm1205_vm11 = vmor %vm1203_vm8, %vm1204_vm9 }
 0x1c8   : > { %v1040_v56 = vmul.f32 0.5, %v1039_v46  ;;  %v1199_v8 = vmul.f32 %v2756_v33, %v1198_v0  ;;  %v1326_v50 = vmul.f32 %v3492_v51, %v1291_v42  ;;  %v1345_v49 = vadd.f32 %v3510_v10, %v1310_v35 }
 0x1c9   : > { %v3891_v54 = vpop.eup %2757  ;;  %v877_v3 = vsub.f32 %v813_v34, %v845_v2  ;;  %v830_v25 = vmul.f32 %v3886_v53, %v3886_v53  ;;  %1548 = vmatmul.bf16.gmra.mxu3 %v1412_v22  ;;  %v846_v58 = vmul.f32 %v3893_v23, %v3893_v23  ;;  %v893_v9 = vsub.f32 %v3369_v55, %v3821_v19 }
 0x1ca   : > { %v1041_v38 = vsub.f32 1.5, %v1040_v56  ;;  %v1200_v6 = vmul.f32 0.5, %v1199_v8  ;;  %v1048_v61 = vmul.f32 %v3891_v54, %v3842_v7  ;;  %vm1054_vm12 = vweird.f32 %v3891_v54 }
 0x1cb   : > { %v3901_v31 = vadd.f32 1e-05, %v877_v3  ;;  %v862_v40 = vsub.f32 %v798_v15, %v830_v25  ;;  %v1361_v8 = vadd.f32 %v3510_v10, %v1326_v50  ;;  %vm3943_vm14 = vmor %vm1053_vm13, %vm1054_vm12  ;;  %v909_v55 = vsub.f32 %v3375_v62, %v3868_v32 }
 0x1cc   : > { %v1042_v44 = vmul.f32 %v3850_v18, %v1041_v38  ;;  %v1201_v60 = vsub.f32 1.5, %v1200_v6  ;;  %v1049_v17 = vmul.f32 %v3891_v54, %v1048_v61  ;;  %v746_v13 = vpop.xlane.xlu1 %745  ;;  %v1377_v3 = vmax.f32 %v1345_v49, 0.0 }
 0x1cd   : > { %2759 = vrsqrt.f32 %v3901_v31  ;;  %v3910_v12 = vadd.f32 1e-05, %v862_v40  ;;  %v814_v5 = vmul.f32 0.0078125, %v746_v13  ;;  %v1393_v13 = vmax.f32 %v1361_v8, 0.0 }
 0x1ce   : > { %v1046_v37 = vsel %vm1045_vm10, %v3850_v18, %v1042_v44  ;;  %v1202_v43 = vmul.f32 %v2756_v33, %v1201_v60  ;;  %v1050_v21 = vmul.f32 0.5, %v1049_v17  ;;  %v748_v52 = vpop.xlane.xlu2 %747  ;;  %v716_v45 = vpop.xlane.xlu0 %715  ;;  %vm1213_vm1 = vweird.f32 %v3901_v31 }
 0x1cf   : > { %v1276_v39 = vmul.f32 %v1046_v37, %v892_v36  ;;  %2761 = vrsqrt.f32 %v3910_v12  ;;  %v878_v16 = vsub.f32 %v814_v5, %v846_v58  ;;  %v799_v25 = vmul.f32 0.0078125, %v716_v45 }
 0x1d0   : > { %v1206_v29 = vsel %vm1205_vm11, %v2756_v33, %v1202_v43  ;;  %v1051_v14 = vsub.f32 1.5, %v1050_v21  ;;  %v815_v44 = vmul.f32 0.0078125, %v748_v52  ;;  %vm1063_vm3 = vweird.f32 %v3910_v12 }
 0x1d1   : > { %v1292_v18 = vmul.f32 %v1206_v29, %v908_v59  ;;  %v3920_v46 = vadd.f32 1e-05, %v878_v16  ;;  %v1311_v0 = vmul.f32 %v3492_v51, %v1276_v39 }
 0x1d2   : > { %v1052_v30 = vmul.f32 %v3891_v54, %v1051_v14 }
 0x1d3   : > { %v3926_v47 = vpop.eup %2759  ;;  %2763 = vrsqrt.f32 %v3920_v46  ;;  %v1346_v33 = vadd.f32 %v3510_v10, %v1311_v0  ;;  %v1327_v36 = vmul.f32 %v3492_v51, %v1292_v18  ;;  %v894_v18 = vsub.f32 %v3378_v1, %v3886_v53 }
 0x1d4   : > { %v1208_v48 = vmul.f32 %v3926_v47, %v3901_v31  ;;  %v620_v15 = vpop.xlane.xlu1 %619  ;;  %v1056_v6 = vsel %vm3943_vm14, %v3891_v54, %v1052_v30  ;;  %vm1214_vm15 = vweird.f32 %v3926_v47  ;;  %vm1223_vm6 = vweird.f32 %v3920_v46 }
 0x1d5   : > { %v2762_v34 = vpop.eup %2761  ;;  %v3937_v2 = vmul.f32 0.0078125, %v620_v15  ;;  %v1378_v56 = vmax.f32 %v1346_v33, 0.0  ;;  %v1362_v22 = vadd.f32 %v3510_v10, %v1327_v36  ;;  %v1277_v45 = vmul.f32 %v1056_v6, %v893_v9  ;;  %vm3973_vm2 = vmor %vm1213_vm1, %vm1214_vm15 }
 0x1d6   : > { %v1209_v19 = vmul.f32 %v3926_v47, %v1208_v48  ;;  %v1058_v7 = vmul.f32 %v2762_v34, %v3910_v12  ;;  %v622_v57 = vpop.xlane.xlu2 %621  ;;  %v652_v41 = vpop.xlane.xlu0 %651  ;;  %vm1064_vm0 = vweird.f32 %v2762_v34  ;;  %v3992_v12 = vld [vmem:[%s4899_s3] ss:$0 sm:$0xff] }
 0x1d7   : > { %v831_v10 = vmul.f32 %v3937_v2, %v3937_v2  ;;  %v3953_v38 = vmul.f32 0.0078125, %v652_v41  ;;  %v1405_v62 = vpack.c.bf16 %v1378_v56, %v1377_v3  ;;  %v1394_v32 = vmax.f32 %v1362_v22, 0.0  ;;  %vm1065_vm4 = vmor %vm1063_vm3, %vm1064_vm0 }
 0x1d8   : > { %v1210_v61 = vmul.f32 0.5, %v1209_v19  ;;  %v1059_v40 = vmul.f32 %v2762_v34, %v1058_v7  ;;  %v3984_v33 = vmul.f32 0.0078125, %v622_v57  ;;  %v1312_v9 = vmul.f32 %v3992_v12, %v1277_v45 }
 0x1d9   : > { %v2764_v42 = vpop.eup %2763  ;;  %v863_v60 = vsub.f32 %v799_v25, %v831_v10  ;;  %v847_v17 = vmul.f32 %v3953_v38, %v3953_v38  ;;  %1513 = vmatmul.bf16.gmra.mxu1 %v1405_v62  ;;  %v1413_v21 = vpack.c.bf16 %v1394_v32, %v1393_v13 }
 0x1da   : > { %v1211_v58 = vsub.f32 1.5, %v1210_v61  ;;  %v1060_v5 = vmul.f32 0.5, %v1059_v40  ;;  %v1218_v37 = vmul.f32 %v2764_v42, %v3920_v46  ;;  %vm1224_vm5 = vweird.f32 %v2764_v42  ;;  %v4008_v46 = vld [vmem:[%s4900_s4] ss:$0 sm:$0xff] }
 0x1db   : > { %v3962_v43 = vadd.f32 1e-05, %v863_v60  ;;  %v879_v54 = vsub.f32 %v815_v44, %v847_v17  ;;  %1553 = vmatmul.bf16.gmra.mxu3 %v1413_v21  ;;  %vm1225_vm7 = vmor %vm1223_vm6, %vm1224_vm5  ;;  %v832_v7 = vmul.f32 %v3984_v33, %v3984_v33 }
 0x1dc   : > { %v1212_v35 = vmul.f32 %v3926_v47, %v1211_v58  ;;  %v1061_v52 = vsub.f32 1.5, %v1060_v5  ;;  %v1219_v39 = vmul.f32 %v2764_v42, %v1218_v37  ;;  %v654_v59 = vpop.xlane.xlu1 %653 }
 0x1dd   : > { %2765 = vrsqrt.f32 %v3962_v43  ;;  %v3967_v16 = vadd.f32 1e-05, %v879_v54  ;;  %v3969_v29 = vmul.f32 0.0078125, %v654_v59  ;;  %vm1073_vm12 = vweird.f32 %v3962_v43 }
 0x1de   : > { %v1062_v0 = vmul.f32 %v2762_v34, %v1061_v52  ;;  %v1220_v31 = vmul.f32 0.5, %v1219_v39  ;;  %v656_v50 = vpop.xlane.xlu2 %655  ;;  %v750_v49 = vpop.xlane.xlu0 %749  ;;  %v1216_v30 = vsel %vm3973_vm2, %v3926_v47, %v1212_v35 }
 0x1df   : > { %2767 = vrsqrt.f32 %v3967_v16  ;;  %v848_v36 = vmul.f32 %v3969_v29, %v3969_v29  ;;  %v816_v48 = vmul.f32 0.0078125, %v750_v49  ;;  %v1293_v15 = vmul.f32 %v1216_v30, %v909_v55 }
 0x1e0   : > { %v1066_v1 = vsel %vm1065_vm4, %v2762_v34, %v1062_v0  ;;  %v1221_v53 = vsub.f32 1.5, %v1220_v31  ;;  %v910_v34 = vsub.f32 %v3391_v20, %v3893_v23  ;;  %v1347_v55 = vadd.f32 %v4008_v46, %v1312_v9 }
 0x1e1   : > { %v1278_v47 = vmul.f32 %v1066_v1, %v894_v18  ;;  %v880_v22 = vsub.f32 %v816_v48, %v848_v36  ;;  %v1328_v32 = vmul.f32 %v3992_v12, %v1293_v15  ;;  %vm1233_vm9 = vweird.f32 %v3967_v16 }
 0x1e2   : > { %v1222_v56 = vmul.f32 %v2764_v42, %v1221_v53  ;;  %v1379_v58 = vmax.f32 %v1347_v55, 0.0 }
 0x1e3   : > { %v3996_v8 = vpop.eup %2765  ;;  %v1313_v51 = vmul.f32 %v3992_v12, %v1278_v47  ;;  %v4011_v23 = vadd.f32 1e-05, %v880_v22  ;;  %v1363_v45 = vadd.f32 %v4008_v46, %v1328_v32  ;;  %v911_v47 = vsub.f32 %v3402_v27, %v3953_v38 }
 0x1e4   : > { %v1068_v19 = vmul.f32 %v3996_v8, %v3962_v43  ;;  %v718_v57 = vpop.xlane.xlu1 %717  ;;  %v1226_v41 = vsel %vm1225_vm7, %v2764_v42, %v1222_v56  ;;  %v4018_v42 = vmul.f32 0.0078125, %v656_v50  ;;  %vm1074_vm11 = vweird.f32 %v3996_v8 }
 0x1e5   : > { %v2768_v20 = vpop.eup %2767  ;;  %v800_v3 = vmul.f32 0.0078125, %v718_v57  ;;  %v1348_v25 = vadd.f32 %v4008_v46, %v1313_v51  ;;  %v1294_v10 = vmul.f32 %v1226_v41, %v910_v34  ;;  %2769 = vrsqrt.f32 %v4011_v23  ;;  %vm4056_vm14 = vmor %vm1073_vm12, %vm1074_vm11 }
 0x1e6   : > { %v1069_v6 = vmul.f32 %v3996_v8, %v1068_v19  ;;  %v1228_v61 = vmul.f32 %v2768_v20, %v3967_v16  ;;  %v754_v40 = vpop.xlane.xlu2 %753  ;;  %v624_v62 = vpop.xlane.xlu0 %623  ;;  %v849_v21 = vmul.f32 %v4018_v42, %v4018_v42  ;;  %vm1234_vm8 = vweird.f32 %v2768_v20 }
 0x1e7   : > { %v864_v44 = vsub.f32 %v800_v3, %v832_v7  ;;  %v1380_v17 = vmax.f32 %v1348_v25, 0.0  ;;  %v1329_v5 = vmul.f32 %v3992_v12, %v1294_v10  ;;  %v4027_v35 = vmul.f32 0.0078125, %v624_v62  ;;  %vm1235_vm10 = vmor %vm1233_vm9, %vm1234_vm8 }
 0x1e8   : > { %v1229_v60 = vmul.f32 %v2768_v20, %v1228_v61  ;;  %v1070_v37 = vmul.f32 0.5, %v1069_v6  ;;  %v1395_v9 = vmax.f32 %v1363_v45, 0.0  ;;  %v818_v19 = vmul.f32 0.0078125, %v754_v40 }
 0x1e9   : > { %v4020_v13 = vadd.f32 1e-05, %v864_v44  ;;  %v1406_v52 = vpack.c.bf16 %v1380_v17, %v1379_v58  ;;  %v1364_v39 = vadd.f32 %v4008_v46, %v1329_v5  ;;  %v833_v0 = vmul.f32 %v4027_v35, %v4027_v35 }
 0x1ea   : > { %v1230_v54 = vmul.f32 0.5, %v1229_v60  ;;  %v1071_v49 = vsub.f32 1.5, %v1070_v37  ;;  %vm1243_vm15 = vweird.f32 %v4011_v23  ;;  %v895_v5 = vsub.f32 %v3399_v26, %v3937_v2 }
 0x1eb   : > { %2771 = vrsqrt.f32 %v4020_v13  ;;  %v2770_v18 = vpop.eup %2769  ;;  %1518 = vmatmul.bf16.gmra.mxu1 %v1406_v52  ;;  %v1396_v50 = vmax.f32 %v1364_v39, 0.0  ;;  %vm1083_vm2 = vweird.f32 %v4020_v13 }
 0x1ec   : > { %v1231_v59 = vsub.f32 1.5, %v1230_v54  ;;  %v752_v14 = vpop.xlane.xlu1 %751  ;;  %v1238_v36 = vmul.f32 %v2770_v18, %v4011_v23  ;;  %v1072_v38 = vmul.f32 %v3996_v8, %v1071_v49  ;;  %vm1244_vm13 = vweird.f32 %v2770_v18  ;;  %v4097_v49 = vld [vmem:[%s4902_s6] ss:$0 sm:$0xff] }
 0x1ed   : > { %v817_v31 = vmul.f32 0.0078125, %v752_v14  ;;  %v1414_v22 = vpack.c.bf16 %v1396_v50, %v1395_v9  ;;  %v912_v23 = vsub.f32 %v3441_v24, %v3969_v29  ;;  %vm1245_vm0 = vmor %vm1243_vm15, %vm1244_vm13 }
 0x1ee   : > { %v1232_v30 = vmul.f32 %v2768_v20, %v1231_v59  ;;  %v720_v1 = vpop.xlane.xlu2 %719  ;;  %v658_v53 = vpop.xlane.xlu0 %657  ;;  %v1239_v34 = vmul.f32 %v2770_v18, %v1238_v36  ;;  %v1076_v43 = vsel %vm4056_vm14, %v3996_v8, %v1072_v38 }
 0x1ef   : > { %v881_v48 = vsub.f32 %v817_v31, %v849_v21  ;;  %v801_v16 = vmul.f32 0.0078125, %v720_v1  ;;  %v4037_v15 = vmul.f32 0.0078125, %v658_v53  ;;  %1558 = vmatmul.bf16.gmra.mxu3 %v1414_v22  ;;  %v1279_v52 = vmul.f32 %v1076_v43, %v895_v5 }
 0x1f0   : > { %v1236_v56 = vsel %vm1235_vm10, %v2768_v20, %v1232_v30  ;;  %v1240_v41 = vmul.f32 0.5, %v1239_v34 }
 0x1f1   : > { %v4040_v51 = vpop.eup %2771  ;;  %v4042_v7 = vadd.f32 1e-05, %v881_v48  ;;  %v865_v57 = vsub.f32 %v801_v16, %v833_v0  ;;  %v850_v27 = vmul.f32 %v4037_v15, %v4037_v15  ;;  %v1295_v55 = vmul.f32 %v1236_v56, %v911_v47 }
 0x1f2   : > { %v1078_v3 = vmul.f32 %v4040_v51, %v4020_v13  ;;  %v1241_v10 = vsub.f32 1.5, %v1240_v41  ;;  %vm1084_vm1 = vweird.f32 %v4040_v51  ;;  %v896_v13 = vsub.f32 %v3428_v11, %v3984_v33 }
 0x1f3   : > { %2773 = vrsqrt.f32 %v4042_v7  ;;  %v4050_v20 = vadd.f32 1e-05, %v865_v57  ;;  %v882_v25 = vsub.f32 %v818_v19, %v850_v27  ;;  %v1330_v58 = vmul.f32 %v3992_v12, %v1295_v55  ;;  %vm4086_vm3 = vmor %vm1083_vm2, %vm1084_vm1 }
 0x1f4   : > { %v1079_v6 = vmul.f32 %v4040_v51, %v1078_v3  ;;  %v626_v61 = vpop.xlane.xlu1 %625  ;;  %v1242_v44 = vmul.f32 %v2770_v18, %v1241_v10  ;;  %v1314_v53 = vmul.f32 %v3992_v12, %v1279_v52  ;;  %vm1253_vm5 = vweird.f32 %v4042_v7 }
 0x1f5   : > { %2775 = vrsqrt.f32 %v4050_v20  ;;  %v4062_v62 = vadd.f32 1e-05, %v882_v25  ;;  %v4064_v32 = vmul.f32 0.0078125, %v626_v61  ;;  %v1365_v29 = vadd.f32 %v4008_v46, %v1330_v58 }
 0x1f6   : > { %v1080_v60 = vmul.f32 0.5, %v1079_v6  ;;  %v722_v17 = vpop.xlane.xlu0 %721  ;;  %v1246_v21 = vsel %vm1245_vm0, %v2770_v18, %v1242_v44  ;;  %v1349_v38 = vadd.f32 %v4008_v46, %v1314_v53  ;;  %v913_v10 = vsub.f32 %v3451_v28, %v4018_v42 }
 0x1f7   : > { %2777 = vrsqrt.f32 %v4062_v62  ;;  %v834_v37 = vmul.f32 %v4064_v32, %v4064_v32  ;;  %v802_v8 = vmul.f32 0.0078125, %v722_v17  ;;  %v1296_v39 = vmul.f32 %v1246_v21, %v912_v23 }
 0x1f8   : > { %v1081_v54 = vsub.f32 1.5, %v1080_v60  ;;  %v1397_v16 = vmax.f32 %v1365_v29, 0.0  ;;  %vm1093_vm9 = vweird.f32 %v4050_v20  ;;  %v1381_v44 = vmax.f32 %v1349_v38, 0.0 }
 0x1f9   : > { %v2774_v45 = vpop.eup %2773  ;;  %v866_v24 = vsub.f32 %v802_v8, %v834_v37  ;;  %v1331_v14 = vmul.f32 %v3992_v12, %v1296_v39  ;;  %vm1263_vm11 = vweird.f32 %v4062_v62  ;;  %v914_v5 = vsub.f32 %v3471_v4, %v4037_v15 }
 0x1fa   : > { %v1082_v26 = vmul.f32 %v4040_v51, %v1081_v54  ;;  %v1248_v2 = vmul.f32 %v2774_v45, %v4042_v7  ;;  %vm1254_vm4 = vweird.f32 %v2774_v45 }
 0x1fb   : > { %v4082_v59 = vpop.eup %2775  ;;  %v4092_v50 = vadd.f32 1e-05, %v866_v24  ;;  %v1366_v36 = vadd.f32 %v4008_v46, %v1331_v14  ;;  %vm1255_vm6 = vmor %vm1253_vm5, %vm1254_vm4 }
 0x1fc   : > { %v1249_v0 = vmul.f32 %v2774_v45, %v1248_v2  ;;  %v1088_v31 = vmul.f32 %v4082_v59, %v4050_v20  ;;  %v1086_v1 = vsel %vm4086_vm3, %v4040_v51, %v1082_v26  ;;  %vm1094_vm7 = vweird.f32 %v4082_v59 }
 0x1fd   : > { %v2778_v30 = vpop.eup %2777  ;;  %2779 = vrsqrt.f32 %v4092_v50  ;;  %v1494_v56 = vpop.f32.mrf.mxu1  ;;  %v1398_v34 = vmax.f32 %v1366_v36, 0.0  ;;  %v1280_v11 = vmul.f32 %v1086_v1, %v896_v13  ;;  %vm4125_vm10 = vmor %vm1093_vm9, %vm1094_vm7  ;;  %vm1103_vm14 = vweird.f32 %v4092_v50 }
 0x1fe   : > { %v1250_v9 = vmul.f32 0.5, %v1249_v0  ;;  %v1089_v47 = vmul.f32 %v4082_v59, %v1088_v31  ;;  %v1258_v48 = vmul.f32 %v2778_v30, %v4062_v62  ;;  %v4110_v57 = vadd.f32 %v4097_v49, %v1494_v56  ;;  %v4950_v62 = vld [vmem:[#allocation13_spill] sm:$0xff] }
 0x1ff   : > { %v1415_v51 = vpack.c.bf16 %v1398_v34, %v1397_v16  ;;  %v1315_v27 = vmul.f32 %v3992_v12, %v1280_v11  ;;  %vm1264_vm8 = vweird.f32 %v2778_v30  ;;  %v897_v52 = vsub.f32 %v4950_v62, %v4027_v35 }
 0x200   : > { %v1251_v33 = vsub.f32 1.5, %v1250_v9  ;;  %v1090_v22 = vmul.f32 0.5, %v1089_v47  ;;  %v1259_v19 = vmul.f32 %v2778_v30, %v1258_v48  ;;  %1576 = vadd.xlane.f32.xlu1 %v4110_v57  ;;  %v1640_v25 = vmul.f32 %v4110_v57, %v4110_v57  ;;  %vm1265_vm12 = vmor %vm1263_vm11, %vm1264_vm8 }
 0x201   : > { %1563 = vmatmul.bf16.gmra.mxu3 %v1415_v51  ;;  %v1350_v7 = vadd.f32 %v4008_v46, %v1315_v27  ;;  %v898_v0 = vsub.f32 %v3517_v63, %v4064_v32 }
 0x202   : > { %v1252_v55 = vmul.f32 %v2774_v45, %v1251_v33  ;;  %v1091_v41 = vsub.f32 1.5, %v1090_v22  ;;  %v1260_v3 = vmul.f32 0.5, %v1259_v19  ;;  %1672 = vadd.xlane.f32.xlu0 %v1640_v25 }
 0x203   : > { %v2780_v43 = vpop.eup %2779  ;;  %v1382_v60 = vmax.f32 %v1350_v7, 0.0 }
 0x204   : > { %v1092_v6 = vmul.f32 %v4082_v59, %v1091_v41  ;;  %v1261_v61 = vsub.f32 1.5, %v1260_v3  ;;  %v1256_v40 = vsel %vm1255_vm6, %v2774_v45, %v1252_v55  ;;  %v1098_v58 = vmul.f32 %v2780_v43, %v4092_v50 }
 0x205   : > { %v1297_v17 = vmul.f32 %v1256_v40, %v913_v10  ;;  %v1496_v23 = vpop.f32.mrf.mxu1  ;;  %v1407_v37 = vpack.c.bf16 %v1382_v60, %v1381_v44  ;;  %vm1104_vm13 = vweird.f32 %v2780_v43 }
 0x206   : > { %v1262_v42 = vmul.f32 %v2778_v30, %v1261_v61  ;;  %v1099_v8 = vmul.f32 %v2780_v43, %v1098_v58  ;;  %v4135_v21 = vadd.f32 %v4097_v49, %v1496_v23  ;;  %v1096_v45 = vsel %vm4125_vm10, %v4082_v59, %v1092_v6  ;;  %vm1105_vm15 = vmor %vm1103_vm14, %vm1104_vm13 }
 0x207   : > { %v1332_v20 = vmul.f32 %v3992_v12, %v1297_v17  ;;  %1523 = vmatmul.bf16.gmra.mxu1 %v1407_v37  ;;  %v1281_v24 = vmul.f32 %v1096_v45, %v897_v52 }
 0x208   : > { %v1266_v54 = vsel %vm1265_vm12, %v2778_v30, %v1262_v42  ;;  %v1100_v4 = vmul.f32 0.5, %v1099_v8  ;;  %1578 = vadd.xlane.f32.xlu2 %v4135_v21  ;;  %v1641_v15 = vmul.f32 %v4135_v21, %v4135_v21 }
 0x209   : > { %v1298_v39 = vmul.f32 %v1266_v54, %v914_v5  ;;  %v1367_v2 = vadd.f32 %v4008_v46, %v1332_v20  ;;  %v1316_v13 = vmul.f32 %v3992_v12, %v1281_v24 }
 0x20a   : > { %v1101_v29 = vsub.f32 1.5, %v1100_v4  ;;  %1674 = vadd.xlane.f32.xlu1 %v1641_v15  ;;  %v1534_v59 = vpop.f32.mrf.mxu3 }
 0x20b   : > { %v1333_v26 = vmul.f32 %v3992_v12, %v1298_v39  ;;  %v4150_v18 = vadd.f32 %v4097_v49, %v1534_v59  ;;  %v1399_v31 = vmax.f32 %v1367_v2, 0.0  ;;  %v1351_v47 = vadd.f32 %v4008_v46, %v1316_v13 }
 0x20c   : > { %v1102_v35 = vmul.f32 %v2780_v43, %v1101_v29 }
 0x20d   : > { %v1368_v14 = vadd.f32 %v4008_v46, %v1333_v26  ;;  %v1656_v9 = vmul.f32 %v4150_v18, %v4150_v18  ;;  %v1383_v48 = vmax.f32 %v1351_v47, 0.0 }
 0x20e   : > { %v1106_v36 = vsel %vm1105_vm15, %v2780_v43, %v1102_v35 }
 0x20f   : > { %v1400_v30 = vmax.f32 %v1368_v14, 0.0  ;;  %v1282_v53 = vmul.f32 %v1106_v36, %v898_v0 }
 0x210   : > { %1608 = vadd.xlane.f32.xlu2 %v4150_v18 }
 0x211   : > { %v1416_v1 = vpack.c.bf16 %v1400_v30, %v1399_v31  ;;  %v1317_v50 = vmul.f32 %v3992_v12, %v1282_v53 }
 0x212   : > { %1704 = vadd.xlane.f32.xlu1 %v1656_v9  ;;  %v1536_v33 = vpop.f32.mrf.mxu3 }
 0x213   : > { %1568 = vmatmul.bf16.gmra.mxu3 %v1416_v1  ;;  %v1352_v63 = vadd.f32 %v4008_v46, %v1317_v50  ;;  %v4168_v12 = vadd.f32 %v4097_v49, %v1536_v33 }
 0x215   : > { %v1384_v16 = vmax.f32 %v1352_v63, 0.0  ;;  %v1657_v19 = vmul.f32 %v4168_v12, %v4168_v12 }
 0x216   : > { %v1499_v32 = vpop.f32.mrf.mxu1 }
 0x217   : > { %v4162_v56 = vadd.f32 %v4097_v49, %v1499_v32  ;;  %v1408_v34 = vpack.c.bf16 %v1384_v16, %v1383_v48 }
 0x219   : > { %1580 = vadd.xlane.f32.xlu0 %v4162_v56  ;;  %v1642_v11 = vmul.f32 %v4162_v56, %v4162_v56  ;;  %1528 = vmatmul.bf16.gmra.mxu1 %v1408_v34 }
 0x21b   : > { %1676 = vadd.xlane.f32.xlu2 %v1642_v11 }
 0x21e   : > { %v1501_v22 = vpop.f32.mrf.mxu1  ;;  %v1539_v51 = vpop.f32.mrf.mxu3 }
 0x21f   : > { %v4171_v46 = vadd.f32 %v4097_v49, %v1501_v22  ;;  %v4178_v27 = vadd.f32 %v4097_v49, %v1539_v51 }
 0x221   : > { %1582 = vadd.xlane.f32.xlu1 %v4171_v46  ;;  %1610 = vadd.xlane.f32.xlu0 %v4168_v12  ;;  %v1643_v38 = vmul.f32 %v4171_v46, %v4171_v46  ;;  %v1658_v25 = vmul.f32 %v4178_v27, %v4178_v27 }
 0x223   : > { %1706 = vadd.xlane.f32.xlu2 %v1657_v19 }
 0x226   : > { %v1541_v3 = vpop.f32.mrf.mxu3 }
 0x227   : > { %v4192_v7 = vadd.f32 %v4097_v49, %v1541_v3 }
 0x228   : > { %v1504_v55 = vpop.f32.mrf.mxu1 }
 0x229   : > { %1678 = vadd.xlane.f32.xlu0 %v1643_v38  ;;  %1612 = vadd.xlane.f32.xlu1 %v4178_v27  ;;  %v4184_v41 = vadd.f32 %v4097_v49, %v1504_v55  ;;  %v1659_v40 = vmul.f32 %v4192_v7, %v4192_v7 }
 0x22b   : > { %1584 = vadd.xlane.f32.xlu2 %v4184_v41  ;;  %v1644_v10 = vmul.f32 %v4184_v41, %v4184_v41 }
 0x230   : > { %v1506_v6 = vpop.f32.mrf.mxu1 }
 0x231   : > { %1708 = vadd.xlane.f32.xlu0 %v1658_v25  ;;  %1680 = vadd.xlane.f32.xlu1 %v1644_v10  ;;  %v4196_v61 = vadd.f32 %v4097_v49, %v1506_v6 }
 0x233   : > { %1614 = vadd.xlane.f32.xlu2 %v4192_v7  ;;  %v1645_v43 = vmul.f32 %v4196_v61, %v4196_v61  ;;  %v1544_v44 = vpop.f32.mrf.mxu3 }
 0x234   : > { %v4204_v60 = vadd.f32 %v4097_v49, %v1544_v44 }
 0x236   : > { %v1660_v42 = vmul.f32 %v4204_v60, %v4204_v60 }
 0x239   : > { %1586 = vadd.xlane.f32.xlu0 %v4196_v61  ;;  %1710 = vadd.xlane.f32.xlu1 %v1659_v40 }
 0x23b   : > { %1682 = vadd.xlane.f32.xlu2 %v1645_v43  ;;  %v1546_v58 = vpop.f32.mrf.mxu3 }
 0x23c   : > { %v1509_v17 = vpop.f32.mrf.mxu1  ;;  %v4216_v37 = vadd.f32 %v4097_v49, %v1546_v58 }
 0x23d   : > { %v4207_v28 = vadd.f32 %v4097_v49, %v1509_v17 }
 0x23e   : > { %v1661_v8 = vmul.f32 %v4216_v37, %v4216_v37 }
 0x23f   : > { %v1646_v23 = vmul.f32 %v4207_v28, %v4207_v28 }
 0x241   : > { %1616 = vadd.xlane.f32.xlu0 %v4204_v60  ;;  %1588 = vadd.xlane.f32.xlu1 %v4207_v28 }
 0x243   : > { %1712 = vadd.xlane.f32.xlu2 %v1660_v42 }
 0x244   : > { %v1511_v5 = vpop.f32.mrf.mxu1 }
 0x245   : > { %v4219_v20 = vadd.f32 %v4097_v49, %v1511_v5 }
 0x247   : > { %v1647_v45 = vmul.f32 %v4219_v20, %v4219_v20 }
 0x249   : > { %1684 = vadd.xlane.f32.xlu0 %v1646_v23  ;;  %1618 = vadd.xlane.f32.xlu1 %v4216_v37 }
 0x24b   : > { %1590 = vadd.xlane.f32.xlu2 %v4219_v20 }
 0x24c   : > { %v1549_v54 = vpop.f32.mrf.mxu3 }
 0x24d   : > { %v4228_v62 = vadd.f32 %v4097_v49, %v1549_v54 }
 0x24f   : > { %v1662_v4 = vmul.f32 %v4228_v62, %v4228_v62 }
 0x251   : > { %1714 = vadd.xlane.f32.xlu0 %v1661_v8  ;;  %1686 = vadd.xlane.f32.xlu1 %v1647_v45 }
 0x253   : > { %1620 = vadd.xlane.f32.xlu2 %v4228_v62 }
 0x254   : > { %v1551_v26 = vpop.f32.mrf.mxu3 }
 0x255   : > { %v4240_v2 = vadd.f32 %v4097_v49, %v1551_v26 }
 0x256   : > { %v1514_v52 = vpop.f32.mrf.mxu1 }
 0x257   : > { %v4232_v39 = vadd.f32 %v4097_v49, %v1514_v52  ;;  %v1663_v59 = vmul.f32 %v4240_v2, %v4240_v2 }
 0x259   : > { %1592 = vadd.xlane.f32.xlu0 %v4232_v39  ;;  %v1648_v15 = vmul.f32 %v4232_v39, %v4232_v39  ;;  %1716 = vadd.xlane.f32.xlu1 %v1662_v4 }
 0x25b   : > { %1688 = vadd.xlane.f32.xlu2 %v1648_v15 }
 0x25e   : > { %v1516_v24 = vpop.f32.mrf.mxu1  ;;  %v1554_v14 = vpop.f32.mrf.mxu3 }
 0x25f   : > { %v4243_v29 = vadd.f32 %v4097_v49, %v1516_v24  ;;  %v4252_v0 = vadd.f32 %v4097_v49, %v1554_v14 }
 0x261   : > { %1622 = vadd.xlane.f32.xlu0 %v4240_v2  ;;  %1594 = vadd.xlane.f32.xlu1 %v4243_v29  ;;  %v1649_v35 = vmul.f32 %v4243_v29, %v4243_v29  ;;  %v1664_v36 = vmul.f32 %v4252_v0, %v4252_v0 }
 0x263   : > { %1718 = vadd.xlane.f32.xlu2 %v1663_v59 }
 0x266   : > { %v1556_v13 = vpop.f32.mrf.mxu3 }
 0x267   : > { %v4264_v53 = vadd.f32 %v4097_v49, %v1556_v13 }
 0x268   : > { %v1519_v31 = vpop.f32.mrf.mxu1 }
 0x269   : > { %1690 = vadd.xlane.f32.xlu0 %v1649_v35  ;;  %v4255_v30 = vadd.f32 %v4097_v49, %v1519_v31  ;;  %1624 = vadd.xlane.f32.xlu1 %v4252_v0  ;;  %v1665_v11 = vmul.f32 %v4264_v53, %v4264_v53 }
 0x26b   : > { %1596 = vadd.xlane.f32.xlu2 %v4255_v30  ;;  %v1650_v1 = vmul.f32 %v4255_v30, %v4255_v30 }
 0x270   : > { %v1521_v9 = vpop.f32.mrf.mxu1 }
 0x271   : > { %1720 = vadd.xlane.f32.xlu0 %v1664_v36  ;;  %1692 = vadd.xlane.f32.xlu1 %v1650_v1  ;;  %v4270_v32 = vadd.f32 %v4097_v49, %v1521_v9 }
 0x272   : > { %v1559_v63 = vpop.f32.mrf.mxu3 }
 0x273   : > { %v1577_v50 = vpop.xlane.xlu1 %1576  ;;  %1626 = vadd.xlane.f32.xlu2 %v4264_v53  ;;  %v1651_v22 = vmul.f32 %v4270_v32, %v4270_v32  ;;  %v4282_v55 = vadd.f32 %v4097_v49, %v1559_v63  ;;  %v4309_v63 = vld [vmem:[%s4903_s7] ss:$0 sm:$0xff] }
 0x274   : > { %v4267_v47 = vmul.f32 0.0078125, %v1577_v50 }
 0x275   : > { %v1673_v48 = vpop.xlane.xlu0 %1672  ;;  %v1666_v43 = vmul.f32 %v4282_v55, %v4282_v55 }
 0x276   : > { %v1800_v16 = vmul.f32 %v4267_v47, %v4267_v47  ;;  %v1768_v34 = vmul.f32 0.0078125, %v1673_v48  ;;  %v1864_v50 = vsub.f32 %v4110_v57, %v4267_v47  ;;  %v4320_v57 = vld [vmem:[%s4904_s8] ss:$0 sm:$0xff] }
 0x278   : > { %v1832_v33 = vsub.f32 %v1768_v34, %v1800_v16 }
 0x279   : > { %1598 = vadd.xlane.f32.xlu0 %v4270_v32  ;;  %1722 = vadd.xlane.f32.xlu1 %v1665_v11 }
 0x27a   : > { %v1896_v19 = vadd.f32 1e-05, %v1832_v33  ;;  %v1561_v10 = vpop.f32.mrf.mxu3 }
 0x27b   : > { %v1579_v51 = vpop.xlane.xlu2 %1578  ;;  %1694 = vadd.xlane.f32.xlu2 %v1651_v22  ;;  %v4302_v36 = vadd.f32 %v4097_v49, %v1561_v10 }
 0x27c   : > { %2781 = vrsqrt.f32 %v1896_v19  ;;  %v4279_v38 = vmul.f32 0.0078125, %v1579_v51  ;;  %vm1934_vm1 = vweird.f32 %v1896_v19 }
 0x27d   : > { %v1675_v3 = vpop.xlane.xlu1 %1674 }
 0x27e   : > { %v1801_v25 = vmul.f32 %v4279_v38, %v4279_v38  ;;  %v1769_v6 = vmul.f32 0.0078125, %v1675_v3 }
 0x280   : > { %v1833_v40 = vsub.f32 %v1769_v6, %v1801_v25  ;;  %v1667_v25 = vmul.f32 %v4302_v36, %v4302_v36 }
 0x281   : > { %1628 = vadd.xlane.f32.xlu0 %v4282_v55 }
 0x282   : > { %v2782_v44 = vpop.eup %2781  ;;  %v1897_v17 = vadd.f32 1e-05, %v1833_v40 }
 0x283   : > { %v1929_v42 = vmul.f32 %v2782_v44, %v1896_v19  ;;  %v1609_v58 = vpop.xlane.xlu2 %1608  ;;  %1724 = vadd.xlane.f32.xlu2 %v1666_v43  ;;  %vm1935_vm0 = vweird.f32 %v2782_v44 }
 0x284   : > { %2783 = vrsqrt.f32 %v1897_v17  ;;  %v4289_v5 = vmul.f32 0.0078125, %v1609_v58  ;;  %v1524_v23 = vpop.f32.mrf.mxu1  ;;  %v1564_v15 = vpop.f32.mrf.mxu3  ;;  %vm1936_vm2 = vmor %vm1934_vm1, %vm1935_vm0  ;;  %vm1944_vm4 = vweird.f32 %v1897_v17 }
 0x285   : > { %v1930_v54 = vmul.f32 %v2782_v44, %v1929_v42  ;;  %v1705_v8 = vpop.xlane.xlu1 %1704  ;;  %v4292_v45 = vadd.f32 %v4097_v49, %v1524_v23 }
 0x286   : > { %v1816_v52 = vmul.f32 %v4289_v5, %v4289_v5  ;;  %v1784_v4 = vmul.f32 0.0078125, %v1705_v8 }
 0x287   : > { %v1931_v26 = vmul.f32 0.5, %v1930_v54  ;;  %1600 = vadd.xlane.f32.xlu1 %v4292_v45  ;;  %v1652_v24 = vmul.f32 %v4292_v45, %v4292_v45 }
 0x288   : > { %v1848_v59 = vsub.f32 %v1784_v4, %v1816_v52  ;;  %v2847_v4 = vld [vmem:[%s3203_s23] sm:$0xff] }
 0x289   : > { %v1932_v14 = vsub.f32 1.5, %v1931_v26  ;;  %1696 = vadd.xlane.f32.xlu0 %v1652_v24  ;;  %v1865_v24 = vsub.f32 %v4135_v21, %v4279_v38 }
 0x28a   : > { %v2784_v35 = vpop.eup %2783  ;;  %v4299_v31 = vadd.f32 1e-05, %v1848_v59  ;;  %v4339_v59 = vadd.f32 %v4097_v49, %v1564_v15 }
 0x28b   : > { %v1933_v13 = vmul.f32 %v2782_v44, %v1932_v14  ;;  %v1939_v1 = vmul.f32 %v2784_v35, %v1897_v17  ;;  %vm1945_vm3 = vweird.f32 %v2784_v35 }
 0x28c   : > { %v1581_v9 = vpop.xlane.xlu0 %1580  ;;  %2785 = vrsqrt.f32 %v4299_v31  ;;  %v1526_v48 = vpop.f32.mrf.mxu1  ;;  %vm1946_vm5 = vmor %vm1944_vm4, %vm1945_vm3  ;;  %vm2094_vm7 = vweird.f32 %v4299_v31 }
 0x28d   : > { %v4312_v16 = vmul.f32 0.0078125, %v1581_v9  ;;  %v1937_v34 = vsel %vm1936_vm2, %v2782_v44, %v1933_v13  ;;  %v1940_v11 = vmul.f32 %v2784_v35, %v1939_v1  ;;  %v4315_v33 = vadd.f32 %v4097_v49, %v1526_v48  ;;  %v4329_v6 = vpop.f32.mrf.mxu3 }
 0x28e   : > { %v1677_v22 = vpop.xlane.xlu2 %1676  ;;  %v2248_v47 = vmul.f32 %v1937_v34, %v1864_v50 }
 0x28f   : > { %v1802_v19 = vmul.f32 %v4312_v16, %v4312_v16  ;;  %v1770_v51 = vmul.f32 0.0078125, %v1677_v22  ;;  %v1941_v3 = vmul.f32 0.5, %v1940_v11  ;;  %1602 = vadd.xlane.f32.xlu2 %v4315_v33  ;;  %1630 = vadd.xlane.f32.xlu1 %v4302_v36  ;;  %v1653_v9 = vmul.f32 %v4315_v33, %v4315_v33 }
 0x290   : > { %v2283_v10 = vmul.f32 %v4309_v63, %v2248_v47 }
 0x291   : > { %v1834_v40 = vsub.f32 %v1770_v51, %v1802_v19  ;;  %v1942_v43 = vsub.f32 1.5, %v1941_v3  ;;  %1726 = vadd.xlane.f32.xlu0 %v1667_v25  ;;  %v1880_v25 = vsub.f32 %v4150_v18, %v4289_v5  ;;  %v1668_v18 = vmul.f32 %v4339_v59, %v4339_v59 }
 0x292   : > { %v2786_v44 = vpop.eup %2785  ;;  %v2318_v42 = vadd.f32 %v4320_v57, %v2283_v10 }
 0x293   : > { %v4332_v58 = vadd.f32 1e-05, %v1834_v40  ;;  %v1943_v23 = vmul.f32 %v2784_v35, %v1942_v43  ;;  %v2089_v54 = vmul.f32 %v2786_v44, %v4299_v31  ;;  %vm2095_vm6 = vweird.f32 %v2786_v44 }
 0x294   : > { %v1583_v8 = vpop.xlane.xlu1 %1582  ;;  %v1611_v52 = vpop.xlane.xlu0 %1610  ;;  %v2350_v26 = vadd.f32 %v2847_v4, %v2318_v42  ;;  %vm2096_vm8 = vmor %vm2094_vm7, %vm2095_vm6 }
 0x295   : > { %2787 = vrsqrt.f32 %v4332_v58  ;;  %v1947_v14 = vsel %vm1946_vm5, %v2784_v35, %v1943_v23  ;;  %v2090_v13 = vmul.f32 %v2786_v44, %v2089_v54  ;;  %v4342_v1 = vmul.f32 0.0078125, %v1611_v52  ;;  %v2848_v54 = vld [vmem:[%s3203_s23 + $0x8] sm:$0xff] }
 0x296   : > { %v1707_v17 = vpop.xlane.xlu2 %1706  ;;  %2382 = vst [vmem:[%s4348_s18] sm:$0xff] %v2350_v26  ;;  %v2249_v21 = vmul.f32 %v1947_v14, %v1865_v24  ;;  %v1529_v50 = vpop.f32.mrf.mxu1  ;;  %v4358_v11 = vmul.f32 0.0078125, %v1583_v8  ;;  %vm1954_vm10 = vweird.f32 %v4332_v58 }
 0x297   : > { %v1785_v38 = vmul.f32 0.0078125, %v1707_v17  ;;  %v2091_v15 = vmul.f32 0.5, %v2090_v13  ;;  %v1817_v48 = vmul.f32 %v4342_v1, %v4342_v1  ;;  %v4354_v35 = vadd.f32 %v4097_v49, %v1529_v50  ;;  %1698 = vadd.xlane.f32.xlu1 %v1653_v9  ;;  %1632 = vadd.xlane.f32.xlu2 %v4339_v59  ;;  %v4360_v22 = vpop.f32.mrf.mxu3 }
 0x298   : > { %v2284_v34 = vmul.f32 %v4309_v63, %v2249_v21  ;;  %v1803_v52 = vmul.f32 %v4358_v11, %v4358_v11  ;;  %v4381_v17 = vadd.f32 %v4097_v49, %v4329_v6 }
 0x299   : > { %v2092_v47 = vsub.f32 1.5, %v2091_v15  ;;  %v1849_v19 = vsub.f32 %v1785_v38, %v1817_v48  ;;  %1604 = vadd.xlane.f32.xlu0 %v4354_v35  ;;  %v1654_v31 = vmul.f32 %v4354_v35, %v4354_v35 }
 0x29a   : > { %v2319_v3 = vadd.f32 %v4320_v57, %v2284_v34 }
 0x29b   : > { %v2788_v51 = vpop.eup %2787  ;;  %v2093_v10 = vmul.f32 %v2786_v44, %v2092_v47  ;;  %v4368_v43 = vadd.f32 1e-05, %v1849_v19  ;;  %v1866_v19 = vsub.f32 %v4162_v56, %v4312_v16 }
 0x29c   : > { %v1949_v40 = vmul.f32 %v2788_v51, %v4332_v58  ;;  %v1613_v42 = vpop.xlane.xlu1 %1612  ;;  %v1679_v23 = vpop.xlane.xlu0 %1678  ;;  %v2351_v8 = vadd.f32 %v2848_v54, %v2319_v3  ;;  %vm1955_vm9 = vweird.f32 %v2788_v51 }
 0x29d   : > { %v1771_v4 = vmul.f32 0.0078125, %v1679_v23  ;;  %v2097_v5 = vsel %vm2096_vm8, %v2786_v44, %v2093_v10  ;;  %2789 = vrsqrt.f32 %v4368_v43  ;;  %v4388_v48 = vmul.f32 0.0078125, %v1613_v42  ;;  %v2849_v42 = vld [vmem:[%s3203_s23 + $0x80] sm:$0xff]  ;;  %vm1956_vm11 = vmor %vm1954_vm10, %vm1955_vm9 }
 0x29e   : > { %v1950_v26 = vmul.f32 %v2788_v51, %v1949_v40  ;;  %2383 = vst [vmem:[%s4348_s18 + $0x8] sm:$0xff] %v2351_v8  ;;  %v2264_v24 = vmul.f32 %v2097_v5, %v1880_v25  ;;  %v1585_v13 = vpop.xlane.xlu2 %1584  ;;  %v1531_v50 = vpop.f32.mrf.mxu1  ;;  %vm2104_vm13 = vweird.f32 %v4368_v43 }
 0x29f   : > { %v1835_v14 = vsub.f32 %v1771_v4, %v1803_v52  ;;  %1728 = vadd.xlane.f32.xlu1 %v1668_v18  ;;  %1700 = vadd.xlane.f32.xlu2 %v1654_v31  ;;  %v4386_v38 = vmul.f32 0.0078125, %v1585_v13  ;;  %v1571_v34 = vpop.f32.mrf.mxu3  ;;  %v4397_v25 = vadd.f32 %v4097_v49, %v1531_v50  ;;  %v1818_v16 = vmul.f32 %v4388_v48, %v4388_v48 }
 0x2a0   : > { %v1951_v9 = vmul.f32 0.5, %v1950_v26  ;;  %v2299_v21 = vmul.f32 %v4309_v63, %v2264_v24  ;;  %v4407_v58 = vadd.f32 %v4097_v49, %v1571_v34 }
 0x2a1   : > { %v4384_v44 = vadd.f32 1e-05, %v1835_v14  ;;  %1634 = vadd.xlane.f32.xlu0 %v4381_v17  ;;  %v1804_v8 = vmul.f32 %v4386_v38, %v4386_v38 }
 0x2a2   : > { %v1952_v15 = vsub.f32 1.5, %v1951_v9  ;;  %v2334_v6 = vadd.f32 %v4320_v57, %v2299_v21 }
 0x2a3   : > { %2791 = vrsqrt.f32 %v4384_v44  ;;  %v2790_v47 = vpop.eup %2789  ;;  %vm1964_vm0 = vweird.f32 %v4384_v44 }
 0x2a4   : > { %v1953_v3 = vmul.f32 %v2788_v51, %v1952_v15  ;;  %v1681_v10 = vpop.xlane.xlu1 %1680  ;;  %v1709_v40 = vpop.xlane.xlu0 %1708  ;;  %v2366_v23 = vadd.f32 %v2849_v42, %v2334_v6  ;;  %v2099_v54 = vmul.f32 %v2790_v47, %v4368_v43  ;;  %v4421_v15 = vadd.f32 %v4097_v49, %v4360_v22  ;;  %v2850_v42 = vld [vmem:[%s3203_s23 + $0x10] sm:$0xff] }
 0x2a5   : > { %v1772_v52 = vmul.f32 0.0078125, %v1681_v10  ;;  %v1786_v4 = vmul.f32 0.0078125, %v1709_v40  ;;  %vm2105_vm12 = vweird.f32 %v2790_v47  ;;  %v1669_v43 = vmul.f32 %v4381_v17, %v4381_v17 }
 0x2a6   : > { %v1957_v56 = vsel %vm1956_vm11, %v2788_v51, %v1953_v3  ;;  %2398 = vst [vmem:[%s4348_s18 + $0x80] sm:$0xff] %v2366_v23  ;;  %v2100_v5 = vmul.f32 %v2790_v47, %v2099_v54  ;;  %v1615_v31 = vpop.xlane.xlu2 %1614  ;;  %v1655_v51 = vmul.f32 %v4397_v25, %v4397_v25  ;;  %vm2106_vm14 = vmor %vm2104_vm13, %vm2105_vm12 }
 0x2a7   : > { %v2250_v18 = vmul.f32 %v1957_v56, %v1866_v19  ;;  %v1836_v26 = vsub.f32 %v1772_v52, %v1804_v8  ;;  %v1850_v24 = vsub.f32 %v1786_v4, %v1818_v16  ;;  %v4410_v14 = vmul.f32 0.0078125, %v1615_v31  ;;  %1606 = vadd.xlane.f32.xlu1 %v4397_v25  ;;  %1638 = vadd.xlane.f32.xlu2 %v4407_v58 }
 0x2a8   : > { %v2101_v21 = vmul.f32 0.5, %v2100_v5  ;;  %v1881_v56 = vsub.f32 %v4168_v12, %v4342_v1 }
 0x2a9   : > { %v2792_v13 = vpop.eup %2791  ;;  %v2285_v9 = vmul.f32 %v4309_v63, %v2250_v18  ;;  %v4417_v50 = vadd.f32 1e-05, %v1836_v26  ;;  %v4424_v34 = vadd.f32 1e-05, %v1850_v24  ;;  %1702 = vadd.xlane.f32.xlu0 %v1655_v51  ;;  %v1819_v49 = vmul.f32 %v4410_v14, %v4410_v14 }
 0x2aa   : > { %v1959_v6 = vmul.f32 %v2792_v13, %v4384_v44  ;;  %v2102_v3 = vsub.f32 1.5, %v2101_v21  ;;  %vm1965_vm15 = vweird.f32 %v2792_v13  ;;  %v1670_v26 = vmul.f32 %v4421_v15, %v4421_v15 }
 0x2ab   : > { %v2320_v19 = vadd.f32 %v4320_v57, %v2285_v9  ;;  %2793 = vrsqrt.f32 %v4417_v50  ;;  %vm1966_vm1 = vmor %vm1964_vm0, %vm1965_vm15  ;;  %vm1974_vm4 = vweird.f32 %v4417_v50  ;;  %vm2114_vm5 = vweird.f32 %v4424_v34 }
 0x2ac   : > { %v1960_v10 = vmul.f32 %v2792_v13, %v1959_v6  ;;  %2795 = vrsqrt.f32 %v4424_v34  ;;  %v1711_v22 = vpop.xlane.xlu1 %1710  ;;  %v1587_v40 = vpop.xlane.xlu0 %1586  ;;  %v2103_v54 = vmul.f32 %v2790_v47, %v2102_v3  ;;  %v1867_v3 = vsub.f32 %v4171_v46, %v4358_v11 }
 0x2ad   : > { %v2352_v23 = vadd.f32 %v2850_v42, %v2320_v19  ;;  %v1787_v8 = vmul.f32 0.0078125, %v1711_v22  ;;  %v4433_v52 = vmul.f32 0.0078125, %v1587_v40 }
 0x2ae   : > { %v1961_v16 = vmul.f32 0.5, %v1960_v10  ;;  %v2107_v4 = vsel %vm2106_vm14, %v2790_v47, %v2103_v54  ;;  %v1683_v5 = vpop.xlane.xlu2 %1682 }
 0x2af   : > { %2384 = vst [vmem:[%s4348_s18 + $0x10] sm:$0xff] %v2352_v23  ;;  %v1851_v18 = vsub.f32 %v1787_v8, %v1819_v49  ;;  %v2265_v31 = vmul.f32 %v2107_v4, %v1881_v56  ;;  %v1805_v51 = vmul.f32 %v4433_v52, %v4433_v52  ;;  %v1773_v9 = vmul.f32 0.0078125, %v1683_v5  ;;  %1636 = vadd.xlane.f32.xlu1 %v4421_v15 }
 0x2b0   : > { %v1962_v24 = vsub.f32 1.5, %v1961_v16  ;;  %1730 = vadd.xlane.f32.xlu2 %v1669_v43  ;;  %v2851_v16 = vld [vmem:[%s3203_s23 + $0x88] sm:$0xff]  ;;  %v1671_v4 = vmul.f32 %v4407_v58, %v4407_v58 }
 0x2b1   : > { %v2794_v12 = vpop.eup %2793  ;;  %v4445_v1 = vadd.f32 1e-05, %v1851_v18  ;;  %v2300_v47 = vmul.f32 %v4309_v63, %v2265_v31  ;;  %1732 = vadd.xlane.f32.xlu0 %v1670_v26  ;;  %v1837_v42 = vsub.f32 %v1773_v9, %v1805_v51  ;;  %v1868_v31 = vsub.f32 %v4184_v41, %v4386_v38  ;;  %v2852_v41 = vld [vmem:[%s3203_s23 + $0x18] sm:$0xff] }
 0x2b2   : > { %v2796_v21 = vpop.eup %2795  ;;  %v1963_v6 = vmul.f32 %v2792_v13, %v1962_v24  ;;  %v1969_v19 = vmul.f32 %v2794_v12, %v4417_v50  ;;  %vm1975_vm2 = vweird.f32 %v2794_v12 }
 0x2b3   : > { %v2109_v10 = vmul.f32 %v2796_v21, %v4424_v34  ;;  %2797 = vrsqrt.f32 %v4445_v1  ;;  %v2335_v49 = vadd.f32 %v4320_v57, %v2300_v47  ;;  %v4459_v43 = vadd.f32 1e-05, %v1837_v42  ;;  %vm1976_vm6 = vmor %vm1974_vm4, %vm1975_vm2 }
 0x2b4   : > { %v1967_v22 = vsel %vm1966_vm1, %v2792_v13, %v1963_v6  ;;  %v1970_v40 = vmul.f32 %v2794_v12, %v1969_v19  ;;  %v1617_v44 = vpop.xlane.xlu0 %1616  ;;  %v1589_v8 = vpop.xlane.xlu1 %1588  ;;  %vm2115_vm3 = vweird.f32 %v2796_v21  ;;  %vm2124_vm9 = vweird.f32 %v4445_v1 }
 0x2b5   : > { %v2251_v23 = vmul.f32 %v1967_v22, %v1867_v3  ;;  %v2110_v54 = vmul.f32 %v2796_v21, %v2109_v10  ;;  %v4456_v56 = vmul.f32 0.0078125, %v1617_v44  ;;  %v2367_v46 = vadd.f32 %v2851_v16, %v2335_v49  ;;  %vm2116_vm7 = vmor %vm2114_vm5, %vm2115_vm3 }
 0x2b6   : > { %v1971_v11 = vmul.f32 0.5, %v1970_v40  ;;  %v1713_v26 = vpop.xlane.xlu2 %1712  ;;  %2799 = vrsqrt.f32 %v4459_v43  ;;  %v4475_v49 = vmul.f32 0.0078125, %v1589_v8  ;;  %v1882_v40 = vsub.f32 %v4178_v27, %v4388_v48 }
 0x2b7   : > { %v2286_v18 = vmul.f32 %v4309_v63, %v2251_v23  ;;  %v2111_v13 = vmul.f32 0.5, %v2110_v54  ;;  %v1820_v5 = vmul.f32 %v4456_v56, %v4456_v56  ;;  %2399 = vst [vmem:[%s4348_s18 + $0x88] sm:$0xff] %v2367_v46  ;;  %1734 = vadd.xlane.f32.xlu1 %v1671_v4  ;;  %v1788_v6 = vmul.f32 0.0078125, %v1713_v26 }
 0x2b8   : > { %v1972_v24 = vsub.f32 1.5, %v1971_v11  ;;  %v1806_v27 = vmul.f32 %v4475_v49, %v4475_v49  ;;  %vm1984_vm12 = vweird.f32 %v4459_v43 }
 0x2b9   : > { %v2798_v51 = vpop.eup %2797  ;;  %v2321_v9 = vadd.f32 %v4320_v57, %v2286_v18  ;;  %v2112_v47 = vsub.f32 1.5, %v2111_v13  ;;  %v1852_v22 = vsub.f32 %v1788_v6, %v1820_v5 }
 0x2ba   : > { %v1973_v19 = vmul.f32 %v2794_v12, %v1972_v24  ;;  %v2119_v3 = vmul.f32 %v2798_v51, %v4445_v1  ;;  %vm2125_vm8 = vweird.f32 %v2798_v51 }
 0x2bb   : > { %v2353_v38 = vadd.f32 %v2852_v41, %v2321_v9  ;;  %v2113_v10 = vmul.f32 %v2796_v21, %v2112_v47  ;;  %v4480_v34 = vadd.f32 1e-05, %v1852_v22  ;;  %v1883_v41 = vsub.f32 %v4192_v7, %v4410_v14  ;;  %vm2126_vm10 = vmor %vm2124_vm9, %vm2125_vm8  ;;  %v2854_v22 = vld [vmem:[%s3203_s23 + $0x90] sm:$0xff] }
 0x2bc   : > { %v1977_v42 = vsel %vm1976_vm6, %v2794_v12, %v1973_v19  ;;  %v2120_v44 = vmul.f32 %v2798_v51, %v2119_v3  ;;  %v1685_v23 = vpop.xlane.xlu0 %1684  ;;  %v1619_v16 = vpop.xlane.xlu1 %1618  ;;  %v2853_v19 = vld [vmem:[%s3203_s23 + $0x20] sm:$0xff] }
 0x2bd   : > { %2385 = vst [vmem:[%s4348_s18 + $0x18] sm:$0xff] %v2353_v38  ;;  %v2252_v50 = vmul.f32 %v1977_v42, %v1868_v31  ;;  %v2117_v54 = vsel %vm2116_vm7, %v2796_v21, %v2113_v10  ;;  %v1774_v46 = vmul.f32 0.0078125, %v1685_v23  ;;  %v2800_v11 = vpop.eup %2799  ;;  %2801 = vrsqrt.f32 %v4480_v34 }
 0x2be   : > { %v2266_v4 = vmul.f32 %v2117_v54, %v1882_v40  ;;  %v2121_v18 = vmul.f32 0.5, %v2120_v44  ;;  %v1979_v13 = vmul.f32 %v2800_v11, %v4459_v43  ;;  %v1591_v48 = vpop.xlane.xlu2 %1590  ;;  %v4489_v31 = vmul.f32 0.0078125, %v1619_v16 }
 0x2bf   : > { %v2287_v8 = vmul.f32 %v4309_v63, %v2252_v50  ;;  %v1838_v24 = vsub.f32 %v1774_v46, %v1806_v27  ;;  %v4493_v6 = vmul.f32 0.0078125, %v1591_v48  ;;  %vm1985_vm11 = vweird.f32 %v2800_v11 }
 0x2c0   : > { %v2301_v12 = vmul.f32 %v4309_v63, %v2266_v4  ;;  %v2122_v21 = vsub.f32 1.5, %v2121_v18  ;;  %v1980_v26 = vmul.f32 %v2800_v11, %v1979_v13  ;;  %v1821_v54 = vmul.f32 %v4489_v31, %v4489_v31  ;;  %vm1986_vm13 = vmor %vm1984_vm12, %vm1985_vm11 }
 0x2c1   : > { %v2322_v5 = vadd.f32 %v4320_v57, %v2287_v8  ;;  %v4498_v10 = vadd.f32 1e-05, %v1838_v24  ;;  %v1807_v16 = vmul.f32 %v4493_v6, %v4493_v6  ;;  %v1869_v13 = vsub.f32 %v4196_v61, %v4433_v52 }
 0x2c2   : > { %v2336_v9 = vadd.f32 %v4320_v57, %v2301_v12  ;;  %v2123_v47 = vmul.f32 %v2798_v51, %v2122_v21  ;;  %v1981_v38 = vmul.f32 0.5, %v1980_v26  ;;  %vm2134_vm15 = vweird.f32 %v4480_v34 }
 0x2c3   : > { %v2354_v3 = vadd.f32 %v2853_v19, %v2322_v5  ;;  %v2802_v23 = vpop.eup %2801  ;;  %2803 = vrsqrt.f32 %v4498_v10  ;;  %v2855_v19 = vld [vmem:[%s3203_s23 + $0x98] sm:$0xff]  ;;  %vm1994_vm2 = vweird.f32 %v4498_v10 }
 0x2c4   : > { %v2368_v40 = vadd.f32 %v2854_v22, %v2336_v9  ;;  %v2127_v42 = vsel %vm2126_vm10, %v2798_v51, %v2123_v47  ;;  %v1715_v44 = vpop.xlane.xlu0 %1714  ;;  %v1982_v50 = vsub.f32 1.5, %v1981_v38  ;;  %v1687_v7 = vpop.xlane.xlu1 %1686  ;;  %v2129_v14 = vmul.f32 %v2802_v23, %v4480_v34 }
 0x2c5   : > { %2386 = vst [vmem:[%s4348_s18 + $0x20] sm:$0xff] %v2354_v3  ;;  %v2267_v1 = vmul.f32 %v2127_v42, %v1883_v41  ;;  %v1775_v46 = vmul.f32 0.0078125, %v1687_v7  ;;  %v1789_v51 = vmul.f32 0.0078125, %v1715_v44  ;;  %vm2135_vm14 = vweird.f32 %v2802_v23 }
 0x2c6   : > { %2400 = vst [vmem:[%s4348_s18 + $0x90] sm:$0xff] %v2368_v40  ;;  %v1983_v18 = vmul.f32 %v2800_v11, %v1982_v50  ;;  %v1621_v8 = vpop.xlane.xlu2 %1620  ;;  %v2130_v27 = vmul.f32 %v2802_v23, %v2129_v14  ;;  %v1884_v50 = vsub.f32 %v4204_v60, %v4456_v56  ;;  %vm2136_vm0 = vmor %vm2134_vm15, %vm2135_vm14 }
 0x2c7   : > { %v2302_v4 = vmul.f32 %v4309_v63, %v2267_v1  ;;  %v1839_v48 = vsub.f32 %v1775_v46, %v1807_v16  ;;  %v1853_v12 = vsub.f32 %v1789_v51, %v1821_v54  ;;  %v4520_v41 = vmul.f32 0.0078125, %v1621_v8  ;;  %v2856_v16 = vld [vmem:[%s3203_s23 + $0x28] sm:$0xff] }
 0x2c8   : > { %v1987_v5 = vsel %vm1986_vm13, %v2800_v11, %v1983_v18  ;;  %v2131_v24 = vmul.f32 0.5, %v2130_v27 }
 0x2c9   : > { %v2337_v21 = vadd.f32 %v4320_v57, %v2302_v4  ;;  %v2253_v26 = vmul.f32 %v1987_v5, %v1869_v13  ;;  %v4515_v9 = vadd.f32 1e-05, %v1839_v48  ;;  %v4517_v47 = vadd.f32 1e-05, %v1853_v12  ;;  %v2804_v43 = vpop.eup %2803 }
 0x2ca   : > { %v2132_v52 = vsub.f32 1.5, %v2131_v24  ;;  %v1989_v38 = vmul.f32 %v2804_v43, %v4498_v10  ;;  %v1822_v54 = vmul.f32 %v4520_v41, %v4520_v41  ;;  %vm1995_vm1 = vweird.f32 %v2804_v43  ;;  %v2857_v10 = vld [vmem:[%s3203_s23 + $0xa0] sm:$0xff] }
 0x2cb   : > { %v2369_v3 = vadd.f32 %v2855_v19, %v2337_v21  ;;  %v2288_v61 = vmul.f32 %v4309_v63, %v2253_v26  ;;  %2805 = vrsqrt.f32 %v4515_v9  ;;  %v1870_v19 = vsub.f32 %v4207_v28, %v4475_v49  ;;  %vm1996_vm3 = vmor %vm1994_vm2, %vm1995_vm1 }
 0x2cc   : > { %v1593_v22 = vpop.xlane.xlu0 %1592  ;;  %v1717_v11 = vpop.xlane.xlu1 %1716  ;;  %v2133_v44 = vmul.f32 %v2802_v23, %v2132_v52  ;;  %v1990_v1 = vmul.f32 %v2804_v43, %v1989_v38  ;;  %2807 = vrsqrt.f32 %v4517_v47  ;;  %vm2004_vm5 = vweird.f32 %v4515_v9 }
 0x2cd   : > { %2401 = vst [vmem:[%s4348_s18 + $0x98] sm:$0xff] %v2369_v3  ;;  %v4527_v40 = vmul.f32 0.0078125, %v1593_v22  ;;  %v2323_v42 = vadd.f32 %v4320_v57, %v2288_v61  ;;  %v1790_v34 = vmul.f32 0.0078125, %v1717_v11  ;;  %vm2144_vm8 = vweird.f32 %v4517_v47 }
 0x2ce   : > { %v1689_v14 = vpop.xlane.xlu2 %1688  ;;  %v2137_v51 = vsel %vm2136_vm0, %v2802_v23, %v2133_v44  ;;  %v1991_v4 = vmul.f32 0.5, %v1990_v1 }
 0x2cf   : > { %v1808_v7 = vmul.f32 %v4527_v40, %v4527_v40  ;;  %v2355_v46 = vadd.f32 %v2856_v16, %v2323_v42  ;;  %v1776_v18 = vmul.f32 0.0078125, %v1689_v14  ;;  %v2268_v8 = vmul.f32 %v2137_v51, %v1884_v50 }
 0x2d0   : > { %v1854_v13 = vsub.f32 %v1790_v34, %v1822_v54  ;;  %v1992_v27 = vsub.f32 1.5, %v1991_v4  ;;  %v1885_v54 = vsub.f32 %v4216_v37, %v4489_v31 }
 0x2d1   : > { %2387 = vst [vmem:[%s4348_s18 + $0x28] sm:$0xff] %v2355_v46  ;;  %v1840_v60 = vsub.f32 %v1776_v18, %v1808_v7  ;;  %v2806_v56 = vpop.eup %2805  ;;  %v2303_v48 = vmul.f32 %v4309_v63, %v2268_v8 }
 0x2d2   : > { %v4540_v12 = vadd.f32 1e-05, %v1854_v13  ;;  %v2808_v21 = vpop.eup %2807  ;;  %v1993_v5 = vmul.f32 %v2804_v43, %v1992_v27  ;;  %v1999_v23 = vmul.f32 %v2806_v56, %v4515_v9  ;;  %vm2005_vm4 = vweird.f32 %v2806_v56  ;;  %v2858_v13 = vld [vmem:[%s3203_s23 + $0x30] sm:$0xff] }
 0x2d3   : > { %v4544_v26 = vadd.f32 1e-05, %v1840_v60  ;;  %v2338_v3 = vadd.f32 %v4320_v57, %v2303_v48  ;;  %v2139_v61 = vmul.f32 %v2808_v21, %v4517_v47  ;;  %vm2145_vm6 = vweird.f32 %v2808_v21  ;;  %vm2006_vm7 = vmor %vm2004_vm5, %vm2005_vm4 }
 0x2d4   : > { %v1623_v24 = vpop.xlane.xlu0 %1622  ;;  %2809 = vrsqrt.f32 %v4540_v12  ;;  %v1595_v52 = vpop.xlane.xlu1 %1594  ;;  %v1997_v38 = vsel %vm1996_vm3, %v2804_v43, %v1993_v5  ;;  %v2000_v22 = vmul.f32 %v2806_v56, %v1999_v23  ;;  %v1871_v43 = vsub.f32 %v4219_v20, %v4493_v6  ;;  %vm2146_vm9 = vmor %vm2144_vm8, %vm2145_vm6 }
 0x2d5   : > { %2811 = vrsqrt.f32 %v4544_v26  ;;  %v2370_v11 = vadd.f32 %v2857_v10, %v2338_v3  ;;  %v2254_v42 = vmul.f32 %v1997_v38, %v1870_v19  ;;  %v2140_v44 = vmul.f32 %v2808_v21, %v2139_v61 }
 0x2d6   : > { %v1719_v1 = vpop.xlane.xlu2 %1718  ;;  %v2001_v50 = vmul.f32 0.5, %v2000_v22  ;;  %v4553_v28 = vmul.f32 0.0078125, %v1623_v24  ;;  %v4571_v20 = vmul.f32 0.0078125, %v1595_v52  ;;  %v1886_v23 = vsub.f32 %v4228_v62, %v4520_v41 }
 0x2d7   : > { %v1791_v49 = vmul.f32 0.0078125, %v1719_v1  ;;  %2402 = vst [vmem:[%s4348_s18 + $0xa0] sm:$0xff] %v2370_v11  ;;  %v2289_v34 = vmul.f32 %v4309_v63, %v2254_v42  ;;  %v2141_v7 = vmul.f32 0.5, %v2140_v44  ;;  %v1872_v41 = vsub.f32 %v4232_v39, %v4527_v40 }
 0x2d8   : > { %v2002_v14 = vsub.f32 1.5, %v2001_v50  ;;  %v1823_v16 = vmul.f32 %v4553_v28, %v4553_v28  ;;  %vm2154_vm11 = vweird.f32 %v4540_v12  ;;  %vm2014_vm14 = vweird.f32 %v4544_v26 }
 0x2d9   : > { %v2324_v51 = vadd.f32 %v4320_v57, %v2289_v34  ;;  %v2142_v4 = vsub.f32 1.5, %v2141_v7 }
 0x2da   : > { %v4563_v46 = vpop.eup %2809  ;;  %v2003_v31 = vmul.f32 %v2806_v56, %v2002_v14  ;;  %v1855_v6 = vsub.f32 %v1791_v49, %v1823_v16 }
 0x2db   : > { %v4567_v37 = vpop.eup %2811  ;;  %v2149_v18 = vmul.f32 %v4563_v46, %v4540_v12  ;;  %v2356_v27 = vadd.f32 %v2858_v13, %v2324_v51  ;;  %v2143_v60 = vmul.f32 %v2808_v21, %v2142_v4  ;;  %vm2155_vm10 = vweird.f32 %v4563_v46 }
 0x2dc   : > { %v1691_v8 = vpop.xlane.xlu0 %1690  ;;  %v2009_v9 = vmul.f32 %v4567_v37, %v4544_v26  ;;  %v1625_v48 = vpop.xlane.xlu1 %1624  ;;  %v2007_v5 = vsel %vm2006_vm7, %v2806_v56, %v2003_v31  ;;  %v4582_v19 = vadd.f32 1e-05, %v1855_v6  ;;  %v1809_v56 = vmul.f32 %v4571_v20, %v4571_v20  ;;  %vm2156_vm13 = vmor %vm2154_vm11, %vm2155_vm10  ;;  %v2860_v31 = vld [vmem:[%s3203_s23 + $0xa8] sm:$0xff] }
 0x2dd   : > { %v2150_v24 = vmul.f32 %v4563_v46, %v2149_v18  ;;  %2388 = vst [vmem:[%s4348_s18 + $0x30] sm:$0xff] %v2356_v27  ;;  %v2255_v3 = vmul.f32 %v2007_v5, %v1871_v43  ;;  %v2147_v61 = vsel %vm2146_vm9, %v2808_v21, %v2143_v60  ;;  %v1777_v47 = vmul.f32 0.0078125, %v1691_v8  ;;  %v2859_v43 = vld [vmem:[%s3203_s23 + $0x38] sm:$0xff] }
 0x2de   : > { %v2010_v52 = vmul.f32 %v4567_v37, %v2009_v9  ;;  %v1597_v38 = vpop.xlane.xlu2 %1596  ;;  %v2269_v22 = vmul.f32 %v2147_v61, %v1885_v54  ;;  %2813 = vrsqrt.f32 %v4582_v19  ;;  %v4594_v44 = vmul.f32 0.0078125, %v1625_v48 }
 0x2df   : > { %v2151_v10 = vmul.f32 0.5, %v2150_v24  ;;  %v2290_v62 = vmul.f32 %v4309_v63, %v2255_v3  ;;  %v1841_v1 = vsub.f32 %v1777_v47, %v1809_v56  ;;  %vm2015_vm12 = vweird.f32 %v4567_v37 }
 0x2e0   : > { %v2011_v21 = vmul.f32 0.5, %v2010_v52  ;;  %v2304_v11 = vmul.f32 %v4309_v63, %v2269_v22  ;;  %v4603_v40 = vmul.f32 0.0078125, %v1597_v38  ;;  %vm2016_vm15 = vmor %vm2014_vm14, %vm2015_vm12  ;;  %v1824_v8 = vmul.f32 %v4594_v44, %v4594_v44 }
 0x2e1   : > { %v2152_v42 = vsub.f32 1.5, %v2151_v10  ;;  %v2325_v50 = vadd.f32 %v4320_v57, %v2290_v62  ;;  %v4601_v39 = vadd.f32 1e-05, %v1841_v1  ;;  %vm2164_vm1 = vweird.f32 %v4582_v19 }
 0x2e2   : > { %v2012_v49 = vsub.f32 1.5, %v2011_v21  ;;  %v2339_v54 = vadd.f32 %v4320_v57, %v2304_v11 }
 0x2e3   : > { %v2153_v34 = vmul.f32 %v4563_v46, %v2152_v42  ;;  %v2357_v14 = vadd.f32 %v2859_v43, %v2325_v50  ;;  %2815 = vrsqrt.f32 %v4601_v39  ;;  %v2862_v50 = vld [vmem:[%s3203_s23 + $0x40] sm:$0xff]  ;;  %vm2024_vm4 = vweird.f32 %v4601_v39 }
 0x2e4   : > { %v1721_v7 = vpop.xlane.xlu0 %1720  ;;  %v2013_v12 = vmul.f32 %v4567_v37, %v2012_v49  ;;  %v1693_v16 = vpop.xlane.xlu1 %1692  ;;  %v2371_v18 = vadd.f32 %v2860_v31, %v2339_v54 }
 0x2e5   : > { %v1792_v51 = vmul.f32 0.0078125, %v1721_v7  ;;  %v2814_v4 = vpop.eup %2813  ;;  %v2157_v6 = vsel %vm2156_vm13, %v4563_v46, %v2153_v34  ;;  %2389 = vst [vmem:[%s4348_s18 + $0x38] sm:$0xff] %v2357_v14  ;;  %v1810_v46 = vmul.f32 %v4603_v40, %v4603_v40  ;;  %v1778_v48 = vmul.f32 0.0078125, %v1693_v16 }
 0x2e6   : > { %v2270_v13 = vmul.f32 %v2157_v6, %v1886_v23  ;;  %v2017_v27 = vsel %vm2016_vm15, %v4567_v37, %v2013_v12  ;;  %v2159_v26 = vmul.f32 %v2814_v4, %v4582_v19  ;;  %v1627_v60 = vpop.xlane.xlu2 %1626  ;;  %2403 = vst [vmem:[%s4348_s18 + $0xa8] sm:$0xff] %v2371_v18  ;;  %vm2165_vm0 = vweird.f32 %v2814_v4 }
 0x2e7   : > { %v2256_v9 = vmul.f32 %v2017_v27, %v1872_v41  ;;  %v1856_v5 = vsub.f32 %v1792_v51, %v1824_v8  ;;  %v1842_v52 = vsub.f32 %v1778_v48, %v1810_v46  ;;  %v4627_v37 = vmul.f32 0.0078125, %v1627_v60  ;;  %v2861_v41 = vld [vmem:[%s3203_s23 + $0xb0] sm:$0xff]  ;;  %vm2166_vm2 = vmor %vm2164_vm1, %vm2165_vm0 }
 0x2e8   : > { %v2305_v24 = vmul.f32 %v4309_v63, %v2270_v13  ;;  %v2160_v3 = vmul.f32 %v2814_v4, %v2159_v26  ;;  %v1887_v16 = vsub.f32 %v4240_v2, %v4553_v28 }
 0x2e9   : > { %v2291_v61 = vmul.f32 %v4309_v63, %v2256_v9  ;;  %v4625_v23 = vadd.f32 1e-05, %v1856_v5  ;;  %v2816_v22 = vpop.eup %2815  ;;  %v4631_v56 = vadd.f32 1e-05, %v1842_v52  ;;  %v1825_v54 = vmul.f32 %v4627_v37, %v4627_v37 }
 0x2ea   : > { %v2340_v47 = vadd.f32 %v4320_v57, %v2305_v24  ;;  %v2161_v38 = vmul.f32 0.5, %v2160_v3  ;;  %v2019_v42 = vmul.f32 %v2816_v22, %v4601_v39  ;;  %vm2025_vm3 = vweird.f32 %v2816_v22 }
 0x2eb   : > { %v2326_v10 = vadd.f32 %v4320_v57, %v2291_v61  ;;  %2817 = vrsqrt.f32 %v4625_v23  ;;  %v1873_v24 = vsub.f32 %v4243_v29, %v4571_v20  ;;  %vm2026_vm5 = vmor %vm2024_vm4, %vm2025_vm3  ;;  %vm2174_vm7 = vweird.f32 %v4625_v23 }
 0x2ec   : > { %v1599_v62 = vpop.xlane.xlu0 %1598  ;;  %v2372_v21 = vadd.f32 %v2861_v41, %v2340_v47  ;;  %v2162_v11 = vsub.f32 1.5, %v2161_v38  ;;  %v1723_v1 = vpop.xlane.xlu1 %1722  ;;  %2819 = vrsqrt.f32 %v4631_v56  ;;  %v2020_v43 = vmul.f32 %v2816_v22, %v2019_v42  ;;  %v2863_v41 = vld [vmem:[%s3203_s23 + $0xb8] sm:$0xff] }
 0x2ed   : > { %v2358_v49 = vadd.f32 %v2862_v50, %v2326_v10  ;;  %v1793_v34 = vmul.f32 0.0078125, %v1723_v1  ;;  %v4642_v14 = vmul.f32 0.0078125, %v1599_v62  ;;  %vm2034_vm10 = vweird.f32 %v4631_v56 }
 0x2ee   : > { %2404 = vst [vmem:[%s4348_s18 + $0xb0] sm:$0xff] %v2372_v21  ;;  %v2163_v7 = vmul.f32 %v2814_v4, %v2162_v11  ;;  %v1695_v12 = vpop.xlane.xlu2 %1694  ;;  %v2021_v6 = vmul.f32 0.5, %v2020_v43 }
 0x2ef   : > { %2390 = vst [vmem:[%s4348_s18 + $0x40] sm:$0xff] %v2358_v49  ;;  %v1857_v51 = vsub.f32 %v1793_v34, %v1825_v54  ;;  %v1779_v31 = vmul.f32 0.0078125, %v1695_v12  ;;  %v1811_v8 = vmul.f32 %v4642_v14, %v4642_v14 }
 0x2f0   : > { %v2167_v18 = vsel %vm2166_vm2, %v2814_v4, %v2163_v7  ;;  %v2022_v26 = vsub.f32 1.5, %v2021_v6  ;;  %v1888_v7 = vsub.f32 %v4252_v0, %v4594_v44  ;;  %v1874_v0 = vsub.f32 %v4255_v30, %v4603_v40 }
 0x2f1   : > { %v2818_v13 = vpop.eup %2817  ;;  %v2271_v27 = vmul.f32 %v2167_v18, %v1887_v16  ;;  %v4650_v19 = vadd.f32 1e-05, %v1857_v51  ;;  %v1843_v9 = vsub.f32 %v1779_v31, %v1811_v8  ;;  %v2864_v8 = vld [vmem:[%s3203_s23 + $0x48] sm:$0xff] }
 0x2f2   : > { %v2169_v60 = vmul.f32 %v2818_v13, %v4625_v23  ;;  %v2820_v46 = vpop.eup %2819  ;;  %v2023_v4 = vmul.f32 %v2816_v22, %v2022_v26  ;;  %vm2175_vm6 = vweird.f32 %v2818_v13 }
 0x2f3   : > { %v2306_v2 = vmul.f32 %v4309_v63, %v2271_v27  ;;  %2821 = vrsqrt.f32 %v4650_v19  ;;  %v2029_v48 = vmul.f32 %v2820_v46, %v4631_v56  ;;  %v4660_v61 = vadd.f32 1e-05, %v1843_v9  ;;  %vm2176_vm9 = vmor %vm2174_vm7, %vm2175_vm6 }
 0x2f4   : > { %v1629_v28 = vpop.xlane.xlu0 %1628  ;;  %v2170_v5 = vmul.f32 %v2818_v13, %v2169_v60  ;;  %v2027_v47 = vsel %vm2026_vm5, %v2816_v22, %v2023_v4  ;;  %vm2035_vm8 = vweird.f32 %v2820_v46  ;;  %vm2184_vm13 = vweird.f32 %v4650_v19 }
 0x2f5   : > { %v2341_v3 = vadd.f32 %v4320_v57, %v2306_v2  ;;  %v4662_v52 = vmul.f32 0.0078125, %v1629_v28  ;;  %v2030_v38 = vmul.f32 %v2820_v46, %v2029_v48  ;;  %v2257_v21 = vmul.f32 %v2027_v47, %v1873_v24  ;;  %vm2036_vm11 = vmor %vm2034_vm10, %vm2035_vm8 }
 0x2f6   : > { %v2171_v10 = vmul.f32 0.5, %v2170_v5  ;;  %v1725_v62 = vpop.xlane.xlu2 %1724  ;;  %2823 = vrsqrt.f32 %v4660_v61  ;;  %vm2044_vm0 = vweird.f32 %v4660_v61 }
 0x2f7   : > { %v2373_v39 = vadd.f32 %v2863_v41, %v2341_v3  ;;  %v2031_v11 = vmul.f32 0.5, %v2030_v38  ;;  %v1826_v29 = vmul.f32 %v4662_v52, %v4662_v52  ;;  %v2292_v1 = vmul.f32 %v4309_v63, %v2257_v21  ;;  %v2867_v41 = vld [vmem:[%s3203_s23 + $0xc0] sm:$0xff] }
 0x2f8   : > { %v2172_v42 = vsub.f32 1.5, %v2171_v10  ;;  %v1794_v22 = vmul.f32 0.0078125, %v1725_v62  ;;  %v4707_v10 = vld [vmem:[%s4904_s8] ss:$0 sm:$0xff] }
 0x2f9   : > { %v4668_v20 = vpop.eup %2821  ;;  %2405 = vst [vmem:[%s4348_s18 + $0xb8] sm:$0xff] %v2373_v39  ;;  %v2032_v50 = vsub.f32 1.5, %v2031_v11  ;;  %v2327_v43 = vadd.f32 %v4320_v57, %v2292_v1 }
 0x2fa   : > { %v2173_v49 = vmul.f32 %v2818_v13, %v2172_v42  ;;  %v2179_v54 = vmul.f32 %v4668_v20, %v4650_v19  ;;  %v1601_v34 = vpop.xlane.xlu1 %1600  ;;  %v1858_v12 = vsub.f32 %v1794_v22, %v1826_v29  ;;  %vm2185_vm12 = vweird.f32 %v4668_v20  ;;  %v2868_v22 = vld [vmem:[%s3203_s23 + $0x50] sm:$0xff] }
 0x2fb   : > { %v4678_v16 = vmul.f32 0.0078125, %v1601_v34  ;;  %v2033_v51 = vmul.f32 %v2820_v46, %v2032_v50  ;;  %v2359_v27 = vadd.f32 %v2864_v8, %v2327_v43  ;;  %vm2186_vm14 = vmor %vm2184_vm13, %vm2185_vm12 }
 0x2fc   : > { %v2177_v23 = vsel %vm2176_vm9, %v2818_v13, %v2173_v49  ;;  %v2180_v31 = vmul.f32 %v4668_v20, %v2179_v54  ;;  %v1697_v18 = vpop.xlane.xlu0 %1696  ;;  %v2824_v6 = vpop.eup %2823  ;;  %v4686_v26 = vadd.f32 1e-05, %v1858_v12 }
 0x2fd   : > { %v2272_v44 = vmul.f32 %v2177_v23, %v1888_v7  ;;  %v2037_v60 = vsel %vm2036_vm11, %v2820_v46, %v2033_v51  ;;  %v2039_v2 = vmul.f32 %v2824_v6, %v4660_v61  ;;  %v1812_v56 = vmul.f32 %v4678_v16, %v4678_v16  ;;  %2391 = vst [vmem:[%s4348_s18 + $0x48] sm:$0xff] %v2359_v27  ;;  %v4698_v46 = vld [vmem:[%s4903_s7] ss:$0 sm:$0xff] }
 0x2fe   : > { %v2181_v9 = vmul.f32 0.5, %v2180_v31  ;;  %v2258_v13 = vmul.f32 %v2037_v60, %v1874_v0  ;;  %2825 = vrsqrt.f32 %v4686_v26  ;;  %v1780_v4 = vmul.f32 0.0078125, %v1697_v18  ;;  %v2869_v0 = vld [vmem:[%s3203_s23 + $0xc8] sm:$0xff] }
 0x2ff   : > { %v2307_v28 = vmul.f32 %v4309_v63, %v2272_v44  ;;  %v2040_v40 = vmul.f32 %v2824_v6, %v2039_v2  ;;  %vm2045_vm15 = vweird.f32 %v2824_v6  ;;  %vm2194_vm3 = vweird.f32 %v4686_v26 }
 0x300   : > { %v2182_v30 = vsub.f32 1.5, %v2181_v9  ;;  %v2293_v48 = vmul.f32 %v4698_v46, %v2258_v13  ;;  %v1844_v3 = vsub.f32 %v1780_v4, %v1812_v56  ;;  %vm2046_vm1 = vmor %vm2044_vm0, %vm2045_vm15  ;;  %v2870_v4 = vld [vmem:[%s3203_s23 + $0x58] sm:$0xff] }
 0x301   : > { %v2342_v5 = vadd.f32 %v4320_v57, %v2307_v28  ;;  %v2041_v63 = vmul.f32 0.5, %v2040_v40  ;;  %v1889_v57 = vsub.f32 %v4264_v53, %v4627_v37 }
 0x302   : > { %v2183_v24 = vmul.f32 %v4668_v20, %v2182_v30  ;;  %v1603_v47 = vpop.xlane.xlu2 %1602  ;;  %v1631_v38 = vpop.xlane.xlu1 %1630  ;;  %v2328_v62 = vadd.f32 %v4707_v10, %v2293_v48  ;;  %v4718_v42 = vadd.f32 1e-05, %v1844_v3 }
 0x303   : > { %v2374_v39 = vadd.f32 %v2867_v41, %v2342_v5  ;;  %v4715_v19 = vmul.f32 0.0078125, %v1631_v38  ;;  %v2042_v11 = vsub.f32 1.5, %v2041_v63  ;;  %v4730_v34 = vmul.f32 0.0078125, %v1603_v47 }
 0x304   : > { %v2187_v21 = vsel %vm2186_vm14, %v4668_v20, %v2183_v24  ;;  %v1727_v29 = vpop.xlane.xlu0 %1726  ;;  %v2826_v1 = vpop.eup %2825  ;;  %v2360_v50 = vadd.f32 %v2868_v22, %v2328_v62  ;;  %2827 = vrsqrt.f32 %v4718_v42  ;;  %v1875_v20 = vsub.f32 %v4270_v32, %v4642_v14 }
 0x305   : > { %2406 = vst [vmem:[%s4348_s18 + $0xc0] sm:$0xff] %v2374_v39  ;;  %v2273_v49 = vmul.f32 %v2187_v21, %v1889_v57  ;;  %v2043_v54 = vmul.f32 %v2824_v6, %v2042_v11  ;;  %v2189_v53 = vmul.f32 %v2826_v1, %v4686_v26  ;;  %v1827_v7 = vmul.f32 %v4715_v19, %v4715_v19 }
 0x306   : > { %2392 = vst [vmem:[%s4348_s18 + $0x50] sm:$0xff] %v2360_v50  ;;  %v1795_v12 = vmul.f32 0.0078125, %v1727_v29  ;;  %v1813_v44 = vmul.f32 %v4730_v34, %v4730_v34  ;;  %vm2195_vm2 = vweird.f32 %v2826_v1  ;;  %v1890_v5 = vsub.f32 %v4282_v55, %v4662_v52 }
 0x307   : > { %v2308_v37 = vmul.f32 %v4698_v46, %v2273_v49  ;;  %v2047_v43 = vsel %vm2046_vm1, %v2824_v6, %v2043_v54  ;;  %v2190_v61 = vmul.f32 %v2826_v1, %v2189_v53  ;;  %vm2196_vm4 = vmor %vm2194_vm3, %vm2195_vm2  ;;  %vm2054_vm6 = vweird.f32 %v4718_v42 }
 0x308   : > { %v2259_v23 = vmul.f32 %v2047_v43, %v1875_v20  ;;  %v1859_v18 = vsub.f32 %v1795_v12, %v1827_v7  ;;  %v1876_v53 = vsub.f32 %v4292_v45, %v4678_v16  ;;  %v2871_v43 = vld [vmem:[%s3203_s23 + $0xd0] sm:$0xff] }
 0x309   : > { %v2343_v51 = vadd.f32 %v4707_v10, %v2308_v37  ;;  %v2191_v31 = vmul.f32 0.5, %v2190_v61 }
 0x30a   : > { %v1699_v8 = vpop.xlane.xlu1 %1698  ;;  %v1633_v27 = vpop.xlane.xlu2 %1632  ;;  %v2294_v14 = vmul.f32 %v4698_v46, %v2259_v23  ;;  %v4739_v2 = vadd.f32 1e-05, %v1859_v18 }
 0x30b   : > { %v2375_v32 = vadd.f32 %v2869_v0, %v2343_v51  ;;  %v1781_v60 = vmul.f32 0.0078125, %v1699_v8  ;;  %v2828_v6 = vpop.eup %2827  ;;  %v2192_v9 = vsub.f32 1.5, %v2191_v31  ;;  %v4751_v47 = vmul.f32 0.0078125, %v1633_v27 }
 0x30c   : > { %v1605_v56 = vpop.xlane.xlu0 %1604  ;;  %v2329_v13 = vadd.f32 %v4707_v10, %v2294_v14  ;;  %v2049_v28 = vmul.f32 %v2828_v6, %v4718_v42  ;;  %2829 = vrsqrt.f32 %v4739_v2  ;;  %vm2055_vm5 = vweird.f32 %v2828_v6 }
 0x30d   : > { %2407 = vst [vmem:[%s4348_s18 + $0xc8] sm:$0xff] %v2375_v32  ;;  %v1845_v30 = vsub.f32 %v1781_v60, %v1813_v44  ;;  %v2193_v40 = vmul.f32 %v2826_v1, %v2192_v9  ;;  %v4753_v38 = vmul.f32 0.0078125, %v1605_v56  ;;  %v1828_v29 = vmul.f32 %v4751_v47, %v4751_v47  ;;  %vm2056_vm7 = vmor %vm2054_vm6, %vm2055_vm5 }
 0x30e   : > { %v2361_v48 = vadd.f32 %v2870_v4, %v2329_v13  ;;  %v2050_v24 = vmul.f32 %v2828_v6, %v2049_v28  ;;  %vm2204_vm9 = vweird.f32 %v4739_v2  ;;  %v2872_v28 = vld [vmem:[%s3203_s23 + $0x60] sm:$0xff] }
 0x30f   : > { %v4749_v63 = vadd.f32 1e-05, %v1845_v30  ;;  %v2197_v3 = vsel %vm2196_vm4, %v2826_v1, %v2193_v40  ;;  %v1814_v1 = vmul.f32 %v4753_v38, %v4753_v38  ;;  %v1891_v40 = vsub.f32 %v4302_v36, %v4715_v19 }
 0x310   : > { %2393 = vst [vmem:[%s4348_s18 + $0x58] sm:$0xff] %v2361_v48  ;;  %v2274_v62 = vmul.f32 %v2197_v3, %v1890_v5  ;;  %v2051_v41 = vmul.f32 0.5, %v2050_v24 }
 0x311   : > { %2831 = vrsqrt.f32 %v4749_v63  ;;  %vm2064_vm12 = vweird.f32 %v4749_v63 }
 0x312   : > { %v1729_v26 = vpop.xlane.xlu1 %1728  ;;  %v1701_v39 = vpop.xlane.xlu2 %1700  ;;  %v2309_v57 = vmul.f32 %v4698_v46, %v2274_v62  ;;  %v2052_v55 = vsub.f32 1.5, %v2051_v41  ;;  %v1877_v41 = vsub.f32 %v4315_v33, %v4730_v34 }
 0x313   : > { %v1796_v52 = vmul.f32 0.0078125, %v1729_v26  ;;  %v1782_v21 = vmul.f32 0.0078125, %v1701_v39  ;;  %v2830_v11 = vpop.eup %2829 }
 0x314   : > { %v1635_v22 = vpop.xlane.xlu0 %1634  ;;  %v2344_v50 = vadd.f32 %v4707_v10, %v2309_v57  ;;  %v2053_v49 = vmul.f32 %v2828_v6, %v2052_v55  ;;  %v2199_v54 = vmul.f32 %v2830_v11, %v4739_v2  ;;  %vm2205_vm8 = vweird.f32 %v2830_v11 }
 0x315   : > { %v1860_v37 = vsub.f32 %v1796_v52, %v1828_v29  ;;  %v1846_v20 = vsub.f32 %v1782_v21, %v1814_v1  ;;  %vm2206_vm10 = vmor %vm2204_vm9, %vm2205_vm8  ;;  %v4792_v39 = vmul.f32 0.0078125, %v1635_v22 }
 0x316   : > { %v2376_v61 = vadd.f32 %v2871_v43, %v2344_v50  ;;  %v2057_v12 = vsel %vm2056_vm7, %v2828_v6, %v2053_v49  ;;  %v2200_v51 = vmul.f32 %v2830_v11, %v2199_v54 }
 0x317   : > { %v2832_v7 = vpop.eup %2831  ;;  %v2260_v23 = vmul.f32 %v2057_v12, %v1876_v53  ;;  %v4770_v18 = vadd.f32 1e-05, %v1860_v37  ;;  %v4773_v8 = vadd.f32 1e-05, %v1846_v20  ;;  %v1829_v53 = vmul.f32 %v4792_v39, %v4792_v39 }
 0x318   : > { %v2059_v31 = vmul.f32 %v2832_v7, %v4749_v63  ;;  %2408 = vst [vmem:[%s4348_s18 + $0xd0] sm:$0xff] %v2376_v61  ;;  %v2201_v42 = vmul.f32 0.5, %v2200_v51  ;;  %vm2065_vm11 = vweird.f32 %v2832_v7 }
 0x319   : > { %v2295_v45 = vmul.f32 %v4698_v46, %v2260_v23  ;;  %2833 = vrsqrt.f32 %v4770_v18  ;;  %vm2066_vm13 = vmor %vm2064_vm12, %vm2065_vm11  ;;  %v1878_v23 = vsub.f32 %v4354_v35, %v4753_v38  ;;  %vm2214_vm0 = vweird.f32 %v4770_v18 }
 0x31a   : > { %v2060_v16 = vmul.f32 %v2832_v7, %v2059_v31  ;;  %v1607_v27 = vpop.xlane.xlu1 %1606  ;;  %v1639_v0 = vpop.xlane.xlu2 %1638  ;;  %v2202_v32 = vsub.f32 1.5, %v2201_v42  ;;  %2835 = vrsqrt.f32 %v4773_v8  ;;  %vm2074_vm2 = vweird.f32 %v4773_v8 }
 0x31b   : > { %v4778_v14 = vmul.f32 0.0078125, %v1607_v27  ;;  %v2330_v44 = vadd.f32 %v4707_v10, %v2295_v45 }
 0x31c   : > { %v2061_v60 = vmul.f32 0.5, %v2060_v16  ;;  %v1703_v6 = vpop.xlane.xlu0 %1702  ;;  %v2203_v9 = vmul.f32 %v2830_v11, %v2202_v32  ;;  %v2874_v16 = vld [vmem:[%s3203_s23 + $0x68] sm:$0xff] }
 0x31d   : > { %v1815_v56 = vmul.f32 %v4778_v14, %v4778_v14  ;;  %v1783_v13 = vmul.f32 0.0078125, %v1703_v6  ;;  %v2362_v30 = vadd.f32 %v2872_v28, %v2330_v44 }
 0x31e   : > { %v2062_v4 = vsub.f32 1.5, %v2061_v60  ;;  %v2207_v48 = vsel %vm2206_vm10, %v2830_v11, %v2203_v9  ;;  %v1892_v11 = vsub.f32 %v4339_v59, %v4751_v47  ;;  %v2873_v59 = vld [vmem:[%s3203_s23 + $0xd8] sm:$0xff] }
 0x31f   : > { %v1847_v5 = vsub.f32 %v1783_v13, %v1815_v56  ;;  %v2834_v24 = vpop.eup %2833  ;;  %2394 = vst [vmem:[%s4348_s18 + $0x60] sm:$0xff] %v2362_v30  ;;  %v2275_v3 = vmul.f32 %v2207_v48, %v1891_v40 }
 0x320   : > { %v2063_v62 = vmul.f32 %v2832_v7, %v2062_v4  ;;  %v2836_v2 = vpop.eup %2835  ;;  %v2209_v26 = vmul.f32 %v2834_v24, %v4770_v18  ;;  %vm2215_vm14 = vweird.f32 %v2834_v24 }
 0x321   : > { %v4794_v36 = vadd.f32 1e-05, %v1847_v5  ;;  %v2310_v19 = vmul.f32 %v4698_v46, %v2275_v3  ;;  %v2069_v55 = vmul.f32 %v2836_v2, %v4773_v8  ;;  %vm2075_vm15 = vweird.f32 %v2836_v2  ;;  %vm2216_vm1 = vmor %vm2214_vm0, %vm2215_vm14 }
 0x322   : > { %v2067_v57 = vsel %vm2066_vm13, %v2832_v7, %v2063_v62  ;;  %v1637_v52 = vpop.xlane.xlu1 %1636  ;;  %v2210_v33 = vmul.f32 %v2834_v24, %v2209_v26  ;;  %v4808_v7 = vmul.f32 0.0078125, %v1639_v0  ;;  %vm2076_vm3 = vmor %vm2074_vm2, %vm2075_vm15  ;;  %v2875_v26 = vld [vmem:[%s3203_s23 + $0xe0] sm:$0xff] }
 0x323   : > { %v1731_v21 = vpop.xlane.xlu2 %1730  ;;  %v2261_v63 = vmul.f32 %v2067_v57, %v1877_v41  ;;  %2837 = vrsqrt.f32 %v4794_v36  ;;  %v2345_v34 = vadd.f32 %v4707_v10, %v2310_v19  ;;  %v2070_v29 = vmul.f32 %v2836_v2, %v2069_v55 }
 0x324   : > { %v4802_v1 = vmul.f32 0.0078125, %v1637_v52  ;;  %v1797_v22 = vmul.f32 0.0078125, %v1731_v21  ;;  %v1733_v50 = vpop.xlane.xlu0 %1732  ;;  %v2211_v54 = vmul.f32 0.5, %v2210_v33  ;;  %v1831_v9 = vmul.f32 %v4808_v7, %v4808_v7  ;;  %v2876_v52 = vld [vmem:[%s3203_s23 + $0x70] sm:$0xff] }
 0x325   : > { %v2296_v49 = vmul.f32 %v4698_v46, %v2261_v63  ;;  %v1798_v37 = vmul.f32 0.0078125, %v1733_v50  ;;  %v2377_v47 = vadd.f32 %v2873_v59, %v2345_v34  ;;  %v2071_v20 = vmul.f32 0.5, %v2070_v29 }
 0x326   : > { %v1830_v43 = vmul.f32 %v4802_v1, %v4802_v1  ;;  %v2212_v12 = vsub.f32 1.5, %v2211_v54  ;;  %v1861_v51 = vsub.f32 %v1797_v22, %v1829_v53  ;;  %vm2084_vm5 = vweird.f32 %v4794_v36 }
 0x327   : > { %v2331_v61 = vadd.f32 %v4707_v10, %v2296_v49  ;;  %2409 = vst [vmem:[%s4348_s18 + $0xd8] sm:$0xff] %v2377_v47  ;;  %v2072_v31 = vsub.f32 1.5, %v2071_v20  ;;  %v1879_v63 = vsub.f32 %v4397_v25, %v4778_v14  ;;  %v1893_v20 = vsub.f32 %v4381_v17, %v4792_v39 }
 0x328   : > { %v1862_v42 = vsub.f32 %v1798_v37, %v1830_v43  ;;  %v2213_v0 = vmul.f32 %v2834_v24, %v2212_v12  ;;  %v1925_v32 = vadd.f32 1e-05, %v1861_v51  ;;  %v2877_v43 = vld [vmem:[%s3203_s23 + $0x78] sm:$0xff]  ;;  %v1894_v51 = vsub.f32 %v4421_v15, %v4802_v1 }
 0x329   : > { %v2838_v45 = vpop.eup %2837  ;;  %v2363_v27 = vadd.f32 %v2874_v16, %v2331_v61  ;;  %v2073_v44 = vmul.f32 %v2836_v2, %v2072_v31  ;;  %v1895_v15 = vsub.f32 %v4407_v58, %v4808_v7 }
 0x32a   : > { %v2079_v60 = vmul.f32 %v2838_v45, %v4794_v36  ;;  %v4820_v6 = vadd.f32 1e-05, %v1862_v42  ;;  %v1735_v35 = vpop.xlane.xlu1 %1734  ;;  %v2217_v38 = vsel %vm2216_vm1, %v2834_v24, %v2213_v0  ;;  %2839 = vrsqrt.f32 %v1925_v32 }
 0x32b   : > { %2395 = vst [vmem:[%s4348_s18 + $0x68] sm:$0xff] %v2363_v27  ;;  %v1799_v56 = vmul.f32 0.0078125, %v1735_v35  ;;  %v2276_v18 = vmul.f32 %v2217_v38, %v1892_v11  ;;  %v2077_v13 = vsel %vm2076_vm3, %v2836_v2, %v2073_v44  ;;  %vm2085_vm4 = vweird.f32 %v2838_v45  ;;  %v2879_v38 = vld [vmem:[%s3203_s23 + $0xf0] sm:$0xff] }
 0x32c   : > { %v2080_v28 = vmul.f32 %v2838_v45, %v2079_v60  ;;  %2841 = vrsqrt.f32 %v4820_v6  ;;  %v2262_v8 = vmul.f32 %v2077_v13, %v1878_v23  ;;  %vm2086_vm6 = vmor %vm2084_vm5, %vm2085_vm4  ;;  %vm2224_vm9 = vweird.f32 %v1925_v32  ;;  %v2878_v60 = vld [vmem:[%s3203_s23 + $0xe8] sm:$0xff] }
 0x32d   : > { %v1863_v30 = vsub.f32 %v1799_v56, %v1831_v9  ;;  %v2311_v40 = vmul.f32 %v4698_v46, %v2276_v18  ;;  %vm2234_vm11 = vweird.f32 %v4820_v6  ;;  %v2880_v56 = vld [vmem:[%s3203_s23 + $0xf8] sm:$0xff] }
 0x32e   : > { %v2081_v4 = vmul.f32 0.5, %v2080_v28  ;;  %v2297_v48 = vmul.f32 %v4698_v46, %v2262_v8 }
 0x32f   : > { %v1927_v5 = vadd.f32 1e-05, %v1863_v30  ;;  %v2346_v24 = vadd.f32 %v4707_v10, %v2311_v40 }
 0x330   : > { %v2082_v3 = vsub.f32 1.5, %v2081_v4  ;;  %v2840_v62 = vpop.eup %2839  ;;  %v2332_v2 = vadd.f32 %v4707_v10, %v2297_v48 }
 0x331   : > { %2843 = vrsqrt.f32 %v1927_v5  ;;  %v2378_v19 = vadd.f32 %v2875_v26, %v2346_v24  ;;  %v2219_v55 = vmul.f32 %v2840_v62, %v1925_v32  ;;  %vm2225_vm7 = vweird.f32 %v2840_v62 }
 0x332   : > { %v2842_v41 = vpop.eup %2841  ;;  %v2083_v57 = vmul.f32 %v2838_v45, %v2082_v3  ;;  %v2364_v21 = vadd.f32 %v2876_v52, %v2332_v2  ;;  %vm2226_vm10 = vmor %vm2224_vm9, %vm2225_vm7  ;;  %vm2244_vm14 = vweird.f32 %v1927_v5 }
 0x333   : > { %v2229_v11 = vmul.f32 %v2842_v41, %v4820_v6  ;;  %2410 = vst [vmem:[%s4348_s18 + $0xe0] sm:$0xff] %v2378_v19  ;;  %v2220_v34 = vmul.f32 %v2840_v62, %v2219_v55  ;;  %vm2235_vm8 = vweird.f32 %v2842_v41 }
 0x334   : > { %v2087_v33 = vsel %vm2086_vm6, %v2838_v45, %v2083_v57  ;;  %2396 = vst [vmem:[%s4348_s18 + $0x70] sm:$0xff] %v2364_v21  ;;  %vm2236_vm12 = vmor %vm2234_vm11, %vm2235_vm8 }
 0x335   : > { %v2263_v29 = vmul.f32 %v2087_v33, %v1879_v63  ;;  %v2230_v22 = vmul.f32 %v2842_v41, %v2229_v11  ;;  %v2221_v50 = vmul.f32 0.5, %v2220_v34 }
 0x337   : > { %v2844_v49 = vpop.eup %2843  ;;  %v2298_v36 = vmul.f32 %v4698_v46, %v2263_v29  ;;  %v2231_v54 = vmul.f32 0.5, %v2230_v22  ;;  %v2222_v53 = vsub.f32 1.5, %v2221_v50 }
 0x338   : > { %v2239_v37 = vmul.f32 %v2844_v49, %v1927_v5  ;;  %vm2245_vm13 = vweird.f32 %v2844_v49 }
 0x339   : > { %v2333_v25 = vadd.f32 %v4707_v10, %v2298_v36  ;;  %v2232_v14 = vsub.f32 1.5, %v2231_v54  ;;  %v2223_v59 = vmul.f32 %v2840_v62, %v2222_v53  ;;  %vm2246_vm15 = vmor %vm2244_vm14, %vm2245_vm13 }
 0x33a   : > { %v2240_v47 = vmul.f32 %v2844_v49, %v2239_v37 }
 0x33b   : > { %v2365_v61 = vadd.f32 %v2877_v43, %v2333_v25  ;;  %v2233_v12 = vmul.f32 %v2842_v41, %v2232_v14  ;;  %v2227_v23 = vsel %vm2226_vm10, %v2840_v62, %v2223_v59 }
 0x33c   : > { %v2241_v31 = vmul.f32 0.5, %v2240_v47  ;;  %v2277_v42 = vmul.f32 %v2227_v23, %v1893_v20 }
 0x33d   : > { %2397 = vst [vmem:[%s4348_s18 + $0x78] sm:$0xff] %v2365_v61  ;;  %v2237_v45 = vsel %vm2236_vm12, %v2842_v41, %v2233_v12 }
 0x33e   : > { %v2278_v16 = vmul.f32 %v2237_v45, %v1894_v51  ;;  %v2242_v27 = vsub.f32 1.5, %v2241_v31  ;;  %v2312_v17 = vmul.f32 %v4698_v46, %v2277_v42 }
 0x340   : > { %v2313_v39 = vmul.f32 %v4698_v46, %v2278_v16  ;;  %v2243_v0 = vmul.f32 %v2844_v49, %v2242_v27  ;;  %v2347_v1 = vadd.f32 %v4707_v10, %v2312_v17 }
 0x342   : > { %v2348_v32 = vadd.f32 %v4707_v10, %v2313_v39  ;;  %v2247_v44 = vsel %vm2246_vm15, %v2844_v49, %v2243_v0  ;;  %v2379_v6 = vadd.f32 %v2878_v60, %v2347_v1 }
 0x343   : > { %v2279_v35 = vmul.f32 %v2247_v44, %v1895_v15 }
 0x344   : > { %v2380_v9 = vadd.f32 %v2879_v38, %v2348_v32  ;;  %2411 = vst [vmem:[%s4348_s18 + $0xe8] sm:$0xff] %v2379_v6 }
 0x345   : > { %v2314_v58 = vmul.f32 %v4698_v46, %v2279_v35 }
 0x346   : > { %2412 = vst [vmem:[%s4348_s18 + $0xf0] sm:$0xff] %v2380_v9 }
 0x347   : > { %v2349_v7 = vadd.f32 %v4707_v10, %v2314_v58 }
 0x349   : > { %v2381_v18 = vadd.f32 %v2880_v56, %v2349_v7 }
 0x34b   : > { %2413 = vst [vmem:[%s4348_s18 + $0xf8] sm:$0xff] %v2381_v18 }
 0x34c   : > { %2998 = shalt.err (!%p2995_p10)
}
 0x34d   : > { %s3049_s24 = smov 128   ;;  %s3050_s23 = smov 8  }
 0x34e   : > { %2648 = dma.vmem_to_hbm [thread:$0]  (%p3167_p3), %s2428_s19, 4096, %s2430_s1, %s2415_s15, %s3049_s24, %s3049_s24, %s3050_s23  }
 0x34f PF: > { %s2444_s18 = sand.u32 1, %s3029_s30   ;;  %p4951_p12 = scmp.ge.s32.totalorder %s3041_s12, 2 }
 0x350   : > { %s2445_s22 = scalar_lea.sflag [#allocation4], %s2444_s18 }
 0x351   : > { %p2662_p13 = pnand %p4951_p12, %p3136_p6 }
 0x353   : > { %p2663_p0 = pneg %p2662_p13 }
 0x355   : > { %3024 = dma.done.wait (%p2663_p0), %s2445_s22, 4096  }
 0x356   : > { %3026 = vsyncadd (%p2663_p0), %s2445_s22, 4294963200  ;;  %s4952_s28 = sld [smem:[#allocation12_spill]]  ;;  %p23_p5 = scmp.ge.s32.totalorder %s3157_s14, 4  }
 0x357   : > { %s4953_s30 = smov %s3033_s10  ;;  %s4954_s10 = smov %s3037_s11 }
 0x358   : > { %s4956_s12 = smov %s3157_s14  ;;  %25 = sbr.rel (!%p23_p5) target bundleno = 9 (0x9), region = 109 }
 0x35c   : > { %s4955_s11 = smov %s4952_s28 }
 0x35d   :  { %2451 = vsyncpa [#allocation3], 1 }
 0x35e   :  { %2453 = vsyncpa [#allocation3 + $0x1], 1 }
 0x35f   :  { %2454 = vsyncpa [#allocation6], 1 }
 0x360   :  { %2455 = vsyncpa [#allocation4], 1 }
 0x361   :  { %2457 = vsyncpa [#allocation4 + $0x1], 1 }

</bundles_post_ra>
